<compile_context>
chip_gen: v7x
topology: tpu7x:2x2x1
jax: 0.10.0
libtpu: 0.0.40
codegen_flags: <defaults>
</compile_context>

<pallas_src>
import functools

import jax
import jax.numpy as jnp
from jax import lax
from jax.experimental import pallas as pl
from jax.experimental.pallas import tpu as pltpu

LANE = 128        # TPU vreg lane width: channel / K dims are zero-padded to this.
NEG_SLOPE = 0.2   # LeakyReLU negative slope from the module.


def _round_up(n, m):
    return (n + m - 1) // m * m


def _cdiv(a, b):
    return (a + b - 1) // b


def _leaky_relu(y):
    # LeakyReLU(0.2) == max(y, 0.2*y): one VPU max instead of compare+select.
    return jnp.maximum(y, NEG_SLOPE * y)


def conv_block_kernel(xcol_ref, w1_ref, b1_ref, w2_ref, b2_ref, o_ref, h1p_ref,
                      *, ow1, p2):
    """Fused Conv2d -> LeakyReLU -> Conv2d -> LeakyReLU for one batch tile.

    xcol_ref: [TB, oh1, ow1s, K1p]   bf16 im2col patches of conv1 (K padded)
    w1_ref  : [K1p, Cmid_p]          bf16
    b1_ref  : [1, Cmid_p]            f32
    w2_ref  : [k2, k2, Cmid_p, Cout_p] bf16 (HWIO, channel-padded)
    b2_ref  : [1, Cout_p]            f32
    o_ref   : [TB, oh2, ow2, Cout_p]
    h1p_ref : VMEM scratch [TB, oh1+2*p2, W1s, Cmid_p] bf16 "canvas":
              conv1 activations at rows [p2, p2+oh1) / cols [0, ow1),
              zeros everywhere else (including W1s rounding pad).
    """
    tb, oh1, ow1s, k1p = xcol_ref.shape
    k2 = w2_ref.shape[0]
    cmid = w2_ref.shape[2]
    cout = w2_ref.shape[3]
    oh2, ow2 = o_ref.shape[1], o_ref.shape[2]
    H1p, W1s = h1p_ref.shape[1], h1p_ref.shape[2]

    # ---- keep the canvas zero border valid (cheap band stores every step).
    # A pl.when(program_id==0) guard is unsafe: under megacore the second
    # TensorCore never sees program_id 0 and its scratch would stay garbage.
    if p2 > 0:
        zrow = jnp.zeros((tb, p2, W1s, cmid), h1p_ref.dtype)
        h1p_ref[:, 0:p2, :, :] = zrow
        h1p_ref[:, p2 + oh1:H1p, :, :] = zrow
    if W1s > ow1:
        h1p_ref[:, p2:p2 + oh1, ow1:W1s, :] = jnp.zeros(
            (tb, oh1, W1s - ow1, cmid), h1p_ref.dtype)

    # --------- Conv1: one dense bf16 MXU matmul over im2col patches ----------
    n1 = tb * oh1 * ow1s
    acc1 = jnp.dot(xcol_ref[...].reshape(n1, k1p), w1_ref[...],
                   preferred_element_type=jnp.float32)
    a1 = _leaky_relu(acc1 + b1_ref[...])                       # f32 epilogue
    a1 = a1.reshape(tb, oh1, ow1s, cmid).astype(h1p_ref.dtype)  # -> bf16
    if ow1s != ow1:
        a1 = a1[:, :, :ow1, :]        # drop the W rounding pad (offset-0 slice)
    h1p_ref[:, p2:p2 + oh1, 0:ow1, :] = a1

    # ---- Conv2: k2*k2 full-padded-width bf16 matmuls over free H-sliced -----
    # ---- canvas views; dx alignment applied to the f32 partial sums.    -----
    n2 = tb * oh2 * W1s
    lhs = [h1p_ref[:, dy:dy + oh2, :, :].reshape(n2, cmid) for dy in range(k2)]
    acc2 = None
    for dx in range(k2):
        part = None
        for dy in range(k2):
            r = jnp.dot(lhs[dy], w2_ref[dy, dx, :, :],
                        preferred_element_type=jnp.float32)
            part = r if part is None else part + r
        # Row roll by (p2 - dx): out[.., x] needs canvas[.., x + dx]; the pad
        # columns (always zero) absorb any cross-row bleed so the flat roll is
        # exact on the valid x range. (pltpu.roll would do this on the XLU.)
        if (p2 - dx) % n2 != 0:
            part = jnp.roll(part, p2 - dx, axis=0)
        acc2 = part if acc2 is None else acc2 + part

    y2 = _leaky_relu(acc2 + b2_ref[...])
    y2 = y2.reshape(tb, oh2, W1s, cout)
    if W1s != ow2:
        y2 = y2[:, :, :ow2, :]        # offset-0 slice of the padded width
    o_ref[...] = y2.astype(o_ref.dtype)


def prepare_conv_block_params(w1, b1, w2, b2, lane=LANE):
    """One-time param prep (call at init, NOT per forward):
    PyTorch OIHW / [C] -> conv1 as a 2-D [k1*k1*Cin (padded), Cmid (padded)]
    bf16 matrix, conv2 as HWIO bf16 with padded channels, biases f32 rows."""
    cmid, cin, k1, _ = w1.shape       # conv1: in_channel -> out_channel
    cout, cmid2, k2, _ = w2.shape     # conv2: out_channel -> out_channel
    assert cmid2 == cmid

    K1 = k1 * k1 * cin
    K1p = _round_up(K1, lane)
    cmid_p = _round_up(cmid, lane)
    cout_p = _round_up(cout, lane)

    # (dy, dx, cin) ordering must match the wrapper-side im2col concat order.
    w1_2d = jnp.transpose(w1, (2, 3, 1, 0)).reshape(K1, cmid)
    w1_p = jnp.zeros((K1p, cmid_p), jnp.bfloat16)
    w1_p = w1_p.at[:K1, :cmid].set(w1_2d.astype(jnp.bfloat16))

    w2_hwio = jnp.transpose(w2, (2, 3, 1, 0))                 # [k2,k2,cmid,cout]
    w2_p = jnp.zeros((k2, k2, cmid_p, cout_p), jnp.bfloat16)
    w2_p = w2_p.at[:, :, :cmid, :cout].set(w2_hwio.astype(jnp.bfloat16))

    b1_p = jnp.zeros((1, cmid_p), jnp.float32).at[0, :cmid].set(b1.astype(jnp.float32))
    b2_p = jnp.zeros((1, cout_p), jnp.float32).at[0, :cout].set(b2.astype(jnp.float32))
    return w1_p, b1_p, w2_p, b2_p


@functools.partial(jax.jit,
                   static_argnames=("size_kernel1", "padding1", "padding2",
                                    "out_channels", "batch_tile"))
def conv_block(x, w1_p, b1_p, w2_p, b2_p, *, size_kernel1, padding1, padding2,
               out_channels, batch_tile=8):
    """x: [B, Cin, H, W] (PyTorch NCHW). Returns [B, Cout, H2, W2]."""
    B, cin, H, W = x.shape
    k1 = size_kernel1
    k2 = w2_p.shape[0]
    K1 = k1 * k1 * cin
    K1p, cmid_p = w1_p.shape
    cout_p = w2_p.shape[3]
    p1, p2 = padding1, padding2

    oh1 = H + 2 * p1 - k1 + 1
    ow1 = W + 2 * p1 - k1 + 1
    oh2 = oh1 + 2 * p2 - k2 + 1
    ow2 = ow1 + 2 * p2 - k2 + 1
    assert oh1 > 0 and ow1 > 0 and oh2 > 0 and ow2 > 0
    assert K1 <= K1p

    # W dims padded to a bf16-tile-friendly multiple so in-kernel reshapes are
    # layout-free (no sublane repacking).
    ow1s = _round_up(ow1, 16)
    H1p = oh1 + 2 * p2
    W1s = _round_up(ow1 + 2 * p2, 16)

    # Batch tile: aim for >=4 grid steps (v7x megacore + DMA/compute overlap).
    tb = max(1, min(batch_tile, B))
    while tb > 1 and _cdiv(B, tb) < 4:
        tb = max(1, tb // 2)
    bp = _cdiv(B, tb) * tb

    # NCHW -> NHWC, spatial pad by p1, im2col for conv1 (K = k1*k1*Cin ordered
    # (dy, dx, cin) to match the weight reshape), pad to (ow1s, K1p), cast bf16.
    x_nhwc = jnp.transpose(x, (0, 2, 3, 1))
    xp = jnp.pad(x_nhwc, ((0, 0), (p1, p1), (p1, p1), (0, 0)))
    cols = [xp[:, dy:dy + oh1, dx:dx + ow1, :]
            for dy in range(k1) for dx in range(k1)]
    patches = cols[0] if len(cols) == 1 else jnp.concatenate(cols, axis=-1)
    xcol = jnp.zeros((bp, oh1, ow1s, K1p), jnp.bfloat16)
    xcol = xcol.at[:B, :, :ow1, :K1].set(patches.astype(jnp.bfloat16))

    # VMEM budget from the actual footprint (x2 double-buffering + live-value
    # headroom), clamped so it is safe on v7x's 64 MiB physical VMEM.
    in_tile = tb * oh1 * ow1s * K1p * 2
    out_tile = tb * oh2 * ow2 * cout_p * 4
    weights = (K1p * cmid_p + k2 * k2 * cmid_p * cout_p) * 2 + (cmid_p + cout_p) * 4
    scratch = tb * H1p * W1s * cmid_p * 2
    live = 6 * tb * oh2 * W1s * cout_p * 4
    vmem_limit = 2 * (in_tile + out_tile) + 2 * weights + scratch + live + (4 << 20)
    vmem_limit = max(16 << 20, min(48 << 20, int(vmem_limit)))

    kernel = functools.partial(conv_block_kernel, ow1=ow1, p2=p2)
    out = pl.pallas_call(
        kernel,
        out_shape=jax.ShapeDtypeStruct((bp, oh2, ow2, cout_p), x.dtype),
        grid=(bp // tb,),
        in_specs=[
            pl.BlockSpec((tb, oh1, ow1s, K1p), lambda i: (i, 0, 0, 0)),
            pl.BlockSpec((K1p, cmid_p), lambda i: (0, 0)),
            pl.BlockSpec((1, cmid_p), lambda i: (0, 0)),
            pl.BlockSpec((k2, k2, cmid_p, cout_p), lambda i: (0, 0, 0, 0)),
            pl.BlockSpec((1, cout_p), lambda i: (0, 0)),
        ],
        out_specs=pl.BlockSpec((tb, oh2, ow2, cout_p), lambda i: (i, 0, 0, 0)),
        scratch_shapes=[pltpu.VMEM((tb, H1p, W1s, cmid_p), jnp.bfloat16)],
        compiler_params=pltpu.CompilerParams(
            dimension_semantics=("parallel",),   # batch axis -> 2 TCs on v7x
            vmem_limit_bytes=vmem_limit,
        ),
    )(xcol, w1_p, b1_p, w2_p, b2_p)

    # Strip batch / channel padding, back to NCHW.
    out = out[:B, :, :, :out_channels]
    return jnp.transpose(out, (0, 3, 1, 2))


def reference(x, w1, b1, w2, b2, p1, p2, *, match_kernel_precision=True):
    """Pure-JAX reference matching the PyTorch ConvBlock forward.

    With match_kernel_precision=True the operands / intermediate activation are
    rounded to bf16 exactly like the kernel's MXU path (review suggestion), so
    the correctness check stays tight."""
    dn = ("NCHW", "OIHW", "NCHW")
    if match_kernel_precision:
        x = x.astype(jnp.bfloat16).astype(jnp.float32)
        w1 = w1.astype(jnp.bfloat16).astype(jnp.float32)
        w2 = w2.astype(jnp.bfloat16).astype(jnp.float32)
    y = lax.conv_general_dilated(x, w1, (1, 1), ((p1, p1), (p1, p1)),
                                 dimension_numbers=dn,
                                 precision=lax.Precision.HIGHEST)
    y = _leaky_relu(y + b1[None, :, None, None])
    if match_kernel_precision:
        y = y.astype(jnp.bfloat16).astype(jnp.float32)
    y = lax.conv_general_dilated(y, w2, (1, 1), ((p2, p2), (p2, p2)),
                                 dimension_numbers=dn,
                                 precision=lax.Precision.HIGHEST)
    return _leaky_relu(y + b2[None, :, None, None])


if __name__ == "__main__":
    key = jax.random.PRNGKey(0)
    kx, kw1, kb1, kw2, kb2 = jax.random.split(key, 5)

    B, Cin, H, W = 8, 4, 16, 16
    Cout = 8
    k1 = k2 = 3
    p1 = p2 = 1

    x = jax.random.normal(kx, (B, Cin, H, W), dtype=jnp.float32)

    # nn.Conv2d default init: U(-1/sqrt(fan_in), 1/sqrt(fan_in)).
    bound1 = 1.0 / (Cin * k1 * k1) ** 0.5
    w1 = jax.random.uniform(kw1, (Cout, Cin, k1, k1), jnp.float32, -bound1, bound1)
    b1 = jax.random.uniform(kb1, (Cout,), jnp.float32, -bound1, bound1)
    bound2 = 1.0 / (Cout * k2 * k2) ** 0.5
    w2 = jax.random.uniform(kw2, (Cout, Cout, k2, k2), jnp.float32, -bound2, bound2)
    b2 = jax.random.uniform(kb2, (Cout,), jnp.float32, -bound2, bound2)

    # One-time param prep (layout + lane padding + bf16) — out of the call path.
    w1_p, b1_p, w2_p, b2_p = prepare_conv_block_params(w1, b1, w2, b2)

    out = conv_block(x, w1_p, b1_p, w2_p, b2_p,
                     size_kernel1=k1, padding1=p1, padding2=p2,
                     out_channels=Cout, batch_tile=8)
    out = jax.block_until_ready(out)

    ref = reference(x, w1, b1, w2, b2, p1, p2)
    assert out.shape == ref.shape == (B, Cout, H, W)
    max_err = float(jnp.max(jnp.abs(out - ref)))
    assert jnp.allclose(out, ref, atol=2e-2, rtol=2e-2), max_err

    print("KERNEL_OK")
</pallas_src>

<mosaic_0001>
module attributes {stable_mosaic.version = 11 : i64} {
  func.func @conv_block_kernel(%arg0: i32, %arg1: memref<2x16x16x128xbf16, #tpu.memory_space<vmem>>, %arg2: memref<128x128xbf16, #tpu.memory_space<vmem>>, %arg3: memref<1x128xf32, #tpu.memory_space<vmem>>, %arg4: memref<3x3x128x128xbf16, #tpu.memory_space<vmem>>, %arg5: memref<1x128xf32, #tpu.memory_space<vmem>>, %arg6: memref<2x16x16x128xf32, #tpu.memory_space<vmem>>, %arg7: memref<2x18x32x128xbf16, #tpu.memory_space<vmem>>) attributes {dimension_semantics = [#tpu.dimension_semantics<parallel>], iteration_bounds = array<i64: 4>, scalar_prefetch = 0 : i64, scratch_operands = 1 : i64, tpu.core_type = #tpu.core_type<tc>, window_params = [{transform_indices = @transform_0, window_bounds = array<i64: 2, 16, 16, 128>}, {pipeline_mode = #tpu.pipeline_mode<synchronous>, transform_indices = @transform_1, window_bounds = array<i64: 128, 128>}, {pipeline_mode = #tpu.pipeline_mode<synchronous>, transform_indices = @transform_2, window_bounds = array<i64: 1, 128>}, {pipeline_mode = #tpu.pipeline_mode<synchronous>, transform_indices = @transform_3, window_bounds = array<i64: 3, 3, 128, 128>}, {pipeline_mode = #tpu.pipeline_mode<synchronous>, transform_indices = @transform_4, window_bounds = array<i64: 1, 128>}, {transform_indices = @transform_5, window_bounds = array<i64: 2, 16, 16, 128>}]} {
    %cst = arith.constant 0.000000e+00 : bf16
    %0 = vector.broadcast %cst : bf16 to vector<2x1x32x128xbf16>
    %c0 = arith.constant 0 : index
    %c0_0 = arith.constant 0 : index
    %c0_1 = arith.constant 0 : index
    %c0_2 = arith.constant 0 : index
    %1 = vector.load %arg7[%c0, %c0_0, %c0_1, %c0_2] : memref<2x18x32x128xbf16, #tpu.memory_space<vmem>>, vector<2x1x32x128xbf16>
    tpu.vector_store %arg7[%c0, %c0_0, %c0_1, %c0_2], %0 {strides = array<i32>} : memref<2x18x32x128xbf16, #tpu.memory_space<vmem>>, vector<2x1x32x128xbf16>,
    %c0_3 = arith.constant 0 : index
    %c17 = arith.constant 17 : index
    %c0_4 = arith.constant 0 : index
    %c0_5 = arith.constant 0 : index
    %2 = vector.load %arg7[%c0_3, %c17, %c0_4, %c0_5] : memref<2x18x32x128xbf16, #tpu.memory_space<vmem>>, vector<2x1x32x128xbf16>
    tpu.vector_store %arg7[%c0_3, %c17, %c0_4, %c0_5], %0 {strides = array<i32>} : memref<2x18x32x128xbf16, #tpu.memory_space<vmem>>, vector<2x1x32x128xbf16>,
    %cst_6 = arith.constant 0.000000e+00 : bf16
    %3 = vector.broadcast %cst_6 : bf16 to vector<2x16x16x128xbf16>
    %c0_7 = arith.constant 0 : index
    %c1 = arith.constant 1 : index
    %c16 = arith.constant 16 : index
    %c0_8 = arith.constant 0 : index
    %4 = vector.load %arg7[%c0_7, %c1, %c16, %c0_8] : memref<2x18x32x128xbf16, #tpu.memory_space<vmem>>, vector<2x16x16x128xbf16>
    tpu.vector_store %arg7[%c0_7, %c1, %c16, %c0_8], %3 {strides = array<i32>} : memref<2x18x32x128xbf16, #tpu.memory_space<vmem>>, vector<2x16x16x128xbf16>,
    %c0_9 = arith.constant 0 : index
    %c0_10 = arith.constant 0 : index
    %c0_11 = arith.constant 0 : index
    %c0_12 = arith.constant 0 : index
    %5 = vector.load %arg1[%c0_9, %c0_10, %c0_11, %c0_12] : memref<2x16x16x128xbf16, #tpu.memory_space<vmem>>, vector<2x16x16x128xbf16>
    %6 = vector.shape_cast %5 : vector<2x16x16x128xbf16> to vector<512x128xbf16>
    %c0_13 = arith.constant 0 : index
    %c0_14 = arith.constant 0 : index
    %7 = vector.load %arg2[%c0_13, %c0_14] : memref<128x128xbf16, #tpu.memory_space<vmem>>, vector<128x128xbf16>
    %cst_15 = arith.constant dense<0.000000e+00> : vector<512x128xf32>
    %8 = tpu.matmul %6, %7, %cst_15 {dimension_numbers = #tpu.dot_dimension_numbers<[1], [0], [0], [1], [0, 0, 1, 1], [], []>} : vector<512x128xbf16>, vector<128x128xbf16>, vector<512x128xf32> -> vector<512x128xf32>
    %c0_16 = arith.constant 0 : index
    %c0_17 = arith.constant 0 : index
    %9 = vector.load %arg3[%c0_16, %c0_17] : memref<1x128xf32, #tpu.memory_space<vmem>>, vector<1x128xf32>
    %10 = vector.broadcast %9 : vector<1x128xf32> to vector<512x128xf32>
    %11 = arith.addf %8, %10 : vector<512x128xf32>
    %cst_18 = arith.constant 2.000000e-01 : f32
    %12 = vector.broadcast %cst_18 : f32 to vector<512x128xf32>
    %13 = arith.mulf %12, %11 : vector<512x128xf32>
    %14 = arith.maximumf %11, %13 : vector<512x128xf32>
    %15 = vector.shape_cast %14 : vector<512x128xf32> to vector<2x16x16x128xf32>
    %16 = arith.truncf %15 : vector<2x16x16x128xf32> to vector<2x16x16x128xbf16>
    %c0_19 = arith.constant 0 : index
    %c1_20 = arith.constant 1 : index
    %c0_21 = arith.constant 0 : index
    %c0_22 = arith.constant 0 : index
    %17 = vector.load %arg7[%c0_19, %c1_20, %c0_21, %c0_22] : memref<2x18x32x128xbf16, #tpu.memory_space<vmem>>, vector<2x16x16x128xbf16>
    tpu.vector_store %arg7[%c0_19, %c1_20, %c0_21, %c0_22], %16 {strides = array<i32>} : memref<2x18x32x128xbf16, #tpu.memory_space<vmem>>, vector<2x16x16x128xbf16>,
    %c0_23 = arith.constant 0 : index
    %c0_24 = arith.constant 0 : index
    %c0_25 = arith.constant 0 : index
    %c0_26 = arith.constant 0 : index
    %18 = vector.load %arg7[%c0_23, %c0_24, %c0_25, %c0_26] : memref<2x18x32x128xbf16, #tpu.memory_space<vmem>>, vector<2x16x32x128xbf16>
    %19 = vector.shape_cast %18 : vector<2x16x32x128xbf16> to vector<1024x128xbf16>
    %c0_27 = arith.constant 0 : index
    %c1_28 = arith.constant 1 : index
    %c0_29 = arith.constant 0 : index
    %c0_30 = arith.constant 0 : index
    %20 = vector.load %arg7[%c0_27, %c1_28, %c0_29, %c0_30] : memref<2x18x32x128xbf16, #tpu.memory_space<vmem>>, vector<2x16x32x128xbf16>
    %21 = vector.shape_cast %20 : vector<2x16x32x128xbf16> to vector<1024x128xbf16>
    %c0_31 = arith.constant 0 : index
    %c2 = arith.constant 2 : index
    %c0_32 = arith.constant 0 : index
    %c0_33 = arith.constant 0 : index
    %22 = vector.load %arg7[%c0_31, %c2, %c0_32, %c0_33] : memref<2x18x32x128xbf16, #tpu.memory_space<vmem>>, vector<2x16x32x128xbf16>
    %23 = vector.shape_cast %22 : vector<2x16x32x128xbf16> to vector<1024x128xbf16>
    %c0_34 = arith.constant 0 : index
    %c0_35 = arith.constant 0 : index
    %c0_36 = arith.constant 0 : index
    %c0_37 = arith.constant 0 : index
    %24 = vector.load %arg4[%c0_34, %c0_35, %c0_36, %c0_37] : memref<3x3x128x128xbf16, #tpu.memory_space<vmem>>, vector<1x1x128x128xbf16>
    %25 = vector.shape_cast %24 : vector<1x1x128x128xbf16> to vector<128x128xbf16>
    %cst_38 = arith.constant dense<0.000000e+00> : vector<1024x128xf32>
    %26 = tpu.matmul %19, %25, %cst_38 {dimension_numbers = #tpu.dot_dimension_numbers<[1], [0], [0], [1], [0, 0, 1, 1], [], []>} : vector<1024x128xbf16>, vector<128x128xbf16>, vector<1024x128xf32> -> vector<1024x128xf32>
    %c1_39 = arith.constant 1 : index
    %c0_40 = arith.constant 0 : index
    %c0_41 = arith.constant 0 : index
    %c0_42 = arith.constant 0 : index
    %27 = vector.load %arg4[%c1_39, %c0_40, %c0_41, %c0_42] : memref<3x3x128x128xbf16, #tpu.memory_space<vmem>>, vector<1x1x128x128xbf16>
    %28 = vector.shape_cast %27 : vector<1x1x128x128xbf16> to vector<128x128xbf16>
    %cst_43 = arith.constant dense<0.000000e+00> : vector<1024x128xf32>
    %29 = tpu.matmul %21, %28, %cst_43 {dimension_numbers = #tpu.dot_dimension_numbers<[1], [0], [0], [1], [0, 0, 1, 1], [], []>} : vector<1024x128xbf16>, vector<128x128xbf16>, vector<1024x128xf32> -> vector<1024x128xf32>
    %30 = arith.addf %26, %29 : vector<1024x128xf32>
    %c2_44 = arith.constant 2 : index
    %c0_45 = arith.constant 0 : index
    %c0_46 = arith.constant 0 : index
    %c0_47 = arith.constant 0 : index
    %31 = vector.load %arg4[%c2_44, %c0_45, %c0_46, %c0_47] : memref<3x3x128x128xbf16, #tpu.memory_space<vmem>>, vector<1x1x128x128xbf16>
    %32 = vector.shape_cast %31 : vector<1x1x128x128xbf16> to vector<128x128xbf16>
    %cst_48 = arith.constant dense<0.000000e+00> : vector<1024x128xf32>
    %33 = tpu.matmul %23, %32, %cst_48 {dimension_numbers = #tpu.dot_dimension_numbers<[1], [0], [0], [1], [0, 0, 1, 1], [], []>} : vector<1024x128xbf16>, vector<128x128xbf16>, vector<1024x128xf32> -> vector<1024x128xf32>
    %34 = arith.addf %30, %33 : vector<1024x128xf32>
    %35 = vector.extract_strided_slice %34 {offsets = [1023, 0], sizes = [1, 128], strides = [1, 1]} : vector<1024x128xf32> to vector<1x128xf32>
    %36 = vector.extract_strided_slice %34 {offsets = [0, 0], sizes = [1023, 128], strides = [1, 1]} : vector<1024x128xf32> to vector<1023x128xf32>
    %37 = tpu.concatenate %35, %36 in 0 : vector<1x128xf32>, vector<1023x128xf32> -> vector<1024x128xf32>
    %c0_49 = arith.constant 0 : index
    %c1_50 = arith.constant 1 : index
    %c0_51 = arith.constant 0 : index
    %c0_52 = arith.constant 0 : index
    %38 = vector.load %arg4[%c0_49, %c1_50, %c0_51, %c0_52] : memref<3x3x128x128xbf16, #tpu.memory_space<vmem>>, vector<1x1x128x128xbf16>
    %39 = vector.shape_cast %38 : vector<1x1x128x128xbf16> to vector<128x128xbf16>
    %cst_53 = arith.constant dense<0.000000e+00> : vector<1024x128xf32>
    %40 = tpu.matmul %19, %39, %cst_53 {dimension_numbers = #tpu.dot_dimension_numbers<[1], [0], [0], [1], [0, 0, 1, 1], [], []>} : vector<1024x128xbf16>, vector<128x128xbf16>, vector<1024x128xf32> -> vector<1024x128xf32>
    %c1_54 = arith.constant 1 : index
    %c1_55 = arith.constant 1 : index
    %c0_56 = arith.constant 0 : index
    %c0_57 = arith.constant 0 : index
    %41 = vector.load %arg4[%c1_54, %c1_55, %c0_56, %c0_57] : memref<3x3x128x128xbf16, #tpu.memory_space<vmem>>, vector<1x1x128x128xbf16>
    %42 = vector.shape_cast %41 : vector<1x1x128x128xbf16> to vector<128x128xbf16>
    %cst_58 = arith.constant dense<0.000000e+00> : vector<1024x128xf32>
    %43 = tpu.matmul %21, %42, %cst_58 {dimension_numbers = #tpu.dot_dimension_numbers<[1], [0], [0], [1], [0, 0, 1, 1], [], []>} : vector<1024x128xbf16>, vector<128x128xbf16>, vector<1024x128xf32> -> vector<1024x128xf32>
    %44 = arith.addf %40, %43 : vector<1024x128xf32>
    %c2_59 = arith.constant 2 : index
    %c1_60 = arith.constant 1 : index
    %c0_61 = arith.constant 0 : index
    %c0_62 = arith.constant 0 : index
    %45 = vector.load %arg4[%c2_59, %c1_60, %c0_61, %c0_62] : memref<3x3x128x128xbf16, #tpu.memory_space<vmem>>, vector<1x1x128x128xbf16>
    %46 = vector.shape_cast %45 : vector<1x1x128x128xbf16> to vector<128x128xbf16>
    %cst_63 = arith.constant dense<0.000000e+00> : vector<1024x128xf32>
    %47 = tpu.matmul %23, %46, %cst_63 {dimension_numbers = #tpu.dot_dimension_numbers<[1], [0], [0], [1], [0, 0, 1, 1], [], []>} : vector<1024x128xbf16>, vector<128x128xbf16>, vector<1024x128xf32> -> vector<1024x128xf32>
    %48 = arith.addf %44, %47 : vector<1024x128xf32>
    %49 = arith.addf %37, %48 : vector<1024x128xf32>
    %c0_64 = arith.constant 0 : index
    %c2_65 = arith.constant 2 : index
    %c0_66 = arith.constant 0 : index
    %c0_67 = arith.constant 0 : index
    %50 = vector.load %arg4[%c0_64, %c2_65, %c0_66, %c0_67] : memref<3x3x128x128xbf16, #tpu.memory_space<vmem>>, vector<1x1x128x128xbf16>
    %51 = vector.shape_cast %50 : vector<1x1x128x128xbf16> to vector<128x128xbf16>
    %cst_68 = arith.constant dense<0.000000e+00> : vector<1024x128xf32>
    %52 = tpu.matmul %19, %51, %cst_68 {dimension_numbers = #tpu.dot_dimension_numbers<[1], [0], [0], [1], [0, 0, 1, 1], [], []>} : vector<1024x128xbf16>, vector<128x128xbf16>, vector<1024x128xf32> -> vector<1024x128xf32>
    %c1_69 = arith.constant 1 : index
    %c2_70 = arith.constant 2 : index
    %c0_71 = arith.constant 0 : index
    %c0_72 = arith.constant 0 : index
    %53 = vector.load %arg4[%c1_69, %c2_70, %c0_71, %c0_72] : memref<3x3x128x128xbf16, #tpu.memory_space<vmem>>, vector<1x1x128x128xbf16>
    %54 = vector.shape_cast %53 : vector<1x1x128x128xbf16> to vector<128x128xbf16>
    %cst_73 = arith.constant dense<0.000000e+00> : vector<1024x128xf32>
    %55 = tpu.matmul %21, %54, %cst_73 {dimension_numbers = #tpu.dot_dimension_numbers<[1], [0], [0], [1], [0, 0, 1, 1], [], []>} : vector<1024x128xbf16>, vector<128x128xbf16>, vector<1024x128xf32> -> vector<1024x128xf32>
    %56 = arith.addf %52, %55 : vector<1024x128xf32>
    %c2_74 = arith.constant 2 : index
    %c2_75 = arith.constant 2 : index
    %c0_76 = arith.constant 0 : index
    %c0_77 = arith.constant 0 : index
    %57 = vector.load %arg4[%c2_74, %c2_75, %c0_76, %c0_77] : memref<3x3x128x128xbf16, #tpu.memory_space<vmem>>, vector<1x1x128x128xbf16>
    %58 = vector.shape_cast %57 : vector<1x1x128x128xbf16> to vector<128x128xbf16>
    %cst_78 = arith.constant dense<0.000000e+00> : vector<1024x128xf32>
    %59 = tpu.matmul %23, %58, %cst_78 {dimension_numbers = #tpu.dot_dimension_numbers<[1], [0], [0], [1], [0, 0, 1, 1], [], []>} : vector<1024x128xbf16>, vector<128x128xbf16>, vector<1024x128xf32> -> vector<1024x128xf32>
    %60 = arith.addf %56, %59 : vector<1024x128xf32>
    %61 = vector.extract_strided_slice %60 {offsets = [1, 0], sizes = [1023, 128], strides = [1, 1]} : vector<1024x128xf32> to vector<1023x128xf32>
    %62 = vector.extract_strided_slice %60 {offsets = [0, 0], sizes = [1, 128], strides = [1, 1]} : vector<1024x128xf32> to vector<1x128xf32>
    %63 = tpu.concatenate %61, %62 in 0 : vector<1023x128xf32>, vector<1x128xf32> -> vector<1024x128xf32>
    %64 = arith.addf %49, %63 : vector<1024x128xf32>
    %c0_79 = arith.constant 0 : index
    %c0_80 = arith.constant 0 : index
    %65 = vector.load %arg5[%c0_79, %c0_80] : memref<1x128xf32, #tpu.memory_space<vmem>>, vector<1x128xf32>
    %66 = vector.broadcast %65 : vector<1x128xf32> to vector<1024x128xf32>
    %67 = arith.addf %64, %66 : vector<1024x128xf32>
    %cst_81 = arith.constant 2.000000e-01 : f32
    %68 = vector.broadcast %cst_81 : f32 to vector<1024x128xf32>
    %69 = arith.mulf %68, %67 : vector<1024x128xf32>
    %70 = arith.maximumf %67, %69 : vector<1024x128xf32>
    %71 = vector.shape_cast %70 : vector<1024x128xf32> to vector<2x16x32x128xf32>
    %72 = vector.extract_strided_slice %71 {offsets = [0, 0, 0, 0], sizes = [2, 16, 16, 128], strides = [1, 1, 1, 1]} : vector<2x16x32x128xf32> to vector<2x16x16x128xf32>
    %c0_82 = arith.constant 0 : index
    %c0_83 = arith.constant 0 : index
    %c0_84 = arith.constant 0 : index
    %c0_85 = arith.constant 0 : index
    %73 = vector.load %arg6[%c0_82, %c0_83, %c0_84, %c0_85] : memref<2x16x16x128xf32, #tpu.memory_space<vmem>>, vector<2x16x16x128xf32>
    tpu.vector_store %arg6[%c0_82, %c0_83, %c0_84, %c0_85], %72 {strides = array<i32>} : memref<2x16x16x128xf32, #tpu.memory_space<vmem>>, vector<2x16x16x128xf32>,
    return
  }
  func.func @transform_0(%arg0: i32) -> (i32, i32, i32, i32) {
    %c0_i32 = arith.constant 0 : i32
    %c0_i32_0 = arith.constant 0 : i32
    %c0_i32_1 = arith.constant 0 : i32
    %c0_i32_2 = arith.constant 0 : i32
    return %arg0, %c0_i32, %c0_i32_0, %c0_i32_1 : i32, i32, i32, i32
  }
  func.func @transform_1(%arg0: i32) -> (i32, i32) {
    %c0_i32 = arith.constant 0 : i32
    %c0_i32_0 = arith.constant 0 : i32
    %c0_i32_1 = arith.constant 0 : i32
    return %c0_i32, %c0_i32_0 : i32, i32
  }
  func.func @transform_2(%arg0: i32) -> (i32, i32) {
    %c0_i32 = arith.constant 0 : i32
    %c0_i32_0 = arith.constant 0 : i32
    %c0_i32_1 = arith.constant 0 : i32
    return %c0_i32, %c0_i32_0 : i32, i32
  }
  func.func @transform_3(%arg0: i32) -> (i32, i32, i32, i32) {
    %c0_i32 = arith.constant 0 : i32
    %c0_i32_0 = arith.constant 0 : i32
    %c0_i32_1 = arith.constant 0 : i32
    %c0_i32_2 = arith.constant 0 : i32
    %c0_i32_3 = arith.constant 0 : i32
    return %c0_i32, %c0_i32_0, %c0_i32_1, %c0_i32_2 : i32, i32, i32, i32
  }
  func.func @transform_4(%arg0: i32) -> (i32, i32) {
    %c0_i32 = arith.constant 0 : i32
    %c0_i32_0 = arith.constant 0 : i32
    %c0_i32_1 = arith.constant 0 : i32
    return %c0_i32, %c0_i32_0 : i32, i32
  }
  func.func @transform_5(%arg0: i32) -> (i32, i32, i32, i32) {
    %c0_i32 = arith.constant 0 : i32
    %c0_i32_0 = arith.constant 0 : i32
    %c0_i32_1 = arith.constant 0 : i32
    %c0_i32_2 = arith.constant 0 : i32
    return %arg0, %c0_i32, %c0_i32_0, %c0_i32_1 : i32, i32, i32, i32
  }
}

</mosaic_0001>

<bundles_post_ra>
// kernel: conv_block.1
= control target key start
LH: loop header
LB: loop body
LE: loop exit
PB: predicated region body
PF: predicated region fallthrough
CT: control target
= control target key end

     0   :  { %s10708_s18 = smov 0   ;;  %s13118_s0 = inlined_call_operand.vmem [shape: bf16[8,16,16,128], index: 0, kind: input, shape index: {}]   ;;  %s13119_s1 = inlined_call_operand.vmem [shape: bf16[128,128], index: 1, kind: input, shape index: {}]   ;;  %s13120_s2 = inlined_call_operand.vmem [shape: f32[1,128], index: 2, kind: input, shape index: {}]   ;;  %s13121_s3 = inlined_call_operand.vmem [shape: bf16[3,3,128,128], index: 3, kind: input, shape index: {}]   ;;  %s13122_s4 = inlined_call_operand.vmem [shape: f32[1,128], index: 4, kind: input, shape index: {}]   ;;  %s13123_s5 = inlined_call_operand.vmem [shape: f32[8,16,16,128], index: 5, kind: output, shape index: {}]  }
   0x1 LB: > { %s7730_s19 = sadd.s32 4294967295, %s10675_s18   ;;  %p7734_p0 = scmp.ge.s32.totalorder %s10675_s18, 1  ;;  %s10675_s18 = sphi %s10708_s18, %s15_s18  }
   0x2   : > { %p189_p1 = scmp.lt.s32.totalorder %s10675_s18, 5 }
   0x4   : > { %p190_p2 = pnand %p7734_p0, %p189_p1 }
   0x6   : > { %193 = sbr.rel (%p190_p2) target bundleno = 1729 (0x6c1), region = 40 }
   0xd   : > { %v10556_v0 = vld [vmem:[%s13119_s1] sm:$0xff]   ;;  %s7735_s22 = sshll.u32 %s7730_s19, 1  ;;  %v10557_v1 = vld [vmem:[%s13119_s1 + $0x8] sm:$0xff]   ;;  %v10558_v2 = vld [vmem:[%s13119_s1 + $0x10] sm:$0xff]   ;;  %vm3204_vm0 = vcmask 1040384   ;;  %vm7120_vm1 = vcmask 1046528  }
   0xe   : > { %p220_p3 = scmp.lt.s32.totalorder %s7735_s22, 7  ;;  %8675 = vmatprep.subr.bf16.mxu0 %v10556_v0  ;;  %v10559_v3 = vld [vmem:[%s13119_s1 + $0x18] sm:$0xff]   ;;  %v10560_v5 = vld [vmem:[%s13119_s1 + $0x20] sm:$0xff]   ;;  %v10561_v6 = vld [vmem:[%s13119_s1 + $0x28] sm:$0xff]  }
   0xf   : > { %8676 = vmatpush3.bf16.msra.mxu0 %v10556_v0  ;;  %v10562_v7 = vld [vmem:[%s13119_s1 + $0x30] sm:$0xff]   ;;  %v10563_v8 = vld [vmem:[%s13119_s1 + $0x38] sm:$0xff]   ;;  %v10594_v13 = vld [vmem:[%s13121_s3 + $0xc0] sm:$0xff]  }
  0x10   : > { %s13614_s22 = smov (!%p220_p3, %s7735_s22), 7  ;;  %8677 = vmatprep.subr.bf16.mxu0 %v10557_v1  ;;  %v10595_v14 = vld [vmem:[%s13121_s3 + $0xc8] sm:$0xff]   ;;  %v10596_v15 = vld [vmem:[%s13121_s3 + $0xd0] sm:$0xff]   ;;  %v10599_v17 = vld [vmem:[%s13121_s3 + $0xd8] sm:$0xff]  }
  0x11   : > { %s7985_s27 = sshll.u32 %s13614_s22, 7  ;;  %v10600_v19 = vld [vmem:[%s13121_s3 + $0xe0] sm:$0xff]   ;;  %v10601_v36 = vld [vmem:[%s13121_s3 + $0xe8] sm:$0xff]   ;;  %v10603_v40 = vld [vmem:[%s13121_s3 + $0xf0] sm:$0xff]   ;;  %s7986_s29 = sshll.u32 %s13614_s22, 8 }
  0x12   : > { %s10731_s30 = scalar_lea.vmem %s13118_s0, %s7985_s27  ;;  %v10794_v39 = vld [vmem:[%s13121_s3] sm:$0xff]   ;;  %v10804_v41 = vld [vmem:[%s13121_s3 + $0x8] sm:$0xff]   ;;  %v10605_v42 = vld [vmem:[%s13121_s3 + $0xf8] sm:$0xff]  }
  0x13   : > { %8678 = vmatpush3.bf16.msra.mxu0 %v10557_v1  ;;  %v10564_v4 = vld [vmem:[%s10731_s30] sm:$0xff]   ;;  %v10565_v9 = vld [vmem:[%s10731_s30 + $0x8] sm:$0xff]   ;;  %v10566_v10 = vld [vmem:[%s10731_s30 + $0x10] sm:$0xff]   ;;  %10051 = vmatprep.subr.bf16.mxu1 %v10794_v39 }
  0x14   : > { %8679 = vmatprep.subr.bf16.mxu0 %v10558_v2  ;;  %8691 = vmatprep.mubr.bf16.mxu0 %v10564_v4  ;;  %v10567_v11 = vld [vmem:[%s10731_s30 + $0x18] sm:$0xff]   ;;  %v10568_v12 = vld [vmem:[%s10731_s30 + $0x20] sm:$0xff]   ;;  %v10569_v16 = vld [vmem:[%s10731_s30 + $0x28] sm:$0xff]  }
  0x15   : > { %v10570_v18 = vld [vmem:[%s10731_s30 + $0x30] sm:$0xff]   ;;  %v10571_v20 = vld [vmem:[%s10731_s30 + $0x38] sm:$0xff]   ;;  %v10572_v21 = vld [vmem:[%s10731_s30 + $0x40] sm:$0xff]   ;;  %10059 = vmatpush3.bf16.msra.mxu1 %v10794_v39 }
  0x16   : > { %v10573_v22 = vld [vmem:[%s10731_s30 + $0x48] sm:$0xff]   ;;  %v10574_v23 = vld [vmem:[%s10731_s30 + $0x50] sm:$0xff]   ;;  %v10575_v24 = vld [vmem:[%s10731_s30 + $0x58] sm:$0xff]   ;;  %10052 = vmatprep.subr.bf16.mxu1 %v10804_v41 }
  0x17   : > { %8680 = vmatpush3.bf16.msra.mxu0 %v10558_v2  ;;  %v10576_v25 = vld [vmem:[%s10731_s30 + $0x60] sm:$0xff]   ;;  %v10577_v26 = vld [vmem:[%s10731_s30 + $0x68] sm:$0xff]   ;;  %v10578_v27 = vld [vmem:[%s10731_s30 + $0x70] sm:$0xff]  }
  0x18   : > { %8681 = vmatprep.subr.bf16.mxu0 %v10559_v3  ;;  %v10579_v28 = vld [vmem:[%s10731_s30 + $0x78] sm:$0xff]   ;;  %v10580_v29 = vld [vmem:[%s10731_s30 + $0x80] sm:$0xff]   ;;  %v10581_v30 = vld [vmem:[%s10731_s30 + $0x88] sm:$0xff]  }
  0x19   : > { %v10582_v31 = vld [vmem:[%s10731_s30 + $0x90] sm:$0xff]   ;;  %v10583_v32 = vld [vmem:[%s10731_s30 + $0x98] sm:$0xff]   ;;  %v10584_v33 = vld [vmem:[%s10731_s30 + $0xa0] sm:$0xff]   ;;  %10060 = vmatpush3.bf16.msra.mxu1 %v10804_v41 }
  0x1a   : > { %v10585_v34 = vld [vmem:[%s10731_s30 + $0xa8] sm:$0xff]   ;;  %v10586_v35 = vld [vmem:[%s10731_s30 + $0xb0] sm:$0xff]   ;;  %v10587_v37 = vld [vmem:[%s10731_s30 + $0xb8] sm:$0xff]  }
  0x1b   : > { %8682 = vmatpush3.bf16.msra.mxu0 %v10559_v3  ;;  %v10588_v38 = vld [vmem:[%s10731_s30 + $0xc0] sm:$0xff]   ;;  %v10589_v43 = vld [vmem:[%s10731_s30 + $0xc8] sm:$0xff]   ;;  %v10590_v44 = vld [vmem:[%s10731_s30 + $0xd0] sm:$0xff]  }
  0x1c   : > { %8683 = vmatprep.subr.bf16.mxu0 %v10560_v5  ;;  %v10816_v45 = vld [vmem:[%s13121_s3 + $0x10] sm:$0xff]   ;;  %v10824_v46 = vld [vmem:[%s13121_s3 + $0x18] sm:$0xff]   ;;  %v10592_v48 = vld [vmem:[%s10731_s30 + $0xe0] sm:$0xff]  }
  0x1d   : > { %10053 = vmatprep.subr.bf16.mxu1 %v10816_v45  ;;  %v10591_v47 = vld [vmem:[%s10731_s30 + $0xd8] sm:$0xff]   ;;  %v10833_v49 = vld [vmem:[%s13121_s3 + $0x20] sm:$0xff]   ;;  %v10840_v50 = vld [vmem:[%s13121_s3 + $0x28] sm:$0xff]  }
  0x1e   : > { %10061 = vmatpush3.bf16.msra.mxu1 %v10816_v45  ;;  %v10593_v51 = vld [vmem:[%s10731_s30 + $0xe8] sm:$0xff]   ;;  %v10597_v52 = vld [vmem:[%s10731_s30 + $0xf0] sm:$0xff]   ;;  %v10856_v54 = vld [vmem:[%s13121_s3 + $0x38] sm:$0xff]  }
  0x1f   : > { %8684 = vmatpush3.bf16.msra.mxu0 %v10560_v5  ;;  %10054 = vmatprep.subr.bf16.mxu1 %v10824_v46  ;;  %v10849_v53 = vld [vmem:[%s13121_s3 + $0x30] sm:$0xff]   ;;  %v10598_v55 = vld [vmem:[%s10731_s30 + $0xf8] sm:$0xff]   ;;  %v10864_v56 = vld [vmem:[%s13121_s3 + $0x180] sm:$0xff]   ;;  %s12756_s30 = scalar_lea.vmem %s13123_s5, %s7986_s29 }
  0x20   : > { %8685 = vmatprep.subr.bf16.mxu0 %v10561_v6  ;;  %v10870_v57 = vld [vmem:[%s13120_s2] ss:$0 sm:$0xff] }
  0x22   : > { %10062 = vmatpush3.bf16.msra.mxu1 %v10824_v46 }
  0x23   : > { %8686 = vmatpush3.bf16.msra.mxu0 %v10561_v6  ;;  %10055 = vmatprep.subr.bf16.mxu1 %v10833_v49 }
  0x24   : > { %8687 = vmatprep.subr.bf16.mxu0 %v10562_v7 }
  0x26   : > { %10063 = vmatpush3.bf16.msra.mxu1 %v10833_v49 }
  0x27   : > { %8688 = vmatpush3.bf16.msra.mxu0 %v10562_v7  ;;  %10056 = vmatprep.subr.bf16.mxu1 %v10840_v50 }
  0x28   : > { %8689 = vmatprep.subr.bf16.mxu0 %v10563_v8 }
  0x2a   : > { %10064 = vmatpush3.bf16.msra.mxu1 %v10840_v50 }
  0x2b   : > { %8690 = vmatpush3.bf16.msra.mxu0 %v10563_v8  ;;  %10057 = vmatprep.subr.bf16.mxu1 %v10849_v53 }
  0x2c   : > { %8755 = vmatprep.subr.bf16.mxu0 %v10594_v13 }
  0x2e   : > { %8692 = vmatmul.mubr.bf16.vlgmr.msra.gmra.mrb[0].mxu0 %v10565_v9  ;;  %10065 = vmatpush3.bf16.msra.mxu1 %v10849_v53 }
  0x2f   : > { %8695 = vmatprep.mubr.bf16.mxu0 %v10566_v10  ;;  %8756 = vmatpush3.bf16.msra.mxu0 %v10594_v13 }
  0x30   : > { %8757 = vmatprep.subr.bf16.mxu0 %v10595_v14  ;;  %10058 = vmatprep.subr.bf16.mxu1 %v10856_v54 }
  0x32   : > { %10066 = vmatpush3.bf16.msra.mxu1 %v10856_v54 }
  0x33   : > { %8758 = vmatpush3.bf16.msra.mxu0 %v10595_v14  ;;  %9043 = vmatprep.subr.bf16.mxu1 %v10864_v56 }
  0x34   : > { %8759 = vmatprep.subr.bf16.mxu0 %v10596_v15 }
  0x36   : > { %8696 = vmatmul.mubr.bf16.gmra.mrb[4].mxu0 %v10567_v11 }
  0x37   : > { %8699 = vmatprep.mubr.bf16.mxu0 %v10568_v12  ;;  %8760 = vmatpush3.bf16.msra.mxu0 %v10596_v15 }
  0x38   : > { %8761 = vmatprep.subr.bf16.mxu0 %v10599_v17 }
  0x3b   : > { %8762 = vmatpush3.bf16.msra.mxu0 %v10599_v17 }
  0x3c   : > { %8763 = vmatprep.subr.bf16.mxu0 %v10600_v19 }
  0x3e   : > { %8700 = vmatmul.mubr.bf16.gmra.mrb[8].mxu0 %v10569_v16 }
  0x3f   : > { %8703 = vmatprep.mubr.bf16.mxu0 %v10570_v18  ;;  %8764 = vmatpush3.bf16.msra.mxu0 %v10600_v19 }
  0x40   : > { %8765 = vmatprep.subr.bf16.mxu0 %v10601_v36 }
  0x43   : > { %8766 = vmatpush3.bf16.msra.mxu0 %v10601_v36 }
  0x44   : > { %8767 = vmatprep.subr.bf16.mxu0 %v10603_v40 }
  0x46   : > { %8704 = vmatmul.mubr.bf16.gmra.mrb[12].mxu0 %v10571_v20 }
  0x47   : > { %8707 = vmatprep.mubr.bf16.mxu0 %v10572_v21  ;;  %8768 = vmatpush3.bf16.msra.mxu0 %v10603_v40 }
  0x48   : > { %8769 = vmatprep.subr.bf16.mxu0 %v10605_v42 }
  0x4b   : > { %8770 = vmatpush3.bf16.msra.mxu0 %v10605_v42 }
  0x4c   : > { %8899 = vmatprep.subr.bf16.mxu0 %v10794_v39 }
  0x4e   : > { %8708 = vmatmul.mubr.bf16.gmra.mrb[16].mxu0 %v10573_v22 }
  0x4f   : > { %8711 = vmatprep.mubr.bf16.mxu0 %v10574_v23  ;;  %v13124_v23 = vmov 0  }
  0x56   : > { %8712 = vmatmul.mubr.bf16.gmra.mrb[20].mxu0 %v10575_v24 }
  0x57   : > { %8715 = vmatprep.mubr.bf16.mxu0 %v10576_v25 }
  0x5e   : > { %8716 = vmatmul.mubr.bf16.gmra.mrb[24].mxu0 %v10577_v26 }
  0x5f   : > { %8719 = vmatprep.mubr.bf16.mxu0 %v10578_v27 }
  0x66   : > { %8720 = vmatmul.mubr.bf16.gmra.mrb[28].mxu0 %v10579_v28 }
  0x67   : > { %8723 = vmatprep.mubr.bf16.mxu0 %v10580_v29 }
  0x6e   : > { %8724 = vmatmul.mubr.bf16.gmra.mrb[32].mxu0 %v10581_v30 }
  0x6f   : > { %8727 = vmatprep.mubr.bf16.mxu0 %v10582_v31 }
  0x76   : > { %8728 = vmatmul.mubr.bf16.gmra.mrb[36].mxu0 %v10583_v32 }
  0x77   : > { %8731 = vmatprep.mubr.bf16.mxu0 %v10584_v33 }
  0x7e   : > { %8732 = vmatmul.mubr.bf16.gmra.mrb[40].mxu0 %v10585_v34 }
  0x7f   : > { %8735 = vmatprep.mubr.bf16.mxu0 %v10586_v35 }
  0x86   : > { %8736 = vmatmul.mubr.bf16.gmra.mrb[44].mxu0 %v10587_v37 }
  0x87   : > { %8739 = vmatprep.mubr.bf16.mxu0 %v10588_v38 }
  0x8e   : > { %8740 = vmatmul.mubr.bf16.gmra.mrb[48].mxu0 %v10589_v43 }
  0x8f   : > { %8743 = vmatprep.mubr.bf16.mxu0 %v10590_v44 }
  0x96   : > { %8744 = vmatmul.mubr.bf16.gmra.mrb[52].mxu0 %v10591_v47 }
  0x97   : > { %8747 = vmatprep.mubr.bf16.mxu0 %v10592_v48 }
  0x9e   : > { %8748 = vmatmul.mubr.bf16.gmra.mrb[56].mxu0 %v10593_v51 }
  0x9f   : > { %8751 = vmatprep.mubr.bf16.mxu0 %v10597_v52 }
  0xa6   : > { %8752 = vmatmul.mubr.bf16.gmra.mrb[60].mxu0 %v10598_v55 }
 0x101   : > { %v8693_v58 = vpop.f32.mrb[0].mxu0 }
 0x102   : > { %v646_v59 = vadd.f32 %v8693_v58, %v10870_v57  ;;  %v637_v60 = vpop.f32.mrb[1].mxu0 }
 0x103   : > { %v638_v61 = vadd.f32 %v10870_v57, %v637_v60  ;;  %v8694_v62 = vpop.f32.mrb[2].mxu0 }
 0x104   : > { %v894_v63 = vmul.f32 0.2, %v646_v59  ;;  %v649_v0 = vadd.f32 %v8694_v62, %v10870_v57  ;;  %v640_v1 = vpop.f32.mrb[3].mxu0 }
 0x105   : > { %v892_v2 = vmul.f32 0.2, %v638_v61  ;;  %v641_v3 = vadd.f32 %v10870_v57, %v640_v1 }
 0x106   : > { %v895_v4 = vmul.f32 0.2, %v649_v0  ;;  %v958_v6 = vmax.f32 %v646_v59, %v894_v63 }
 0x107   : > { %v893_v5 = vmul.f32 0.2, %v641_v3  ;;  %v956_v8 = vmax.f32 %v638_v61, %v892_v2 }
 0x108   : > { %v959_v7 = vmax.f32 %v649_v0, %v895_v4 }
 0x109   : > { %v957_v9 = vmax.f32 %v641_v3, %v893_v5  ;;  %v8697_v10 = vpop.f32.mrb[4].mxu0 }
 0x10a   : > { %v10876_v11 = vpack.c.bf16 %v959_v7, %v958_v6  ;;  %v662_v12 = vadd.f32 %v8697_v10, %v10870_v57  ;;  %v653_v13 = vpop.f32.mrb[5].mxu0 }
 0x10b   : > { %v10879_v14 = vpack.c.bf16 %v957_v9, %v956_v8  ;;  %v654_v15 = vadd.f32 %v10870_v57, %v653_v13  ;;  %v8698_v16 = vpop.f32.mrb[6].mxu0 }
 0x10c   : > { %13166 = vst [vmem:[#allocation3_spill] sm:$0xff] %v10876_v11  ;;  %v898_v17 = vmul.f32 0.2, %v662_v12  ;;  %v665_v18 = vadd.f32 %v8698_v16, %v10870_v57  ;;  %v656_v19 = vpop.f32.mrb[7].mxu0 }
 0x10d   : > { %13167 = vst [vmem:[#allocation4_spill] sm:$0xff] %v10879_v14  ;;  %v896_v20 = vmul.f32 0.2, %v654_v15  ;;  %v657_v21 = vadd.f32 %v10870_v57, %v656_v19  ;;  %8771 = vmatprep.mubr.bf16.mxu0 %v10879_v14 }
 0x10e   : > { %v899_v22 = vmul.f32 0.2, %v665_v18  ;;  %8772 = vmatmul.mubr.bf16.vlgmr.msra.gmra.mrb[64].mxu0 %v13124_v23  ;;  %v962_v25 = vmax.f32 %v662_v12, %v898_v17 }
 0x10f   : > { %v897_v24 = vmul.f32 0.2, %v657_v21  ;;  %8775 = vmatprep.mubr.bf16.mxu0 %v10876_v11  ;;  %8900 = vmatpush3.bf16.msra.mxu0 %v10794_v39  ;;  %v960_v27 = vmax.f32 %v654_v15, %v896_v20 }
 0x110   : > { %v963_v26 = vmax.f32 %v665_v18, %v899_v22  ;;  %8901 = vmatprep.subr.bf16.mxu0 %v10804_v41 }
 0x111   : > { %v961_v28 = vmax.f32 %v657_v21, %v897_v24  ;;  %v8701_v29 = vpop.f32.mrb[8].mxu0 }
 0x112   : > { %v10889_v30 = vpack.c.bf16 %v963_v26, %v962_v25  ;;  %v678_v31 = vadd.f32 %v8701_v29, %v10870_v57  ;;  %v669_v32 = vpop.f32.mrb[9].mxu0 }
 0x113   : > { %v10892_v33 = vpack.c.bf16 %v961_v28, %v960_v27  ;;  %v670_v34 = vadd.f32 %v10870_v57, %v669_v32  ;;  %v8702_v35 = vpop.f32.mrb[10].mxu0  ;;  %8902 = vmatpush3.bf16.msra.mxu0 %v10804_v41 }
 0x114   : > { %v902_v36 = vmul.f32 0.2, %v678_v31  ;;  %v681_v37 = vadd.f32 %v8702_v35, %v10870_v57  ;;  %v672_v38 = vpop.f32.mrb[11].mxu0  ;;  %8903 = vmatprep.subr.bf16.mxu0 %v10816_v45 }
 0x115   : > { %v900_v39 = vmul.f32 0.2, %v670_v34  ;;  %v673_v40 = vadd.f32 %v10870_v57, %v672_v38 }
 0x116   : > { %v903_v42 = vmul.f32 0.2, %v681_v37  ;;  %8776 = vmatmul.mubr.bf16.gmra.mrb[68].mxu0 %v13124_v23  ;;  %v966_v44 = vmax.f32 %v678_v31, %v902_v36 }
 0x117   : > { %v901_v43 = vmul.f32 0.2, %v673_v40  ;;  %8779 = vmatprep.mubr.bf16.mxu0 %v10892_v33  ;;  %8904 = vmatpush3.bf16.msra.mxu0 %v10816_v45  ;;  %v964_v41 = vmax.f32 %v670_v34, %v900_v39 }
 0x118   : > { %v967_v47 = vmax.f32 %v681_v37, %v903_v42  ;;  %8905 = vmatprep.subr.bf16.mxu0 %v10824_v46 }
 0x119   : > { %v965_v48 = vmax.f32 %v673_v40, %v901_v43  ;;  %v8705_v51 = vpop.f32.mrb[12].mxu0  ;;  %v10615_v40 = vld [vmem:[%s13121_s3 + $0x198] sm:$0xff]  }
 0x11a   : > { %v10903_v52 = vpack.c.bf16 %v967_v47, %v966_v44  ;;  %v694_v55 = vadd.f32 %v8705_v51, %v10870_v57  ;;  %v685_v58 = vpop.f32.mrb[13].mxu0  ;;  %v10616_v51 = vld [vmem:[%s13121_s3 + $0x1a0] sm:$0xff]  }
 0x11b   : > { %v10906_v59 = vpack.c.bf16 %v965_v48, %v964_v41  ;;  %v686_v60 = vadd.f32 %v10870_v57, %v685_v58  ;;  %v8706_v61 = vpop.f32.mrb[14].mxu0  ;;  %8906 = vmatpush3.bf16.msra.mxu0 %v10824_v46 }
 0x11c   : > { %v906_v45 = vmul.f32 0.2, %v694_v55  ;;  %v697_v62 = vadd.f32 %v8706_v61, %v10870_v57  ;;  %v688_v63 = vpop.f32.mrb[15].mxu0  ;;  %8907 = vmatprep.subr.bf16.mxu0 %v10833_v49 }
 0x11d   : > { %v904_v0 = vmul.f32 0.2, %v686_v60  ;;  %v689_v1 = vadd.f32 %v10870_v57, %v688_v63 }
 0x11e   : > { %v907_v2 = vmul.f32 0.2, %v697_v62  ;;  %8780 = vmatmul.mubr.bf16.gmra.mrb[72].mxu0 %v13124_v23  ;;  %v970_v4 = vmax.f32 %v694_v55, %v906_v45 }
 0x11f   : > { %v905_v3 = vmul.f32 0.2, %v689_v1  ;;  %8783 = vmatprep.mubr.bf16.mxu0 %v10889_v30  ;;  %8908 = vmatpush3.bf16.msra.mxu0 %v10833_v49  ;;  %v968_v46 = vmax.f32 %v686_v60, %v904_v0  ;;  %v10613_v49 = vld [vmem:[%s13121_s3 + $0x188] sm:$0xff]  }
 0x120   : > { %v971_v5 = vmax.f32 %v697_v62, %v907_v2  ;;  %8909 = vmatprep.subr.bf16.mxu0 %v10840_v50 }
 0x121   : > { %v969_v6 = vmax.f32 %v689_v1, %v905_v3  ;;  %v8709_v7 = vpop.f32.mrb[16].mxu0 }
 0x122   : > { %v10917_v8 = vpack.c.bf16 %v971_v5, %v970_v4  ;;  %v710_v9 = vadd.f32 %v8709_v7, %v10870_v57  ;;  %v701_v10 = vpop.f32.mrb[17].mxu0  ;;  %v10617_v4 = vld [vmem:[%s13121_s3 + $0x1a8] sm:$0xff]  }
 0x123   : > { %v10920_v12 = vpack.c.bf16 %v969_v6, %v968_v46  ;;  %v702_v13 = vadd.f32 %v10870_v57, %v701_v10  ;;  %v8710_v15 = vpop.f32.mrb[18].mxu0  ;;  %8910 = vmatpush3.bf16.msra.mxu0 %v10840_v50  ;;  %v10614_v50 = vld [vmem:[%s13121_s3 + $0x190] sm:$0xff]  }
 0x124   : > { %v910_v16 = vmul.f32 0.2, %v710_v9  ;;  %v713_v17 = vadd.f32 %v8710_v15, %v10870_v57  ;;  %v704_v18 = vpop.f32.mrb[19].mxu0  ;;  %8947 = vmatprep.mubr.bf16.mxu1 %v10917_v8  ;;  %8911 = vmatprep.subr.bf16.mxu0 %v10849_v53  ;;  %v10618_v15 = vld [vmem:[%s13121_s3 + $0x1b0] sm:$0xff]  }
 0x125   : > { %v908_v19 = vmul.f32 0.2, %v702_v13  ;;  %v705_v20 = vadd.f32 %v10870_v57, %v704_v18  ;;  %8948 = vmatmul.mubr.bf16.vlgmr.msra.gmra.mrb[0].mxu1 %v13124_v23 }
 0x126   : > { %v911_v21 = vmul.f32 0.2, %v713_v17  ;;  %8784 = vmatmul.mubr.bf16.gmra.mrb[76].mxu0 %v13124_v23  ;;  %9044 = vmatpush3.bf16.msra.mxu1 %v10864_v56  ;;  %v974_v24 = vmax.f32 %v710_v9, %v910_v16 }
 0x127   : > { %v909_v22 = vmul.f32 0.2, %v705_v20  ;;  %8787 = vmatprep.mubr.bf16.mxu0 %v10906_v59  ;;  %9045 = vmatprep.subr.bf16.mxu1 %v10613_v49  ;;  %v972_v26 = vmax.f32 %v702_v13, %v908_v19 }
 0x128   : > { %v975_v25 = vmax.f32 %v713_v17, %v911_v21  ;;  %8912 = vmatpush3.bf16.msra.mxu0 %v10849_v53 }
 0x129   : > { %v973_v27 = vmax.f32 %v705_v20, %v909_v22  ;;  %v8713_v28 = vpop.f32.mrb[20].mxu0  ;;  %8913 = vmatprep.subr.bf16.mxu0 %v10856_v54 }
 0x12a   : > { %v10940_v29 = vpack.c.bf16 %v975_v25, %v974_v24  ;;  %v726_v56 = vadd.f32 %v8713_v28, %v10870_v57  ;;  %v717_v31 = vpop.f32.mrb[21].mxu0  ;;  %9046 = vmatpush3.bf16.msra.mxu1 %v10613_v49 }
 0x12b   : > { %v10943_v32 = vpack.c.bf16 %v973_v27, %v972_v26  ;;  %v718_v34 = vadd.f32 %v10870_v57, %v717_v31  ;;  %v8714_v35 = vpop.f32.mrb[22].mxu0  ;;  %9047 = vmatprep.subr.bf16.mxu1 %v10614_v50 }
 0x12c   : > { %13168 = vst [vmem:[#allocation5_spill] sm:$0xff] %v10940_v29  ;;  %v914_v36 = vmul.f32 0.2, %v726_v56  ;;  %v729_v53 = vadd.f32 %v8714_v35, %v10870_v57  ;;  %v720_v37 = vpop.f32.mrb[23].mxu0  ;;  %8914 = vmatpush3.bf16.msra.mxu0 %v10856_v54 }
 0x12d   : > { %v912_v38 = vmul.f32 0.2, %v718_v34  ;;  %8951 = vmatprep.mubr.bf16.mxu1 %v10943_v32  ;;  %v721_v39 = vadd.f32 %v10870_v57, %v720_v37 }
 0x12e   : > { %v978_v42 = vmax.f32 %v726_v56, %v914_v36  ;;  %v915_v43 = vmul.f32 0.2, %v729_v53  ;;  %8788 = vmatmul.mubr.bf16.gmra.mrb[80].mxu0 %v13124_v23  ;;  %8952 = vmatmul.mubr.bf16.gmra.mrb[4].mxu1 %v13124_v23 }
 0x12f   : > { %v976_v44 = vmax.f32 %v718_v34, %v912_v38  ;;  %v913_v47 = vmul.f32 0.2, %v721_v39  ;;  %8791 = vmatprep.mubr.bf16.mxu0 %v10903_v52  ;;  %8955 = vmatprep.mubr.bf16.mxu1 %v10940_v29 }
 0x130   : > { %v979_v54 = vmax.f32 %v729_v53, %v915_v43  ;;  %9048 = vmatpush3.bf16.msra.mxu1 %v10614_v50 }
 0x131   : > { %v977_v41 = vmax.f32 %v721_v39, %v913_v47  ;;  %v8717_v48 = vpop.f32.mrb[24].mxu0  ;;  %9049 = vmatprep.subr.bf16.mxu1 %v10615_v40 }
 0x132   : > { %v10960_v55 = vpack.c.bf16 %v979_v54, %v978_v42  ;;  %v742_v58 = vadd.f32 %v8717_v48, %v10870_v57  ;;  %v733_v60 = vpop.f32.mrb[25].mxu0 }
 0x133   : > { %v10963_v61 = vpack.c.bf16 %v977_v41, %v976_v44  ;;  %v734_v45 = vadd.f32 %v10870_v57, %v733_v60  ;;  %v8718_v62 = vpop.f32.mrb[26].mxu0  ;;  %v10619_v60 = vld [vmem:[%s13121_s3 + $0x1b8] sm:$0xff]  }
 0x134   : > { %13169 = vst [vmem:[#allocation6_spill] sm:$0xff] %v10960_v55  ;;  %v918_v63 = vmul.f32 0.2, %v742_v58  ;;  %v745_v0 = vadd.f32 %v8718_v62, %v10870_v57  ;;  %v736_v1 = vpop.f32.mrb[27].mxu0  ;;  %9050 = vmatpush3.bf16.msra.mxu1 %v10615_v40 }
 0x135   : > { %13170 = vst [vmem:[#allocation7_spill] sm:$0xff] %v10963_v61  ;;  %v916_v2 = vmul.f32 0.2, %v734_v45  ;;  %v737_v3 = vadd.f32 %v10870_v57, %v736_v1  ;;  %9051 = vmatprep.subr.bf16.mxu1 %v10616_v51 }
 0x136   : > { %8792 = vmatmul.mubr.bf16.gmra.mrb[84].mxu0 %v13124_v23  ;;  %8956 = vmatmul.mubr.bf16.gmra.mrb[8].mxu1 %v13124_v23  ;;  %v982_v5 = vmax.f32 %v742_v58, %v918_v63  ;;  %v919_v46 = vmul.f32 0.2, %v745_v0 }
 0x137   : > { %8795 = vmatprep.mubr.bf16.mxu0 %v10920_v12  ;;  %8959 = vmatprep.mubr.bf16.mxu1 %v10963_v61  ;;  %v980_v6 = vmax.f32 %v734_v45, %v916_v2  ;;  %v917_v7 = vmul.f32 0.2, %v737_v3 }
 0x138   : > { %v983_v9 = vmax.f32 %v745_v0, %v919_v46  ;;  %9052 = vmatpush3.bf16.msra.mxu1 %v10616_v51 }
 0x139   : > { %v981_v10 = vmax.f32 %v737_v3, %v917_v7  ;;  %v8721_v13 = vpop.f32.mrb[28].mxu0  ;;  %9053 = vmatprep.subr.bf16.mxu1 %v10617_v4 }
 0x13a   : > { %v10978_v49 = vpack.c.bf16 %v983_v9, %v982_v5  ;;  %v758_v16 = vadd.f32 %v8721_v13, %v10870_v57  ;;  %v749_v17 = vpop.f32.mrb[29].mxu0 }
 0x13b   : > { %v10981_v18 = vpack.c.bf16 %v981_v10, %v980_v6  ;;  %v750_v19 = vadd.f32 %v10870_v57, %v749_v17  ;;  %v8722_v20 = vpop.f32.mrb[30].mxu0 }
 0x13c   : > { %13171 = vst [vmem:[#allocation8_spill] sm:$0xff] %v10978_v49  ;;  %v922_v21 = vmul.f32 0.2, %v758_v16  ;;  %v761_v22 = vadd.f32 %v8722_v20, %v10870_v57  ;;  %v752_v50 = vpop.f32.mrb[31].mxu0  ;;  %9054 = vmatpush3.bf16.msra.mxu1 %v10617_v4 }
 0x13d   : > { %13172 = vst [vmem:[#allocation9_spill] sm:$0xff] %v10981_v18  ;;  %v920_v24 = vmul.f32 0.2, %v750_v19  ;;  %v753_v25 = vadd.f32 %v10870_v57, %v752_v50  ;;  %9055 = vmatprep.subr.bf16.mxu1 %v10618_v15 }
 0x13e   : > { %8796 = vmatmul.mubr.bf16.gmra.mrb[88].mxu0 %v13124_v23  ;;  %8960 = vmatmul.mubr.bf16.gmra.mrb[12].mxu1 %v13124_v23  ;;  %v986_v26 = vmax.f32 %v758_v16, %v922_v21  ;;  %v923_v27 = vmul.f32 0.2, %v761_v22 }
 0x13f   : > { %8799 = vmatprep.mubr.bf16.mxu0 %v10917_v8  ;;  %8963 = vmatprep.mubr.bf16.mxu1 %v10960_v55  ;;  %v984_v28 = vmax.f32 %v750_v19, %v920_v24  ;;  %v921_v56 = vmul.f32 0.2, %v753_v25 }
 0x140   : > { %v987_v31 = vmax.f32 %v761_v22, %v923_v27  ;;  %9056 = vmatpush3.bf16.msra.mxu1 %v10618_v15 }
 0x141   : > { %v985_v34 = vmax.f32 %v753_v25, %v921_v56  ;;  %v8725_v35 = vpop.f32.mrb[32].mxu0  ;;  %9057 = vmatprep.subr.bf16.mxu1 %v10619_v60 }
 0x142   : > { %v10990_v36 = vpack.c.bf16 %v987_v31, %v986_v26  ;;  %v774_v53 = vadd.f32 %v8725_v35, %v10870_v57  ;;  %v765_v37 = vpop.f32.mrb[33].mxu0 }
 0x143   : > { %v10993_v38 = vpack.c.bf16 %v985_v34, %v984_v28  ;;  %v766_v39 = vadd.f32 %v10870_v57, %v765_v37  ;;  %v8726_v40 = vpop.f32.mrb[34].mxu0 }
 0x144   : > { %13173 = vst [vmem:[#allocation10_spill] sm:$0xff] %v10990_v36  ;;  %v926_v42 = vmul.f32 0.2, %v774_v53  ;;  %v777_v43 = vadd.f32 %v8726_v40, %v10870_v57  ;;  %v768_v44 = vpop.f32.mrb[35].mxu0  ;;  %9058 = vmatpush3.bf16.msra.mxu1 %v10619_v60 }
 0x145   : > { %13174 = vst [vmem:[#allocation11_spill] sm:$0xff] %v10993_v38  ;;  %v924_v47 = vmul.f32 0.2, %v766_v39  ;;  %v769_v54 = vadd.f32 %v10870_v57, %v768_v44 }
 0x146   : > { %8800 = vmatmul.mubr.bf16.gmra.mrb[92].mxu0 %v13124_v23  ;;  %8964 = vmatmul.mubr.bf16.gmra.mrb[16].mxu1 %v13124_v23  ;;  %v990_v41 = vmax.f32 %v774_v53, %v926_v42  ;;  %v927_v48 = vmul.f32 0.2, %v777_v43 }
 0x147   : > { %8803 = vmatprep.mubr.bf16.mxu0 %v10943_v32  ;;  %8967 = vmatprep.mubr.bf16.mxu1 %v10981_v18  ;;  %v988_v51 = vmax.f32 %v766_v39, %v924_v47  ;;  %v925_v58 = vmul.f32 0.2, %v769_v54 }
 0x148   : > { %v991_v45 = vmax.f32 %v777_v43, %v927_v48 }
 0x149   : > { %v989_v62 = vmax.f32 %v769_v54, %v925_v58  ;;  %v8729_v63 = vpop.f32.mrb[36].mxu0 }
 0x14a   : > { %v11005_v0 = vpack.c.bf16 %v991_v45, %v990_v41  ;;  %v790_v1 = vadd.f32 %v8729_v63, %v10870_v57  ;;  %v781_v2 = vpop.f32.mrb[37].mxu0 }
 0x14b   : > { %v11008_v3 = vpack.c.bf16 %v989_v62, %v988_v51  ;;  %v782_v4 = vadd.f32 %v10870_v57, %v781_v2  ;;  %v8730_v5 = vpop.f32.mrb[38].mxu0 }
 0x14c   : > { %13175 = vst [vmem:[#allocation12_spill] sm:$0xff] %v11005_v0  ;;  %v930_v46 = vmul.f32 0.2, %v790_v1  ;;  %v793_v6 = vadd.f32 %v8730_v5, %v10870_v57  ;;  %v784_v7 = vpop.f32.mrb[39].mxu0 }
 0x14d   : > { %13176 = vst [vmem:[#allocation13_spill] sm:$0xff] %v11008_v3  ;;  %v928_v9 = vmul.f32 0.2, %v782_v4  ;;  %v785_v10 = vadd.f32 %v10870_v57, %v784_v7 }
 0x14e   : > { %8804 = vmatmul.mubr.bf16.gmra.mrb[96].mxu0 %v13124_v23  ;;  %8968 = vmatmul.mubr.bf16.gmra.mrb[20].mxu1 %v13124_v23  ;;  %v994_v13 = vmax.f32 %v790_v1, %v930_v46  ;;  %v931_v15 = vmul.f32 0.2, %v793_v6 }
 0x14f   : > { %8807 = vmatprep.mubr.bf16.mxu0 %v10940_v29  ;;  %8971 = vmatprep.mubr.bf16.mxu1 %v10978_v49  ;;  %v992_v16 = vmax.f32 %v782_v4, %v928_v9  ;;  %v929_v17 = vmul.f32 0.2, %v785_v10 }
 0x150   : > { %v995_v19 = vmax.f32 %v793_v6, %v931_v15  ;;  %v11044_v6 = vld [vmem:[%s13121_s3 + $0x140] sm:$0xff]  }
 0x151   : > { %v993_v20 = vmax.f32 %v785_v10, %v929_v17  ;;  %v8733_v21 = vpop.f32.mrb[40].mxu0  ;;  %9619 = vmatprep.subr.bf16.mxu1 %v11044_v6 }
 0x152   : > { %v11017_v22 = vpack.c.bf16 %v995_v19, %v994_v13  ;;  %v806_v50 = vadd.f32 %v8733_v21, %v10870_v57  ;;  %v797_v24 = vpop.f32.mrb[41].mxu0 }
 0x153   : > { %v11020_v25 = vpack.c.bf16 %v993_v20, %v992_v16  ;;  %v798_v26 = vadd.f32 %v10870_v57, %v797_v24  ;;  %v8734_v27 = vpop.f32.mrb[42].mxu0 }
 0x154   : > { %13177 = vst [vmem:[#allocation14_spill] sm:$0xff] %v11017_v22  ;;  %v934_v28 = vmul.f32 0.2, %v806_v50  ;;  %v809_v56 = vadd.f32 %v8734_v27, %v10870_v57  ;;  %v800_v31 = vpop.f32.mrb[43].mxu0 }
 0x155   : > { %13178 = vst [vmem:[#allocation15_spill] sm:$0xff] %v11020_v25  ;;  %v932_v34 = vmul.f32 0.2, %v798_v26  ;;  %v801_v35 = vadd.f32 %v10870_v57, %v800_v31 }
 0x156   : > { %8808 = vmatmul.mubr.bf16.gmra.mrb[100].mxu0 %v13124_v23  ;;  %8972 = vmatmul.mubr.bf16.gmra.mrb[24].mxu1 %v13124_v23  ;;  %v998_v53 = vmax.f32 %v806_v50, %v934_v28  ;;  %v935_v37 = vmul.f32 0.2, %v809_v56 }
 0x157   : > { %8811 = vmatprep.mubr.bf16.mxu0 %v10963_v61  ;;  %8975 = vmatprep.mubr.bf16.mxu1 %v10993_v38  ;;  %v996_v39 = vmax.f32 %v798_v26, %v932_v34  ;;  %v933_v40 = vmul.f32 0.2, %v801_v35 }
 0x158   : > { %v999_v42 = vmax.f32 %v809_v56, %v935_v37 }
 0x159   : > { %v997_v43 = vmax.f32 %v801_v35, %v933_v40  ;;  %v8737_v44 = vpop.f32.mrb[44].mxu0 }
 0x15a   : > { %v11029_v47 = vpack.c.bf16 %v999_v42, %v998_v53  ;;  %v822_v54 = vadd.f32 %v8737_v44, %v10870_v57  ;;  %v813_v41 = vpop.f32.mrb[45].mxu0 }
 0x15b   : > { %v11032_v48 = vpack.c.bf16 %v997_v43, %v996_v39  ;;  %v814_v51 = vadd.f32 %v10870_v57, %v813_v41  ;;  %v8738_v58 = vpop.f32.mrb[46].mxu0 }
 0x15c   : > { %v938_v60 = vmul.f32 0.2, %v822_v54  ;;  %v825_v45 = vadd.f32 %v8738_v58, %v10870_v57  ;;  %v816_v62 = vpop.f32.mrb[47].mxu0 }
 0x15d   : > { %13179 = vst [vmem:[#allocation16_spill] sm:$0xff] %v11032_v48  ;;  %v936_v63 = vmul.f32 0.2, %v814_v51  ;;  %v817_v1 = vadd.f32 %v10870_v57, %v816_v62 }
 0x15e   : > { %8812 = vmatmul.mubr.bf16.gmra.mrb[104].mxu0 %v13124_v23  ;;  %8976 = vmatmul.mubr.bf16.gmra.mrb[28].mxu1 %v13124_v23  ;;  %v1002_v2 = vmax.f32 %v822_v54, %v938_v60  ;;  %v939_v4 = vmul.f32 0.2, %v825_v45 }
 0x15f   : > { %8815 = vmatprep.mubr.bf16.mxu0 %v10960_v55  ;;  %8979 = vmatprep.mubr.bf16.mxu1 %v13124_v23  ;;  %v1000_v5 = vmax.f32 %v814_v51, %v936_v63  ;;  %v937_v46 = vmul.f32 0.2, %v817_v1 }
 0x160   : > { %v1003_v7 = vmax.f32 %v825_v45, %v939_v4 }
 0x161   : > { %v1001_v9 = vmax.f32 %v817_v1, %v937_v46  ;;  %v8741_v10 = vpop.f32.mrb[48].mxu0 }
 0x162   : > { %v11047_v13 = vpack.c.bf16 %v1003_v7, %v1002_v2  ;;  %v838_v15 = vadd.f32 %v8741_v10, %v10870_v57  ;;  %v829_v16 = vpop.f32.mrb[49].mxu0 }
 0x163   : > { %v11050_v17 = vpack.c.bf16 %v1001_v9, %v1000_v5  ;;  %v830_v19 = vadd.f32 %v10870_v57, %v829_v16  ;;  %v8742_v20 = vpop.f32.mrb[50].mxu0 }
 0x164   : > { %v942_v21 = vmul.f32 0.2, %v838_v15  ;;  %v841_v50 = vadd.f32 %v8742_v20, %v10870_v57  ;;  %v832_v24 = vpop.f32.mrb[51].mxu0 }
 0x165   : > { %v940_v26 = vmul.f32 0.2, %v830_v19  ;;  %v833_v27 = vadd.f32 %v10870_v57, %v832_v24 }
 0x166   : > { %8816 = vmatmul.mubr.bf16.gmra.mrb[108].mxu0 %v13124_v23  ;;  %8980 = vmatmul.mubr.bf16.gmra.mrb[32].mxu1 %v13124_v23  ;;  %v1006_v28 = vmax.f32 %v838_v15, %v942_v21  ;;  %v943_v56 = vmul.f32 0.2, %v841_v50 }
 0x167   : > { %8819 = vmatprep.mubr.bf16.mxu0 %v10981_v18  ;;  %8983 = vmatprep.mubr.bf16.mxu1 %v11008_v3  ;;  %v1004_v31 = vmax.f32 %v830_v19, %v940_v26  ;;  %v941_v34 = vmul.f32 0.2, %v833_v27 }
 0x168   : > { %v1007_v35 = vmax.f32 %v841_v50, %v943_v56 }
 0x169   : > { %v1005_v53 = vmax.f32 %v833_v27, %v941_v34  ;;  %v8745_v37 = vpop.f32.mrb[52].mxu0 }
 0x16a   : > { %v11059_v39 = vpack.c.bf16 %v1007_v35, %v1006_v28  ;;  %v854_v40 = vadd.f32 %v8745_v37, %v10870_v57  ;;  %v845_v42 = vpop.f32.mrb[53].mxu0 }
 0x16b   : > { %v11062_v43 = vpack.c.bf16 %v1005_v53, %v1004_v31  ;;  %v846_v44 = vadd.f32 %v10870_v57, %v845_v42  ;;  %v8746_v54 = vpop.f32.mrb[54].mxu0 }
 0x16c   : > { %v946_v41 = vmul.f32 0.2, %v854_v40  ;;  %v857_v51 = vadd.f32 %v8746_v54, %v10870_v57  ;;  %v848_v58 = vpop.f32.mrb[55].mxu0 }
 0x16d   : > { %v944_v60 = vmul.f32 0.2, %v846_v44  ;;  %v849_v45 = vadd.f32 %v10870_v57, %v848_v58 }
 0x16e   : > { %8820 = vmatmul.mubr.bf16.gmra.mrb[112].mxu0 %v13124_v23  ;;  %8984 = vmatmul.mubr.bf16.gmra.mrb[36].mxu1 %v13124_v23  ;;  %v1010_v62 = vmax.f32 %v854_v40, %v946_v41  ;;  %v947_v63 = vmul.f32 0.2, %v857_v51 }
 0x16f   : > { %8823 = vmatprep.mubr.bf16.mxu0 %v10978_v49  ;;  %8987 = vmatprep.mubr.bf16.mxu1 %v11005_v0  ;;  %v1008_v1 = vmax.f32 %v846_v44, %v944_v60  ;;  %v945_v2 = vmul.f32 0.2, %v849_v45 }
 0x170   : > { %v1011_v4 = vmax.f32 %v857_v51, %v947_v63 }
 0x171   : > { %v1009_v5 = vmax.f32 %v849_v45, %v945_v2  ;;  %v8749_v46 = vpop.f32.mrb[56].mxu0 }
 0x172   : > { %v11071_v7 = vpack.c.bf16 %v1011_v4, %v1010_v62  ;;  %v870_v9 = vadd.f32 %v8749_v46, %v10870_v57  ;;  %v861_v10 = vpop.f32.mrb[57].mxu0 }
 0x173   : > { %v11074_v15 = vpack.c.bf16 %v1009_v5, %v1008_v1  ;;  %v862_v16 = vadd.f32 %v10870_v57, %v861_v10  ;;  %v8750_v19 = vpop.f32.mrb[58].mxu0 }
 0x174   : > { %v950_v20 = vmul.f32 0.2, %v870_v9  ;;  %v873_v21 = vadd.f32 %v8750_v19, %v10870_v57  ;;  %v864_v50 = vpop.f32.mrb[59].mxu0  ;;  %v10622_v19 = vld [vmem:[%s13121_s3 + $0x150] sm:$0xff]  }
 0x175   : > { %v948_v24 = vmul.f32 0.2, %v862_v16  ;;  %v865_v26 = vadd.f32 %v10870_v57, %v864_v50  ;;  %v10624_v50 = vld [vmem:[%s13121_s3 + $0x108] sm:$0xff]  }
 0x176   : > { %8824 = vmatmul.mubr.bf16.gmra.mrb[116].mxu0 %v13124_v23  ;;  %8988 = vmatmul.mubr.bf16.gmra.mrb[40].mxu1 %v13124_v23  ;;  %v1014_v27 = vmax.f32 %v870_v9, %v950_v20  ;;  %v951_v28 = vmul.f32 0.2, %v873_v21  ;;  %v10629_v20 = vld [vmem:[%s13121_s3 + $0x158] sm:$0xff]  }
 0x177   : > { %8827 = vmatprep.mubr.bf16.mxu0 %v10993_v38  ;;  %8991 = vmatprep.mubr.bf16.mxu1 %v11020_v25  ;;  %v1012_v56 = vmax.f32 %v862_v16, %v948_v24  ;;  %v949_v31 = vmul.f32 0.2, %v865_v26  ;;  %v10621_v16 = vld [vmem:[%s13121_s3 + $0x148] sm:$0xff]   ;;  %v10625_v24 = vld [vmem:[%s13121_s3 + $0x110] sm:$0xff]  }
 0x178   : > { %v1015_v34 = vmax.f32 %v873_v21, %v951_v28  ;;  %v10633_v21 = vld [vmem:[%s13121_s3 + $0x168] sm:$0xff]  }
 0x179   : > { %v1013_v35 = vmax.f32 %v865_v26, %v949_v31  ;;  %v8753_v53 = vpop.f32.mrb[60].mxu0  ;;  %v10626_v26 = vld [vmem:[%s13121_s3 + $0x118] sm:$0xff]   ;;  %v10628_v28 = vld [vmem:[%s13121_s3 + $0x128] sm:$0xff]   ;;  %v10630_v31 = vld [vmem:[%s13121_s3 + $0x130] sm:$0xff]  }
 0x17a   : > { %v11083_v37 = vpack.c.bf16 %v1015_v34, %v1014_v27  ;;  %v886_v40 = vadd.f32 %v8753_v53, %v10870_v57  ;;  %v877_v42 = vpop.f32.mrb[61].mxu0  ;;  %v10627_v27 = vld [vmem:[%s13121_s3 + $0x120] sm:$0xff]  }
 0x17b   : > { %v11086_v44 = vpack.c.bf16 %v1013_v35, %v1012_v56  ;;  %v878_v54 = vadd.f32 %v10870_v57, %v877_v42  ;;  %v8754_v41 = vpop.f32.mrb[62].mxu0  ;;  %v10634_v56 = vld [vmem:[%s13121_s3 + $0x170] sm:$0xff]   ;;  %v10631_v42 = vld [vmem:[%s13121_s3 + $0x138] sm:$0xff]  }
 0x17c   : > { %13180 = vst [vmem:[#allocation17_spill] sm:$0xff] %v11083_v37  ;;  %v954_v51 = vmul.f32 0.2, %v886_v40  ;;  %v889_v58 = vadd.f32 %v8754_v41, %v10870_v57  ;;  %v880_v60 = vpop.f32.mrb[63].mxu0 }
 0x17d   : > { %13181 = vst [vmem:[#allocation18_spill] sm:$0xff] %v11086_v44  ;;  %v952_v45 = vmul.f32 0.2, %v878_v54  ;;  %v881_v62 = vadd.f32 %v10870_v57, %v880_v60  ;;  %v11122_v57 = vld [vmem:[%s13121_s3 + $0x100] sm:$0xff]  }
 0x17e   : > { %8828 = vmatmul.mubr.bf16.gmra.mrb[120].mxu0 %v13124_v23  ;;  %8992 = vmatmul.mubr.bf16.gmra.mrb[44].mxu1 %v13124_v23  ;;  %v1018_v63 = vmax.f32 %v886_v40, %v954_v51  ;;  %v955_v1 = vmul.f32 0.2, %v889_v58 }
 0x17f   : > { %8831 = vmatprep.mubr.bf16.mxu0 %v10990_v36  ;;  %8995 = vmatprep.mubr.bf16.mxu1 %v11017_v22  ;;  %v1016_v2 = vmax.f32 %v878_v54, %v952_v45  ;;  %v953_v4 = vmul.f32 0.2, %v881_v62 }
 0x180   : > { %v1019_v5 = vmax.f32 %v889_v58, %v955_v1  ;;  %9187 = vmatprep.subr.bf16.mxu0 %v11122_v57 }
 0x181   : > { %v1017_v46 = vmax.f32 %v881_v62, %v953_v4 }
 0x182   : > { %v11095_v9 = vpack.c.bf16 %v1019_v5, %v1018_v63 }
 0x183   : > { %v11097_v10 = vpack.c.bf16 %v1017_v46, %v1016_v2 }
 0x184   : > { %13182 = vst [vmem:[#allocation19_spill] sm:$0xff] %v11095_v9 }
 0x185   : > { %13183 = vst [vmem:[#allocation20_spill] sm:$0xff] %v11097_v10 }
 0x186   : > { %8832 = vmatmul.mubr.bf16.gmra.mrb[124].mxu0 %v13124_v23  ;;  %8996 = vmatmul.mubr.bf16.gmra.mrb[48].mxu1 %v13124_v23 }
 0x187   : > { %8835 = vmatprep.mubr.bf16.mxu0 %v11008_v3  ;;  %8999 = vmatprep.mubr.bf16.mxu1 %v11032_v48 }
 0x18e   : > { %8836 = vmatmul.mubr.bf16.gmra.mrb[128].mxu0 %v13124_v23  ;;  %9000 = vmatmul.mubr.bf16.gmra.mrb[52].mxu1 %v13124_v23 }
 0x18f   : > { %8839 = vmatprep.mubr.bf16.mxu0 %v11005_v0  ;;  %9003 = vmatprep.mubr.bf16.mxu1 %v11029_v47 }
 0x196   : > { %8840 = vmatmul.mubr.bf16.gmra.mrb[132].mxu0 %v13124_v23  ;;  %9004 = vmatmul.mubr.bf16.gmra.mrb[56].mxu1 %v13124_v23 }
 0x197   : > { %8843 = vmatprep.mubr.bf16.mxu0 %v11020_v25  ;;  %9007 = vmatprep.mubr.bf16.mxu1 %v11050_v17 }
 0x19e   : > { %8844 = vmatmul.mubr.bf16.gmra.mrb[136].mxu0 %v13124_v23  ;;  %9008 = vmatmul.mubr.bf16.gmra.mrb[60].mxu1 %v13124_v23 }
 0x19f   : > { %8847 = vmatprep.mubr.bf16.mxu0 %v11017_v22  ;;  %9011 = vmatprep.mubr.bf16.mxu1 %v11047_v13 }
 0x1a6   : > { %8848 = vmatmul.mubr.bf16.gmra.mrb[140].mxu0 %v13124_v23  ;;  %9012 = vmatmul.mubr.bf16.gmra.mrb[64].mxu1 %v13124_v23 }
 0x1a7   : > { %8851 = vmatprep.mubr.bf16.mxu0 %v11032_v48  ;;  %9015 = vmatprep.mubr.bf16.mxu1 %v11062_v43 }
 0x1ae   : > { %8852 = vmatmul.mubr.bf16.gmra.mrb[144].mxu0 %v13124_v23  ;;  %9016 = vmatmul.mubr.bf16.gmra.mrb[68].mxu1 %v13124_v23 }
 0x1af   : > { %8855 = vmatprep.mubr.bf16.mxu0 %v11029_v47  ;;  %9019 = vmatprep.mubr.bf16.mxu1 %v11059_v39 }
 0x1b6   : > { %8856 = vmatmul.mubr.bf16.gmra.mrb[148].mxu0 %v13124_v23  ;;  %9020 = vmatmul.mubr.bf16.gmra.mrb[72].mxu1 %v13124_v23 }
 0x1b7   : > { %8859 = vmatprep.mubr.bf16.mxu0 %v11050_v17  ;;  %9023 = vmatprep.mubr.bf16.mxu1 %v11074_v15 }
 0x1be   : > { %8860 = vmatmul.mubr.bf16.gmra.mrb[152].mxu0 %v13124_v23  ;;  %9024 = vmatmul.mubr.bf16.gmra.mrb[76].mxu1 %v13124_v23 }
 0x1bf   : > { %8863 = vmatprep.mubr.bf16.mxu0 %v11047_v13  ;;  %9027 = vmatprep.mubr.bf16.mxu1 %v11071_v7 }
 0x1c6   : > { %8864 = vmatmul.mubr.bf16.gmra.mrb[156].mxu0 %v13124_v23  ;;  %9028 = vmatmul.mubr.bf16.gmra.mrb[80].mxu1 %v13124_v23 }
 0x1c7   : > { %8867 = vmatprep.mubr.bf16.mxu0 %v11062_v43  ;;  %9031 = vmatprep.mubr.bf16.mxu1 %v11086_v44 }
 0x1ce   : > { %8868 = vmatmul.mubr.bf16.gmra.mrb[160].mxu0 %v13124_v23  ;;  %9032 = vmatmul.mubr.bf16.gmra.mrb[84].mxu1 %v13124_v23 }
 0x1cf   : > { %8871 = vmatprep.mubr.bf16.mxu0 %v11059_v39  ;;  %9035 = vmatprep.mubr.bf16.mxu1 %v11083_v37 }
 0x1d6   : > { %8872 = vmatmul.mubr.bf16.gmra.mrb[164].mxu0 %v13124_v23  ;;  %9036 = vmatmul.mubr.bf16.gmra.mrb[88].mxu1 %v13124_v23 }
 0x1d7   : > { %8875 = vmatprep.mubr.bf16.mxu0 %v11074_v15  ;;  %9039 = vmatprep.mubr.bf16.mxu1 %v11097_v10 }
 0x1de   : > { %8876 = vmatmul.mubr.bf16.gmra.mrb[168].mxu0 %v13124_v23  ;;  %9040 = vmatmul.mubr.bf16.gmra.mrb[92].mxu1 %v13124_v23 }
 0x1df   : > { %8879 = vmatprep.mubr.bf16.mxu0 %v11071_v7  ;;  %9059 = vmatprep.mubr.bf16.mxu1 %v10876_v11 }
 0x1e6   : > { %8880 = vmatmul.mubr.bf16.gmra.mrb[172].mxu0 %v13124_v23  ;;  %9060 = vmatmul.mubr.bf16.vlgmr.msra.gmra.mrb[96].mxu1 %v13124_v23 }
 0x1e7   : > { %9620 = vmatpush3.bf16.msra.mxu1 %v11044_v6  ;;  %8883 = vmatprep.mubr.bf16.mxu0 %v11086_v44  ;;  %v10632_v6 = vld [vmem:[%s13121_s3 + $0x160] sm:$0xff]  }
 0x1e8   : > { %9063 = vmatprep.mubr.bf16.mxu1 %v10892_v33  ;;  %9621 = vmatprep.subr.bf16.mxu1 %v10621_v16 }
 0x1eb   : > { %9622 = vmatpush3.bf16.msra.mxu1 %v10621_v16 }
 0x1ec   : > { %9623 = vmatprep.subr.bf16.mxu1 %v10622_v19 }
 0x1ee   : > { %8884 = vmatmul.mubr.bf16.gmra.mrb[176].mxu0 %v13124_v23  ;;  %9064 = vmatmul.mubr.bf16.gmra.mrb[100].mxu1 %v13124_v23 }
 0x1ef   : > { %8887 = vmatprep.mubr.bf16.mxu0 %v11083_v37  ;;  %9067 = vmatprep.mubr.bf16.mxu1 %v10889_v30 }
 0x1f0   : > { %9624 = vmatpush3.bf16.msra.mxu1 %v10622_v19 }
 0x1f1   : > { %9625 = vmatprep.subr.bf16.mxu1 %v10629_v20 }
 0x1f4   : > { %9626 = vmatpush3.bf16.msra.mxu1 %v10629_v20  ;;  %v10635_v20 = vld [vmem:[%s13121_s3 + $0x178] sm:$0xff]  }
 0x1f5   : > { %9627 = vmatprep.subr.bf16.mxu1 %v10632_v6 }
 0x1f6   : > { %8888 = vmatmul.mubr.bf16.gmra.mrb[180].mxu0 %v13124_v23  ;;  %9068 = vmatmul.mubr.bf16.gmra.mrb[104].mxu1 %v13124_v23 }
 0x1f7   : > { %8891 = vmatprep.mubr.bf16.mxu0 %v11097_v10  ;;  %9071 = vmatprep.mubr.bf16.mxu1 %v10906_v59 }
 0x1f8   : > { %9628 = vmatpush3.bf16.msra.mxu1 %v10632_v6 }
 0x1f9   : > { %9629 = vmatprep.subr.bf16.mxu1 %v10633_v21 }
 0x1fc   : > { %9630 = vmatpush3.bf16.msra.mxu1 %v10633_v21 }
 0x1fd   : > { %9631 = vmatprep.subr.bf16.mxu1 %v10634_v56 }
 0x1fe   : > { %8892 = vmatmul.mubr.bf16.gmra.mrb[184].mxu0 %v13124_v23  ;;  %9072 = vmatmul.mubr.bf16.gmra.mrb[108].mxu1 %v13124_v23 }
 0x1ff   : > { %8895 = vmatprep.mubr.bf16.mxu0 %v11095_v9  ;;  %9075 = vmatprep.mubr.bf16.mxu1 %v10903_v52 }
 0x200   : > { %9632 = vmatpush3.bf16.msra.mxu1 %v10634_v56 }
 0x201   : > { %9633 = vmatprep.subr.bf16.mxu1 %v10635_v20 }
 0x204   : > { %9634 = vmatpush3.bf16.msra.mxu1 %v10635_v20 }
 0x206   : > { %8896 = vmatmul.mubr.bf16.gmra.mrb[188].mxu0 %v13124_v23  ;;  %9076 = vmatmul.mubr.bf16.gmra.mrb[112].mxu1 %v13124_v23 }
 0x207   : > { %9079 = vmatprep.mubr.bf16.mxu1 %v10920_v12  ;;  %8915 = vmatprep.mubr.bf16.mxu0 %v13124_v23 }
 0x20e   : > { %8916 = vmatmul.mubr.bf16.vlgmr.msra.gmra.mrb[64].mxu0 %v13124_v23  ;;  %9080 = vmatmul.mubr.bf16.gmra.mrb[116].mxu1 %v13124_v23 }
 0x20f   : > { %8919 = vmatprep.mubr.bf16.mxu0 %v10879_v14  ;;  %9083 = vmatprep.mubr.bf16.mxu1 %v10917_v8 }
 0x210   : > { %9188 = vmatpush3.bf16.msra.mxu0 %v11122_v57 }
 0x211   : > { %9189 = vmatprep.subr.bf16.mxu0 %v10624_v50 }
 0x214   : > { %9190 = vmatpush3.bf16.msra.mxu0 %v10624_v50 }
 0x215   : > { %9191 = vmatprep.subr.bf16.mxu0 %v10625_v24 }
 0x216   : > { %8920 = vmatmul.mubr.bf16.gmra.mrb[68].mxu0 %v13124_v23  ;;  %9084 = vmatmul.mubr.bf16.gmra.mrb[120].mxu1 %v13124_v23 }
 0x217   : > { %8923 = vmatprep.mubr.bf16.mxu0 %v10876_v11  ;;  %9087 = vmatprep.mubr.bf16.mxu1 %v10943_v32 }
 0x218   : > { %9192 = vmatpush3.bf16.msra.mxu0 %v10625_v24 }
 0x219   : > { %9193 = vmatprep.subr.bf16.mxu0 %v10626_v26 }
 0x21c   : > { %9194 = vmatpush3.bf16.msra.mxu0 %v10626_v26 }
 0x21d   : > { %9195 = vmatprep.subr.bf16.mxu0 %v10627_v27 }
 0x21e   : > { %8924 = vmatmul.mubr.bf16.gmra.mrb[72].mxu0 %v13124_v23  ;;  %9088 = vmatmul.mubr.bf16.gmra.mrb[124].mxu1 %v13124_v23 }
 0x21f   : > { %8927 = vmatprep.mubr.bf16.mxu0 %v10892_v33  ;;  %9091 = vmatprep.mubr.bf16.mxu1 %v10940_v29 }
 0x220   : > { %9196 = vmatpush3.bf16.msra.mxu0 %v10627_v27 }
 0x221   : > { %9197 = vmatprep.subr.bf16.mxu0 %v10628_v28  ;;  %v8805_v34 = vpop.f32.mrb[96].mxu0 }
 0x222   : > { %v11223_v35 = vpop.f32.mrb[97].mxu0 }
 0x223   : > { %v11225_v53 = vpop.f32.mrb[98].mxu0 }
 0x224   : > { %9198 = vmatpush3.bf16.msra.mxu0 %v10628_v28  ;;  %v11227_v40 = vpop.f32.mrb[99].mxu0 }
 0x225   : > { %9199 = vmatprep.subr.bf16.mxu0 %v10630_v31 }
 0x226   : > { %8928 = vmatmul.mubr.bf16.gmra.mrb[76].mxu0 %v13124_v23  ;;  %9092 = vmatmul.mubr.bf16.gmra.mrb[0].mxu1 %v13124_v23 }
 0x227   : > { %8931 = vmatprep.mubr.bf16.mxu0 %v10889_v30  ;;  %9095 = vmatprep.mubr.bf16.mxu1 %v10963_v61 }
 0x228   : > { %9200 = vmatpush3.bf16.msra.mxu0 %v10630_v31 }
 0x229   : > { %9201 = vmatprep.subr.bf16.mxu0 %v10631_v42  ;;  %v8809_v54 = vpop.f32.mrb[100].mxu0 }
 0x22a   : > { %v11236_v41 = vpop.f32.mrb[101].mxu0 }
 0x22b   : > { %v11238_v51 = vpop.f32.mrb[102].mxu0 }
 0x22c   : > { %9202 = vmatpush3.bf16.msra.mxu0 %v10631_v42  ;;  %v11240_v58 = vpop.f32.mrb[103].mxu0 }
 0x22e   : > { %8932 = vmatmul.mubr.bf16.gmra.mrb[80].mxu0 %v13124_v23  ;;  %9096 = vmatmul.mubr.bf16.gmra.mrb[4].mxu1 %v13124_v23 }
 0x22f   : > { %8935 = vmatprep.mubr.bf16.mxu0 %v10906_v59  ;;  %9099 = vmatprep.mubr.bf16.mxu1 %v10960_v55 }
 0x231   : > { %v8813_v60 = vpop.f32.mrb[104].mxu0 }
 0x232   : > { %v11246_v45 = vpop.f32.mrb[105].mxu0 }
 0x233   : > { %v11248_v62 = vpop.f32.mrb[106].mxu0 }
 0x234   : > { %v11250_v63 = vpop.f32.mrb[107].mxu0 }
 0x236   : > { %8936 = vmatmul.mubr.bf16.gmra.mrb[84].mxu0 %v13124_v23  ;;  %9100 = vmatmul.mubr.bf16.gmra.mrb[8].mxu1 %v13124_v23 }
 0x237   : > { %8939 = vmatprep.mubr.bf16.mxu0 %v10903_v52  ;;  %9103 = vmatprep.mubr.bf16.mxu1 %v10981_v18 }
 0x239   : > { %v8817_v1 = vpop.f32.mrb[108].mxu0 }
 0x23a   : > { %v11256_v2 = vpop.f32.mrb[109].mxu0 }
 0x23b   : > { %v11258_v4 = vpop.f32.mrb[110].mxu0 }
 0x23c   : > { %v11260_v5 = vpop.f32.mrb[111].mxu0 }
 0x23e   : > { %8940 = vmatmul.mubr.bf16.gmra.mrb[88].mxu0 %v13124_v23  ;;  %9104 = vmatmul.mubr.bf16.gmra.mrb[12].mxu1 %v13124_v23 }
 0x23f   : > { %8943 = vmatprep.mubr.bf16.mxu0 %v10920_v12  ;;  %9107 = vmatprep.mubr.bf16.mxu1 %v10978_v49 }
 0x241   : > { %v8821_v46 = vpop.f32.mrb[112].mxu0 }
 0x242   : > { %v11266_v57 = vpop.f32.mrb[113].mxu0 }
 0x243   : > { %v11268_v16 = vpop.f32.mrb[114].mxu0 }
 0x244   : > { %v11270_v19 = vpop.f32.mrb[115].mxu0 }
 0x246   : > { %8944 = vmatmul.mubr.bf16.gmra.mrb[92].mxu0 %v13124_v23  ;;  %9108 = vmatmul.mubr.bf16.gmra.mrb[16].mxu1 %v13124_v23 }
 0x247   : > { %9111 = vmatprep.mubr.bf16.mxu1 %v10993_v38  ;;  %9203 = vmatprep.mubr.bf16.mxu0 %v10879_v14 }
 0x249   : > { %v8825_v6 = vpop.f32.mrb[116].mxu0 }
 0x24a   : > { %v11279_v21 = vpop.f32.mrb[117].mxu0  ;;  %v10636_v6 = vld [vmem:[%s13121_s3 + $0x40] sm:$0xff]  }
 0x24b   : > { %v11281_v50 = vpop.f32.mrb[118].mxu0  ;;  %9331 = vmatprep.subr.bf16.mxu0 %v10636_v6 }
 0x24c   : > { %v11283_v24 = vpop.f32.mrb[119].mxu0 }
 0x24d   : > { %13184 = vst [vmem:[#allocation21_spill] sm:$0xff] %v11283_v24 }
 0x24e   : > { %9112 = vmatmul.mubr.bf16.gmra.mrb[20].mxu1 %v13124_v23  ;;  %9204 = vmatmul.mubr.bf16.vlgmr.msra.gmra.mrb[192].mxu0 %v13124_v23 }
 0x24f   : > { %9115 = vmatprep.mubr.bf16.mxu1 %v10990_v36  ;;  %9207 = vmatprep.mubr.bf16.mxu0 %v10876_v11 }
 0x250   : > { %9332 = vmatpush3.bf16.msra.mxu0 %v10636_v6 }
 0x251   : > { %v8829_v26 = vpop.f32.mrb[120].mxu0 }
 0x252   : > { %v11289_v27 = vpop.f32.mrb[121].mxu0  ;;  %v11325_v26 = vld [vmem:[%s13121_s3 + $0x80] sm:$0xff]  }
 0x253   : > { %13185 = vst [vmem:[#allocation22_spill] sm:$0xff] %v11289_v27  ;;  %v11291_v28 = vpop.f32.mrb[122].mxu0  ;;  %9763 = vmatprep.subr.bf16.mxu1 %v11325_v26 }
 0x254   : > { %13186 = vst [vmem:[#allocation23_spill] sm:$0xff] %v11291_v28  ;;  %v11293_v56 = vpop.f32.mrb[123].mxu0 }
 0x255   : > { %13187 = vst [vmem:[#allocation24_spill] sm:$0xff] %v11293_v56 }
 0x256   : > { %9116 = vmatmul.mubr.bf16.gmra.mrb[24].mxu1 %v13124_v23  ;;  %9208 = vmatmul.mubr.bf16.gmra.mrb[196].mxu0 %v13124_v23 }
 0x257   : > { %9211 = vmatprep.mubr.bf16.mxu0 %v10892_v33  ;;  %9119 = vmatprep.mubr.bf16.mxu1 %v13124_v23 }
 0x259   : > { %v8833_v31 = vpop.f32.mrb[124].mxu0 }
 0x25a   : > { %v11299_v34 = vpop.f32.mrb[125].mxu0 }
 0x25b   : > { %13188 = vst [vmem:[#allocation25_spill] sm:$0xff] %v11299_v34  ;;  %v11301_v42 = vpop.f32.mrb[126].mxu0 }
 0x25c   : > { %13189 = vst [vmem:[#allocation26_spill] sm:$0xff] %v11301_v42  ;;  %v11303_v54 = vpop.f32.mrb[127].mxu0 }
 0x25d   : > { %13190 = vst [vmem:[#allocation27_spill] sm:$0xff] %v11303_v54 }
 0x25e   : > { %9120 = vmatmul.mubr.bf16.gmra.mrb[28].mxu1 %v13124_v23  ;;  %9212 = vmatmul.mubr.bf16.gmra.mrb[200].mxu0 %v13124_v23 }
 0x25f   : > { %9123 = vmatprep.mubr.bf16.mxu1 %v11005_v0  ;;  %9215 = vmatprep.mubr.bf16.mxu0 %v10889_v30 }
 0x261   : > { %v8837_v60 = vpop.f32.mrb[128].mxu0 }
 0x262   : > { %v11309_v1 = vpop.f32.mrb[129].mxu0 }
 0x263   : > { %13191 = vst [vmem:[#allocation28_spill] sm:$0xff] %v11309_v1  ;;  %v11311_v46 = vpop.f32.mrb[130].mxu0 }
 0x264   : > { %13192 = vst [vmem:[#allocation29_spill] sm:$0xff] %v11311_v46  ;;  %v11313_v20 = vpop.f32.mrb[131].mxu0  ;;  %v13197_v46 = vmov 0  }
 0x265   : > { %13193 = vst [vmem:[#allocation30_spill] sm:$0xff] %v11313_v20 }
 0x266   : > { %9124 = vmatmul.mubr.bf16.gmra.mrb[32].mxu1 %v13124_v23  ;;  %9216 = vmatmul.mubr.bf16.gmra.mrb[204].mxu0 %v13124_v23 }
 0x267   : > { %9127 = vmatprep.mubr.bf16.mxu1 %v11020_v25  ;;  %9219 = vmatprep.mubr.bf16.mxu0 %v10906_v59 }
 0x269   : > { %v8841_v31 = vpop.f32.mrb[132].mxu0 }
 0x26a   : > { %v11328_v60 = vpop.f32.mrb[133].mxu0 }
 0x26b   : > { %13194 = vst [vmem:[#allocation31_spill] sm:$0xff] %v11328_v60  ;;  %v11330_v23 = vpop.f32.mrb[134].mxu0 }
 0x26c   : > { %13195 = vst [vmem:[#allocation32_spill] sm:$0xff] %v11330_v23  ;;  %v11332_v20 = vpop.f32.mrb[135].mxu0 }
 0x26d   : > { %13196 = vst [vmem:[#allocation33_spill] sm:$0xff] %v11332_v20 }
 0x26e   : > { %9128 = vmatmul.mubr.bf16.gmra.mrb[36].mxu1 %v13197_v46  ;;  %9220 = vmatmul.mubr.bf16.gmra.mrb[208].mxu0 %v13197_v46 }
 0x26f   : > { %9131 = vmatprep.mubr.bf16.mxu1 %v11017_v22  ;;  %9223 = vmatprep.mubr.bf16.mxu0 %v10903_v52 }
 0x271   : > { %v8845_v1 = vpop.f32.mrb[136].mxu0 }
 0x272   : > { %v11338_v31 = vpop.f32.mrb[137].mxu0 }
 0x273   : > { %13198 = vst [vmem:[#allocation34_spill] sm:$0xff] %v11338_v31  ;;  %v11340_v54 = vpop.f32.mrb[138].mxu0 }
 0x274   : > { %13199 = vst [vmem:[#allocation35_spill] sm:$0xff] %v11340_v54  ;;  %v11342_v42 = vpop.f32.mrb[139].mxu0 }
 0x275   : > { %13200 = vst [vmem:[#allocation36_spill] sm:$0xff] %v11342_v42 }
 0x276   : > { %9132 = vmatmul.mubr.bf16.gmra.mrb[40].mxu1 %v13197_v46  ;;  %9224 = vmatmul.mubr.bf16.gmra.mrb[212].mxu0 %v13197_v46 }
 0x277   : > { %9135 = vmatprep.mubr.bf16.mxu1 %v11032_v48  ;;  %9227 = vmatprep.mubr.bf16.mxu0 %v10920_v12 }
 0x279   : > { %v8849_v6 = vpop.f32.mrb[140].mxu0 }
 0x27a   : > { %v11348_v20 = vpop.f32.mrb[141].mxu0 }
 0x27b   : > { %13201 = vst [vmem:[#allocation37_spill] sm:$0xff] %v11348_v20  ;;  %v11350_v23 = vpop.f32.mrb[142].mxu0 }
 0x27c   : > { %13202 = vst [vmem:[#allocation38_spill] sm:$0xff] %v11350_v23  ;;  %v11352_v1 = vpop.f32.mrb[143].mxu0 }
 0x27d   : > { %13203 = vst [vmem:[#allocation39_spill] sm:$0xff] %v11352_v1  ;;  %v10638_v1 = vld [vmem:[%s13121_s3 + $0x48] sm:$0xff]  }
 0x27e   : > { %9136 = vmatmul.mubr.bf16.gmra.mrb[44].mxu1 %v13197_v46  ;;  %9228 = vmatmul.mubr.bf16.gmra.mrb[216].mxu0 %v13197_v46 }
 0x27f   : > { %9139 = vmatprep.mubr.bf16.mxu1 %v11029_v47  ;;  %9231 = vmatprep.mubr.bf16.mxu0 %v10917_v8 }
 0x280   : > { %9333 = vmatprep.subr.bf16.mxu0 %v10638_v1 }
 0x281   : > { %v8853_v42 = vpop.f32.mrb[144].mxu0  ;;  %9334 = vmatpush3.bf16.msra.mxu0 %v10638_v1 }
 0x282   : > { %v11358_v54 = vpop.f32.mrb[145].mxu0 }
 0x283   : > { %13204 = vst [vmem:[#allocation40_spill] sm:$0xff] %v11358_v54  ;;  %v11360_v31 = vpop.f32.mrb[146].mxu0 }
 0x284   : > { %13205 = vst [vmem:[#allocation41_spill] sm:$0xff] %v11360_v31  ;;  %v11362_v6 = vpop.f32.mrb[147].mxu0 }
 0x285   : > { %13206 = vst [vmem:[#allocation42_spill] sm:$0xff] %v11362_v6 }
 0x286   : > { %9140 = vmatmul.mubr.bf16.gmra.mrb[48].mxu1 %v13197_v46  ;;  %9232 = vmatmul.mubr.bf16.gmra.mrb[220].mxu0 %v13197_v46 }
 0x287   : > { %9143 = vmatprep.mubr.bf16.mxu1 %v11050_v17  ;;  %9235 = vmatprep.mubr.bf16.mxu0 %v10943_v32 }
 0x289   : > { %v8857_v23 = vpop.f32.mrb[148].mxu0 }
 0x28a   : > { %v11371_v42 = vpop.f32.mrb[149].mxu0 }
 0x28b   : > { %13207 = vst [vmem:[#allocation43_spill] sm:$0xff] %v11371_v42  ;;  %v11373_v31 = vpop.f32.mrb[150].mxu0 }
 0x28c   : > { %13208 = vst [vmem:[#allocation44_spill] sm:$0xff] %v11373_v31  ;;  %v11375_v6 = vpop.f32.mrb[151].mxu0 }
 0x28d   : > { %13209 = vst [vmem:[#allocation45_spill] sm:$0xff] %v11375_v6 }
 0x28e   : > { %9144 = vmatmul.mubr.bf16.gmra.mrb[52].mxu1 %v13197_v46  ;;  %9236 = vmatmul.mubr.bf16.gmra.mrb[224].mxu0 %v13197_v46 }
 0x28f   : > { %9147 = vmatprep.mubr.bf16.mxu1 %v11047_v13  ;;  %9239 = vmatprep.mubr.bf16.mxu0 %v10940_v29 }
 0x291   : > { %v8861_v54 = vpop.f32.mrb[152].mxu0 }
 0x292   : > { %v11381_v20 = vpop.f32.mrb[153].mxu0 }
 0x293   : > { %13210 = vst [vmem:[#allocation46_spill] sm:$0xff] %v11381_v20  ;;  %v11383_v23 = vpop.f32.mrb[154].mxu0 }
 0x294   : > { %13211 = vst [vmem:[#allocation47_spill] sm:$0xff] %v11383_v23  ;;  %v11385_v60 = vpop.f32.mrb[155].mxu0 }
 0x295   : > { %13212 = vst [vmem:[#allocation48_spill] sm:$0xff] %v11385_v60 }
 0x296   : > { %9148 = vmatmul.mubr.bf16.gmra.mrb[56].mxu1 %v13197_v46  ;;  %9240 = vmatmul.mubr.bf16.gmra.mrb[228].mxu0 %v13197_v46 }
 0x297   : > { %9151 = vmatprep.mubr.bf16.mxu1 %v11062_v43  ;;  %9243 = vmatprep.mubr.bf16.mxu0 %v10963_v61 }
 0x299   : > { %v8865_v1 = vpop.f32.mrb[156].mxu0 }
 0x29a   : > { %v11391_v6 = vpop.f32.mrb[157].mxu0 }
 0x29b   : > { %13213 = vst [vmem:[#allocation49_spill] sm:$0xff] %v11391_v6  ;;  %v11393_v31 = vpop.f32.mrb[158].mxu0 }
 0x29c   : > { %13214 = vst [vmem:[#allocation50_spill] sm:$0xff] %v11393_v31  ;;  %v11395_v54 = vpop.f32.mrb[159].mxu0 }
 0x29d   : > { %13215 = vst [vmem:[#allocation51_spill] sm:$0xff] %v11395_v54  ;;  %v10640_v54 = vld [vmem:[%s13121_s3 + $0x50] sm:$0xff]  }
 0x29e   : > { %9152 = vmatmul.mubr.bf16.gmra.mrb[60].mxu1 %v13197_v46  ;;  %9244 = vmatmul.mubr.bf16.gmra.mrb[232].mxu0 %v13197_v46 }
 0x29f   : > { %9155 = vmatprep.mubr.bf16.mxu1 %v11059_v39  ;;  %9247 = vmatprep.mubr.bf16.mxu0 %v10960_v55 }
 0x2a0   : > { %9335 = vmatprep.subr.bf16.mxu0 %v10640_v54 }
 0x2a1   : > { %v8869_v60 = vpop.f32.mrb[160].mxu0  ;;  %9336 = vmatpush3.bf16.msra.mxu0 %v10640_v54 }
 0x2a2   : > { %v11401_v23 = vpop.f32.mrb[161].mxu0 }
 0x2a3   : > { %13216 = vst [vmem:[#allocation52_spill] sm:$0xff] %v11401_v23  ;;  %v11403_v20 = vpop.f32.mrb[162].mxu0 }
 0x2a4   : > { %13217 = vst [vmem:[#allocation53_spill] sm:$0xff] %v11403_v20  ;;  %v11405_v1 = vpop.f32.mrb[163].mxu0 }
 0x2a5   : > { %13218 = vst [vmem:[#allocation54_spill] sm:$0xff] %v11405_v1 }
 0x2a6   : > { %9156 = vmatmul.mubr.bf16.gmra.mrb[64].mxu1 %v13197_v46  ;;  %9248 = vmatmul.mubr.bf16.gmra.mrb[236].mxu0 %v13197_v46 }
 0x2a7   : > { %9159 = vmatprep.mubr.bf16.mxu1 %v11074_v15  ;;  %9251 = vmatprep.mubr.bf16.mxu0 %v10981_v18 }
 0x2a9   : > { %v8873_v31 = vpop.f32.mrb[164].mxu0 }
 0x2aa   : > { %v11414_v60 = vpop.f32.mrb[165].mxu0 }
 0x2ab   : > { %13219 = vst [vmem:[#allocation55_spill] sm:$0xff] %v11414_v60  ;;  %v11416_v20 = vpop.f32.mrb[166].mxu0 }
 0x2ac   : > { %13220 = vst [vmem:[#allocation56_spill] sm:$0xff] %v11416_v20  ;;  %v11418_v1 = vpop.f32.mrb[167].mxu0 }
 0x2ad   : > { %13221 = vst [vmem:[#allocation57_spill] sm:$0xff] %v11418_v1 }
 0x2ae   : > { %9160 = vmatmul.mubr.bf16.gmra.mrb[68].mxu1 %v13197_v46  ;;  %9252 = vmatmul.mubr.bf16.gmra.mrb[240].mxu0 %v13197_v46 }
 0x2af   : > { %9163 = vmatprep.mubr.bf16.mxu1 %v11071_v7  ;;  %9255 = vmatprep.mubr.bf16.mxu0 %v10978_v49 }
 0x2b1   : > { %v8877_v23 = vpop.f32.mrb[168].mxu0 }
 0x2b2   : > { %v11424_v6 = vpop.f32.mrb[169].mxu0  ;;  %v10642_v23 = vld [vmem:[%s13121_s3 + $0x58] sm:$0xff]  }
 0x2b3   : > { %13222 = vst [vmem:[#allocation58_spill] sm:$0xff] %v11424_v6  ;;  %v11426_v31 = vpop.f32.mrb[170].mxu0  ;;  %9337 = vmatprep.subr.bf16.mxu0 %v10642_v23 }
 0x2b4   : > { %13223 = vst [vmem:[#allocation59_spill] sm:$0xff] %v11426_v31  ;;  %v11428_v42 = vpop.f32.mrb[171].mxu0  ;;  %9338 = vmatpush3.bf16.msra.mxu0 %v10642_v23  ;;  %v10644_v23 = vld [vmem:[%s13121_s3 + $0x68] sm:$0xff]  }
 0x2b5   : > { %13224 = vst [vmem:[#allocation60_spill] sm:$0xff] %v11428_v42 }
 0x2b6   : > { %9164 = vmatmul.mubr.bf16.gmra.mrb[72].mxu1 %v13197_v46  ;;  %9256 = vmatmul.mubr.bf16.gmra.mrb[244].mxu0 %v13197_v46 }
 0x2b7   : > { %9167 = vmatprep.mubr.bf16.mxu1 %v11086_v44  ;;  %9259 = vmatprep.mubr.bf16.mxu0 %v10993_v38 }
 0x2b9   : > { %v9061_v54 = vpop.f32.mrb[96].mxu1  ;;  %v8881_v1 = vpop.f32.mrb[172].mxu0 }
 0x2ba   : > { %v11437_v20 = vpop.f32.mrb[97].mxu1  ;;  %v11439_v6 = vpop.f32.mrb[173].mxu0  ;;  %v10643_v1 = vld [vmem:[%s13121_s3 + $0x60] sm:$0xff]  }
 0x2bb   : > { %13225 = vst [vmem:[#allocation61_spill] sm:$0xff] %v11439_v6  ;;  %v11441_v31 = vpop.f32.mrb[98].mxu1  ;;  %v11443_v42 = vpop.f32.mrb[174].mxu0  ;;  %9339 = vmatprep.subr.bf16.mxu0 %v10643_v1 }
 0x2bc   : > { %13226 = vst [vmem:[#allocation62_spill] sm:$0xff] %v11443_v42  ;;  %v11445_v60 = vpop.f32.mrb[99].mxu1  ;;  %v11447_v49 = vpop.f32.mrb[175].mxu0  ;;  %9340 = vmatpush3.bf16.msra.mxu0 %v10643_v1 }
 0x2bd   : > { %13227 = vst [vmem:[#allocation63_spill] sm:$0xff] %v11447_v49  ;;  %9341 = vmatprep.subr.bf16.mxu0 %v10644_v23 }
 0x2be   : > { %9168 = vmatmul.mubr.bf16.gmra.mrb[76].mxu1 %v13197_v46  ;;  %9260 = vmatmul.mubr.bf16.gmra.mrb[248].mxu0 %v13197_v46 }
 0x2bf   : > { %9171 = vmatprep.mubr.bf16.mxu1 %v11083_v37  ;;  %9263 = vmatprep.mubr.bf16.mxu0 %v10990_v36 }
 0x2c0   : > { %9342 = vmatpush3.bf16.msra.mxu0 %v10644_v23  ;;  %v10647_v23 = vld [vmem:[%s13121_s3 + $0x78] sm:$0xff]  }
 0x2c1   : > { %v9065_v54 = vpop.f32.mrb[100].mxu1  ;;  %v8885_v42 = vpop.f32.mrb[176].mxu0 }
 0x2c2   : > { %v11459_v49 = vpop.f32.mrb[101].mxu1  ;;  %v11461_v6 = vpop.f32.mrb[177].mxu0  ;;  %v10646_v42 = vld [vmem:[%s13121_s3 + $0x70] sm:$0xff]  }
 0x2c3   : > { %13228 = vst [vmem:[#allocation64_spill] sm:$0xff] %v11461_v6  ;;  %v11463_v38 = vpop.f32.mrb[102].mxu1  ;;  %v11465_v18 = vpop.f32.mrb[178].mxu0  ;;  %9343 = vmatprep.subr.bf16.mxu0 %v10646_v42 }
 0x2c4   : > { %13229 = vst [vmem:[#allocation65_spill] sm:$0xff] %v11465_v18  ;;  %v11467_v55 = vpop.f32.mrb[103].mxu1  ;;  %v11469_v36 = vpop.f32.mrb[179].mxu0  ;;  %9344 = vmatpush3.bf16.msra.mxu0 %v10646_v42 }
 0x2c5   : > { %13230 = vst [vmem:[#allocation66_spill] sm:$0xff] %v11469_v36  ;;  %9345 = vmatprep.subr.bf16.mxu0 %v10647_v23 }
 0x2c6   : > { %9172 = vmatmul.mubr.bf16.gmra.mrb[80].mxu1 %v13197_v46  ;;  %9264 = vmatmul.mubr.bf16.gmra.mrb[252].mxu0 %v13197_v46 }
 0x2c7   : > { %9175 = vmatprep.mubr.bf16.mxu1 %v11097_v10  ;;  %9267 = vmatprep.mubr.bf16.mxu0 %v11008_v3 }
 0x2c8   : > { %9346 = vmatpush3.bf16.msra.mxu0 %v10647_v23 }
 0x2c9   : > { %v9069_v1 = vpop.f32.mrb[104].mxu1  ;;  %v8889_v54 = vpop.f32.mrb[180].mxu0 }
 0x2ca   : > { %v11481_v36 = vpop.f32.mrb[105].mxu1  ;;  %v11483_v18 = vpop.f32.mrb[181].mxu0 }
 0x2cb   : > { %13231 = vst [vmem:[#allocation67_spill] sm:$0xff] %v11483_v18  ;;  %v11485_v6 = vpop.f32.mrb[106].mxu1  ;;  %v11487_v34 = vpop.f32.mrb[182].mxu0 }
 0x2cc   : > { %13232 = vst [vmem:[#allocation68_spill] sm:$0xff] %v11487_v34  ;;  %v11489_v10 = vpop.f32.mrb[107].mxu1  ;;  %v11491_v3 = vpop.f32.mrb[183].mxu0 }
 0x2cd   : > { %13233 = vst [vmem:[#allocation69_spill] sm:$0xff] %v11491_v3 }
 0x2ce   : > { %9176 = vmatmul.mubr.bf16.gmra.mrb[84].mxu1 %v13197_v46  ;;  %9268 = vmatmul.mubr.bf16.gmra.mrb[0].mxu0 %v13197_v46 }
 0x2cf   : > { %9179 = vmatprep.mubr.bf16.mxu1 %v11095_v9  ;;  %9271 = vmatprep.mubr.bf16.mxu0 %v11005_v0 }
 0x2d1   : > { %v9073_v42 = vpop.f32.mrb[108].mxu1  ;;  %v8893_v1 = vpop.f32.mrb[184].mxu0 }
 0x2d2   : > { %v11497_v54 = vpop.f32.mrb[109].mxu1  ;;  %v11499_v18 = vpop.f32.mrb[185].mxu0 }
 0x2d3   : > { %13234 = vst [vmem:[#allocation70_spill] sm:$0xff] %v11499_v18  ;;  %v11501_v34 = vpop.f32.mrb[110].mxu1  ;;  %v11503_v61 = vpop.f32.mrb[186].mxu0 }
 0x2d4   : > { %13235 = vst [vmem:[#allocation71_spill] sm:$0xff] %v11503_v61  ;;  %v11505_v3 = vpop.f32.mrb[111].mxu1  ;;  %v11507_v23 = vpop.f32.mrb[187].mxu0 }
 0x2d5   : > { %13236 = vst [vmem:[#allocation72_spill] sm:$0xff] %v11507_v23 }
 0x2d6   : > { %9180 = vmatmul.mubr.bf16.gmra.mrb[88].mxu1 %v13197_v46  ;;  %9272 = vmatmul.mubr.bf16.gmra.mrb[4].mxu0 %v13197_v46 }
 0x2d7   : > { %9275 = vmatprep.mubr.bf16.mxu0 %v11020_v25  ;;  %9183 = vmatprep.mubr.bf16.mxu1 %v13197_v46 }
 0x2d9   : > { %v9077_v42 = vpop.f32.mrb[112].mxu1  ;;  %v8897_v1 = vpop.f32.mrb[188].mxu0 }
 0x2da   : > { %v11513_v0 = vpop.f32.mrb[113].mxu1  ;;  %v11515_v18 = vpop.f32.mrb[189].mxu0 }
 0x2db   : > { %13237 = vst [vmem:[#allocation73_spill] sm:$0xff] %v11515_v18  ;;  %v11517_v9 = vpop.f32.mrb[114].mxu1  ;;  %v11519_v61 = vpop.f32.mrb[190].mxu0 }
 0x2dc   : > { %13238 = vst [vmem:[#allocation74_spill] sm:$0xff] %v11519_v61  ;;  %v11521_v37 = vpop.f32.mrb[115].mxu1  ;;  %v11523_v23 = vpop.f32.mrb[191].mxu0 }
 0x2dd   : > { %13239 = vst [vmem:[#allocation75_spill] sm:$0xff] %v11523_v23 }
 0x2de   : > { %9184 = vmatmul.mubr.bf16.gmra.mrb[92].mxu1 %v13197_v46  ;;  %9276 = vmatmul.mubr.bf16.gmra.mrb[8].mxu0 %v13197_v46 }
 0x2df   : > { %9279 = vmatprep.mubr.bf16.mxu0 %v11017_v22  ;;  %9635 = vmatprep.mubr.bf16.mxu1 %v10879_v14  ;;  %v10639_v22 = vld [vmem:[%s13121_s3 + $0x88] sm:$0xff]  }
 0x2e1   : > { %v8917_v42 = vpop.f32.mrb[64].mxu0  ;;  %v9081_v1 = vpop.f32.mrb[116].mxu1 }
 0x2e2   : > { %v1953_v25 = vpop.f32.mrb[65].mxu0  ;;  %v11529_v18 = vpop.f32.mrb[117].mxu1 }
 0x2e3   : > { %v11532_v56 = vadd.f32 %v11437_v20, %v1953_v25  ;;  %v8918_v61 = vpop.f32.mrb[66].mxu0  ;;  %v11534_v28 = vpop.f32.mrb[118].mxu1 }
 0x2e4   : > { %v10068_v23 = vadd.f32 %v11441_v31, %v8918_v61  ;;  %v1956_v27 = vpop.f32.mrb[67].mxu0  ;;  %v11537_v29 = vpop.f32.mrb[119].mxu1  ;;  %v10641_v61 = vld [vmem:[%s13121_s3 + $0x90] sm:$0xff]  }
 0x2e5   : > { %13240 = vst [vmem:[#allocation76_spill] sm:$0xff] %v11532_v56  ;;  %v10069_v42 = vadd.f32 %v11445_v60, %v1956_v27  ;;  %v13162_v25 = vrot.slane %v11532_v56, 7 }
 0x2e6   : > { %9280 = vmatmul.mubr.bf16.gmra.mrb[12].mxu0 %v13197_v46  ;;  %9636 = vmatmul.mubr.bf16.vlgmr.msra.gmra.mrb[128].mxu1 %v13197_v46 }
 0x2e7   : > { %v3206_v20 = vrot.slane %v10069_v42, 7  ;;  %9764 = vmatpush3.bf16.msra.mxu1 %v11325_v26  ;;  %9283 = vmatprep.mubr.bf16.mxu0 %v11032_v48 }
 0x2e8   : > { %9639 = vmatprep.mubr.bf16.mxu1 %v10876_v11  ;;  %9765 = vmatprep.subr.bf16.mxu1 %v10639_v22 }
 0x2e9   : > { %v8921_v27 = vpop.f32.mrb[68].mxu0  ;;  %v9085_v60 = vpop.f32.mrb[120].mxu1  ;;  %v11555_v31 = vsel %vm3204_vm0, %v13162_v25, %v3206_v20  ;;  %v10645_v25 = vld [vmem:[%s13121_s3 + $0x98] sm:$0xff]  }
 0x2ea   : > { %13241 = vst [vmem:[#allocation77_spill] sm:$0xff] %v11555_v31  ;;  %v1968_v1 = vpop.f32.mrb[69].mxu0  ;;  %v11557_v42 = vpop.f32.mrb[121].mxu1  ;;  %v3208_v27 = vrot.slane %v10068_v23, 7 }
 0x2eb   : > { %v10070_v26 = vadd.f32 %v11459_v49, %v1968_v1  ;;  %v8922_v48 = vpop.f32.mrb[70].mxu0  ;;  %v11560_v14 = vpop.f32.mrb[122].mxu1  ;;  %9766 = vmatpush3.bf16.msra.mxu1 %v10639_v22 }
 0x2ec   : > { %v10071_v11 = vadd.f32 %v11463_v38, %v8922_v48  ;;  %v1971_v44 = vpop.f32.mrb[71].mxu0  ;;  %v11563_v24 = vpop.f32.mrb[123].mxu1  ;;  %9767 = vmatprep.subr.bf16.mxu1 %v10641_v61 }
 0x2ed   : > { %v3209_v60 = vrot.slane %v10070_v26, 7  ;;  %v10072_v20 = vadd.f32 %v11467_v55, %v1971_v44  ;;  %v10648_v55 = vld [vmem:[%s13121_s3 + $0xa0] sm:$0xff]  }
 0x2ee   : > { %9284 = vmatmul.mubr.bf16.gmra.mrb[16].mxu0 %v13197_v46  ;;  %9640 = vmatmul.mubr.bf16.gmra.mrb[132].mxu1 %v13197_v46 }
 0x2ef   : > { %v3211_v49 = vrot.slane %v10072_v20, 7  ;;  %9287 = vmatprep.mubr.bf16.mxu0 %v11029_v47  ;;  %9643 = vmatprep.mubr.bf16.mxu1 %v10892_v33  ;;  %v11574_v38 = vsel %vm3204_vm0, %v3208_v27, %v3209_v60 }
 0x2f0   : > { %13242 = vst [vmem:[#allocation78_spill] sm:$0xff] %v11574_v38  ;;  %9768 = vmatpush3.bf16.msra.mxu1 %v10641_v61 }
 0x2f1   : > { %v8925_v22 = vpop.f32.mrb[72].mxu0  ;;  %v9089_v48 = vpop.f32.mrb[124].mxu1  ;;  %9769 = vmatprep.subr.bf16.mxu1 %v10645_v25  ;;  %v11580_v44 = vsel %vm3204_vm0, %v3209_v60, %v3211_v49 }
 0x2f2   : > { %13243 = vst [vmem:[#allocation79_spill] sm:$0xff] %v11580_v44  ;;  %v1983_v23 = vpop.f32.mrb[73].mxu0  ;;  %v11582_v1 = vpop.f32.mrb[125].mxu1  ;;  %v3213_v48 = vrot.slane %v10071_v11, 7  ;;  %v13327_v44 = vld [vmem:[#allocation45_spill] sm:$0xff] }
 0x2f3   : > { %v10073_v26 = vadd.f32 %v11481_v36, %v1983_v23  ;;  %v8926_v20 = vpop.f32.mrb[74].mxu0  ;;  %v11585_v31 = vpop.f32.mrb[126].mxu1 }
 0x2f4   : > { %v10074_v61 = vadd.f32 %v11485_v6, %v8926_v20  ;;  %v1986_v27 = vpop.f32.mrb[75].mxu0  ;;  %v11588_v22 = vpop.f32.mrb[127].mxu1  ;;  %9770 = vmatpush3.bf16.msra.mxu1 %v10645_v25 }
 0x2f5   : > { %v3214_v38 = vrot.slane %v10073_v26, 7  ;;  %v10075_v56 = vadd.f32 %v11489_v10, %v1986_v27  ;;  %9771 = vmatprep.subr.bf16.mxu1 %v10648_v55 }
 0x2f6   : > { %9288 = vmatmul.mubr.bf16.gmra.mrb[20].mxu0 %v13197_v46  ;;  %9644 = vmatmul.mubr.bf16.gmra.mrb[136].mxu1 %v13197_v46 }
 0x2f7   : > { %v3216_v60 = vrot.slane %v10075_v56, 7  ;;  %9291 = vmatprep.mubr.bf16.mxu0 %v11050_v17  ;;  %9647 = vmatprep.mubr.bf16.mxu1 %v10889_v30  ;;  %v11596_v36 = vsel %vm3204_vm0, %v3213_v48, %v3214_v38 }
 0x2f8   : > { %13244 = vst [vmem:[#allocation80_spill] sm:$0xff] %v11596_v36  ;;  %9772 = vmatpush3.bf16.msra.mxu1 %v10648_v55 }
 0x2f9   : > { %v8929_v6 = vpop.f32.mrb[76].mxu0  ;;  %v9093_v25 = vpop.f32.mrb[0].mxu1  ;;  %v11599_v11 = vsel %vm3204_vm0, %v3214_v38, %v3216_v60 }
 0x2fa   : > { %13245 = vst [vmem:[#allocation81_spill] sm:$0xff] %v11599_v11  ;;  %v1998_v10 = vpop.f32.mrb[77].mxu0  ;;  %v2651_v49 = vpop.f32.mrb[1].mxu1  ;;  %v3218_v6 = vrot.slane %v10074_v61, 7 }
 0x2fb   : > { %v10076_v23 = vadd.f32 %v11497_v54, %v1998_v10  ;;  %v11603_v26 = vadd.f32 %v2651_v49, %v11223_v35  ;;  %v8930_v56 = vpop.f32.mrb[78].mxu0  ;;  %v9094_v20 = vpop.f32.mrb[2].mxu1 }
 0x2fc   : > { %v10077_v27 = vadd.f32 %v11501_v34, %v8930_v56  ;;  %v10092_v48 = vadd.f32 %v9094_v20, %v11225_v53  ;;  %v2001_v36 = vpop.f32.mrb[79].mxu0  ;;  %v2654_v55 = vpop.f32.mrb[3].mxu1 }
 0x2fd   : > { %v3219_v25 = vrot.slane %v10076_v23, 7  ;;  %v10078_v38 = vadd.f32 %v11505_v3, %v2001_v36  ;;  %v10093_v60 = vadd.f32 %v2654_v55, %v11227_v40  ;;  %v13164_v35 = vrot.slane %v11603_v26, 7 }
 0x2fe   : > { %9292 = vmatmul.mubr.bf16.gmra.mrb[24].mxu0 %v13197_v46  ;;  %9648 = vmatmul.mubr.bf16.gmra.mrb[140].mxu1 %v13197_v46 }
 0x2ff   : > { %v3221_v54 = vrot.slane %v10078_v38, 7  ;;  %v3246_v10 = vrot.slane %v10093_v60, 7  ;;  %9295 = vmatprep.mubr.bf16.mxu0 %v11047_v13  ;;  %9651 = vmatprep.mubr.bf16.mxu1 %v10906_v59  ;;  %v11615_v53 = vsel %vm3204_vm0, %v3218_v6, %v3219_v25  ;;  %v3223_v6 = vrot.slane %v10077_v27, 7 }
 0x300   : > { %13246 = vst [vmem:[#allocation82_spill] sm:$0xff] %v11615_v53  ;;  %v3248_v38 = vrot.slane %v10092_v48, 7  ;;  %v13325_v53 = vld [vmem:[#allocation44_spill] sm:$0xff] }
 0x301   : > { %v8933_v34 = vpop.f32.mrb[80].mxu0  ;;  %v9097_v61 = vpop.f32.mrb[4].mxu1  ;;  %v11618_v3 = vsel %vm3204_vm0, %v3219_v25, %v3221_v54  ;;  %v11623_v40 = vsel %vm3204_vm0, %v13164_v35, %v3246_v10 }
 0x302   : > { %13247 = vst [vmem:[#allocation83_spill] sm:$0xff] %v11618_v3  ;;  %13248 = vst [vmem:[#allocation84_spill] sm:$0xff] %v11623_v40  ;;  %v2013_v36 = vpop.f32.mrb[81].mxu0  ;;  %v2666_v49 = vpop.f32.mrb[5].mxu1 }
 0x303   : > { %v10079_v23 = vadd.f32 %v11513_v0, %v2013_v36  ;;  %v10094_v56 = vadd.f32 %v2666_v49, %v11236_v41  ;;  %v8934_v20 = vpop.f32.mrb[82].mxu0  ;;  %v9098_v55 = vpop.f32.mrb[6].mxu1 }
 0x304   : > { %v10080_v60 = vadd.f32 %v11517_v9, %v8934_v20  ;;  %v10095_v25 = vadd.f32 %v9098_v55, %v11238_v51  ;;  %v2016_v54 = vpop.f32.mrb[83].mxu0  ;;  %v2669_v34 = vpop.f32.mrb[7].mxu1  ;;  %v10649_v9 = vld [vmem:[%s13121_s3 + $0xa8] sm:$0xff]  }
 0x305   : > { %v3224_v61 = vrot.slane %v10079_v23, 7  ;;  %v3249_v3 = vrot.slane %v10094_v56, 7  ;;  %v10081_v10 = vadd.f32 %v11521_v37, %v2016_v54  ;;  %v10096_v35 = vadd.f32 %v2669_v34, %v11240_v58  ;;  %9773 = vmatprep.subr.bf16.mxu1 %v10649_v9 }
 0x306   : > { %9296 = vmatmul.mubr.bf16.gmra.mrb[28].mxu0 %v13197_v46  ;;  %9652 = vmatmul.mubr.bf16.gmra.mrb[144].mxu1 %v13197_v46 }
 0x307   : > { %v3226_v0 = vrot.slane %v10081_v10, 7  ;;  %v3251_v41 = vrot.slane %v10096_v35, 7  ;;  %9299 = vmatprep.mubr.bf16.mxu0 %v11062_v43  ;;  %9655 = vmatprep.mubr.bf16.mxu1 %v10903_v52  ;;  %v11639_v51 = vsel %vm3204_vm0, %v3223_v6, %v3224_v61  ;;  %v11642_v37 = vsel %vm3204_vm0, %v3248_v38, %v3249_v3 }
 0x308   : > { %13249 = vst [vmem:[#allocation85_spill] sm:$0xff] %v11639_v51  ;;  %13250 = vst [vmem:[#allocation86_spill] sm:$0xff] %v11642_v37  ;;  %9774 = vmatpush3.bf16.msra.mxu1 %v10649_v9  ;;  %v3228_v6 = vrot.slane %v10080_v60, 7  ;;  %v3253_v38 = vrot.slane %v10095_v25, 7 }
 0x309   : > { %v8937_v58 = vpop.f32.mrb[84].mxu0  ;;  %v9101_v27 = vpop.f32.mrb[8].mxu1  ;;  %v11645_v48 = vsel %vm3204_vm0, %v3224_v61, %v3226_v0  ;;  %v11648_v35 = vsel %vm3204_vm0, %v3249_v3, %v3251_v41 }
 0x30a   : > { %13251 = vst [vmem:[#allocation87_spill] sm:$0xff] %v11645_v48  ;;  %13252 = vst [vmem:[#allocation88_spill] sm:$0xff] %v11648_v35  ;;  %v2028_v36 = vpop.f32.mrb[85].mxu0  ;;  %v2681_v49 = vpop.f32.mrb[9].mxu1 }
 0x30b   : > { %v10082_v23 = vadd.f32 %v11529_v18, %v2028_v36  ;;  %v10097_v56 = vadd.f32 %v2681_v49, %v11246_v45  ;;  %v8938_v20 = vpop.f32.mrb[86].mxu0  ;;  %v9102_v55 = vpop.f32.mrb[10].mxu1 }
 0x30c   : > { %v10083_v54 = vadd.f32 %v11534_v28, %v8938_v20  ;;  %v10098_v34 = vadd.f32 %v9102_v55, %v11248_v62  ;;  %v2031_v61 = vpop.f32.mrb[87].mxu0  ;;  %v2684_v10 = vpop.f32.mrb[11].mxu1 }
 0x30d   : > { %v3229_v0 = vrot.slane %v10082_v23, 7  ;;  %v3254_v3 = vrot.slane %v10097_v56, 7  ;;  %v10084_v41 = vadd.f32 %v11537_v29, %v2031_v61  ;;  %v10099_v9 = vadd.f32 %v2684_v10, %v11250_v63 }
 0x30e   : > { %9300 = vmatmul.mubr.bf16.gmra.mrb[32].mxu0 %v13197_v46  ;;  %9656 = vmatmul.mubr.bf16.gmra.mrb[148].mxu1 %v13197_v46  ;;  %v3233_v20 = vrot.slane %v10083_v54, 7  ;;  %v3258_v55 = vrot.slane %v10098_v34, 7 }
 0x30f   : > { %v3231_v18 = vrot.slane %v10084_v41, 7  ;;  %v3256_v45 = vrot.slane %v10099_v9, 7  ;;  %9303 = vmatprep.mubr.bf16.mxu0 %v11059_v39  ;;  %9659 = vmatprep.mubr.bf16.mxu1 %v10920_v12  ;;  %v11661_v62 = vsel %vm3204_vm0, %v3228_v6, %v3229_v0  ;;  %v11664_v28 = vsel %vm3204_vm0, %v3253_v38, %v3254_v3 }
 0x310   : > { %13253 = vst [vmem:[#allocation89_spill] sm:$0xff] %v11661_v62  ;;  %13254 = vst [vmem:[#allocation90_spill] sm:$0xff] %v11664_v28 }
 0x311   : > { %v8941_v60 = vpop.f32.mrb[88].mxu0  ;;  %v9105_v29 = vpop.f32.mrb[12].mxu1  ;;  %v11667_v63 = vsel %vm3204_vm0, %v3229_v0, %v3231_v18  ;;  %v11670_v25 = vsel %vm3204_vm0, %v3254_v3, %v3256_v45 }
 0x312   : > { %13255 = vst [vmem:[#allocation91_spill] sm:$0xff] %v11667_v63  ;;  %13256 = vst [vmem:[#allocation92_spill] sm:$0xff] %v11670_v25  ;;  %v2043_v58 = vpop.f32.mrb[89].mxu0  ;;  %v2696_v27 = vpop.f32.mrb[13].mxu1 }
 0x313   : > { %v10085_v36 = vadd.f32 %v11557_v42, %v2043_v58  ;;  %v10100_v49 = vadd.f32 %v2696_v27, %v11256_v2  ;;  %v8942_v23 = vpop.f32.mrb[90].mxu0  ;;  %v9106_v56 = vpop.f32.mrb[14].mxu1 }
 0x314   : > { %v10086_v6 = vadd.f32 %v11560_v14, %v8942_v23  ;;  %v10101_v38 = vadd.f32 %v9106_v56, %v11258_v4  ;;  %v2046_v61 = vpop.f32.mrb[91].mxu0  ;;  %v2699_v10 = vpop.f32.mrb[15].mxu1 }
 0x315   : > { %v3234_v0 = vrot.slane %v10085_v36, 7  ;;  %v3259_v41 = vrot.slane %v10100_v49, 7  ;;  %v10087_v3 = vadd.f32 %v11563_v24, %v2046_v61  ;;  %v10102_v9 = vadd.f32 %v2699_v10, %v11260_v5 }
 0x316   : > { %9304 = vmatmul.mubr.bf16.gmra.mrb[36].mxu0 %v13197_v46  ;;  %9660 = vmatmul.mubr.bf16.gmra.mrb[152].mxu1 %v13197_v46  ;;  %v3238_v36 = vrot.slane %v10086_v6, 7  ;;  %v3263_v49 = vrot.slane %v10101_v38, 7 }
 0x317   : > { %v3236_v2 = vrot.slane %v10087_v3, 7  ;;  %v3261_v42 = vrot.slane %v10102_v9, 7  ;;  %9307 = vmatprep.mubr.bf16.mxu0 %v11074_v15  ;;  %9663 = vmatprep.mubr.bf16.mxu1 %v10917_v8  ;;  %v11683_v14 = vsel %vm3204_vm0, %v3233_v20, %v3234_v0  ;;  %v11686_v4 = vsel %vm3204_vm0, %v3258_v55, %v3259_v41 }
 0x318   : > { %13257 = vst [vmem:[#allocation93_spill] sm:$0xff] %v11683_v14  ;;  %13258 = vst [vmem:[#allocation94_spill] sm:$0xff] %v11686_v4  ;;  %v13294_v4 = vld [vmem:[#allocation32_spill] sm:$0xff] }
 0x319   : > { %v8945_v54 = vpop.f32.mrb[92].mxu0  ;;  %v9109_v24 = vpop.f32.mrb[16].mxu1  ;;  %v11689_v5 = vsel %vm3204_vm0, %v3234_v0, %v3236_v2  ;;  %v11692_v34 = vsel %vm3204_vm0, %v3259_v41, %v3261_v42 }
 0x31a   : > { %13259 = vst [vmem:[#allocation95_spill] sm:$0xff] %v11689_v5  ;;  %13260 = vst [vmem:[#allocation96_spill] sm:$0xff] %v11692_v34  ;;  %v2058_v18 = vpop.f32.mrb[93].mxu0  ;;  %v2711_v45 = vpop.f32.mrb[17].mxu1 }
 0x31b   : > { %v10088_v60 = vadd.f32 %v11582_v1, %v2058_v18  ;;  %v10103_v29 = vadd.f32 %v2711_v45, %v11266_v57  ;;  %v8946_v58 = vpop.f32.mrb[94].mxu0  ;;  %v9110_v27 = vpop.f32.mrb[18].mxu1 }
 0x31c   : > { %v10089_v23 = vadd.f32 %v11585_v31, %v8946_v58  ;;  %v10104_v56 = vadd.f32 %v9110_v27, %v11268_v16  ;;  %v2061_v20 = vpop.f32.mrb[95].mxu0  ;;  %v2714_v55 = vpop.f32.mrb[19].mxu1  ;;  %v13267_v27 = vld [vmem:[#allocation21_spill] sm:$0xff] }
 0x31d   : > { %v3239_v61 = vrot.slane %v10088_v60, 7  ;;  %v3264_v10 = vrot.slane %v10103_v29, 7  ;;  %v10090_v0 = vadd.f32 %v11588_v22, %v2061_v20  ;;  %v10105_v41 = vadd.f32 %v2714_v55, %v11270_v19  ;;  %v13268_v20 = vld [vmem:[#allocation18_spill] sm:$0xff] }
 0x31e   : > { %v3243_v3 = vrot.slane %v10089_v23, 7  ;;  %9308 = vmatmul.mubr.bf16.gmra.mrb[40].mxu0 %v13197_v46  ;;  %9664 = vmatmul.mubr.bf16.gmra.mrb[156].mxu1 %v13197_v46  ;;  %v13263_v22 = vrot.slane %v11603_v26, 7  ;;  %v3268_v29 = vrot.slane %v10104_v56, 7 }
 0x31f   : > { %v3241_v57 = vrot.slane %v10090_v0, 7  ;;  %v3266_v1 = vrot.slane %v10105_v41, 7  ;;  %9311 = vmatprep.mubr.bf16.mxu0 %v11071_v7  ;;  %9667 = vmatprep.mubr.bf16.mxu1 %v10943_v32  ;;  %v11705_v16 = vsel %vm3204_vm0, %v3238_v36, %v3239_v61  ;;  %v11708_v31 = vsel %vm3204_vm0, %v3263_v49, %v3264_v10 }
 0x320   : > { %13261 = vst [vmem:[#allocation97_spill] sm:$0xff] %v11705_v16  ;;  %13262 = vst [vmem:[#allocation98_spill] sm:$0xff] %v11708_v31  ;;  %v11713_v19 = vsel %vm3204_vm0, %v3243_v3, %v13263_v22  ;;  %v13272_v3 = vld [vmem:[#allocation22_spill] sm:$0xff] }
 0x321   : > { %13264 = vst [vmem:[#allocation99_spill] sm:$0xff] %v11713_v19  ;;  %v9113_v6 = vpop.f32.mrb[20].mxu1  ;;  %v9205_v38 = vpop.f32.mrb[192].mxu0  ;;  %v11716_v9 = vsel %vm3204_vm0, %v3239_v61, %v3241_v57  ;;  %v11719_v2 = vsel %vm3204_vm0, %v3264_v10, %v3266_v1 }
 0x322   : > { %13265 = vst [vmem:[#allocation100_spill] sm:$0xff] %v11716_v9  ;;  %13266 = vst [vmem:[#allocation101_spill] sm:$0xff] %v11719_v2  ;;  %v2726_v42 = vpop.f32.mrb[21].mxu1  ;;  %v11722_v18 = vpop.f32.mrb[193].mxu0  ;;  %v13273_v6 = vld [vmem:[#allocation23_spill] sm:$0xff] }
 0x323   : > { %v10106_v54 = vadd.f32 %v2726_v42, %v11279_v21  ;;  %v9114_v24 = vpop.f32.mrb[22].mxu1  ;;  %v9206_v60 = vpop.f32.mrb[194].mxu0  ;;  %v13269_v21 = vld [vmem:[#allocation5_spill] sm:$0xff] }
 0x324   : > { %v10107_v45 = vadd.f32 %v9114_v24, %v11281_v50  ;;  %v2729_v26 = vpop.f32.mrb[23].mxu1  ;;  %v11726_v49 = vpop.f32.mrb[195].mxu0  ;;  %v10650_v50 = vld [vmem:[%s13121_s3 + $0xb0] sm:$0xff]   ;;  %v13274_v60 = vld [vmem:[#allocation24_spill] sm:$0xff] }
 0x325   : > { %v3269_v58 = vrot.slane %v10106_v54, 7  ;;  %v10108_v36 = vadd.f32 %v2729_v26, %v13267_v27  ;;  %9775 = vmatprep.subr.bf16.mxu1 %v10650_v50  ;;  %v13275_v27 = vld [vmem:[#allocation17_spill] sm:$0xff] }
 0x326   : > { %9312 = vmatmul.mubr.bf16.gmra.mrb[44].mxu0 %v13197_v46  ;;  %9668 = vmatmul.mubr.bf16.gmra.mrb[160].mxu1 %v13197_v46  ;;  %v3273_v24 = vrot.slane %v10107_v45, 7 }
 0x327   : > { %v3271_v23 = vrot.slane %v10108_v36, 7  ;;  %9315 = vmatprep.mubr.bf16.mxu0 %v13268_v20  ;;  %9671 = vmatprep.mubr.bf16.mxu1 %v13269_v21  ;;  %v11736_v56 = vsel %vm3204_vm0, %v3268_v29, %v3269_v58  ;;  %v13276_v36 = vld [vmem:[#allocation7_spill] sm:$0xff] }
 0x328   : > { %13270 = vst [vmem:[#allocation21_spill] sm:$0xff] %v11736_v56  ;;  %9776 = vmatpush3.bf16.msra.mxu1 %v10650_v50 }
 0x329   : > { %v9117_v55 = vpop.f32.mrb[24].mxu1  ;;  %v9209_v61 = vpop.f32.mrb[196].mxu0  ;;  %v11739_v10 = vsel %vm3204_vm0, %v3269_v58, %v3271_v23 }
 0x32a   : > { %13271 = vst [vmem:[#allocation18_spill] sm:$0xff] %v11739_v10  ;;  %v2741_v0 = vpop.f32.mrb[25].mxu1  ;;  %v11741_v41 = vpop.f32.mrb[197].mxu0 }
 0x32b   : > { %v10109_v57 = vadd.f32 %v2741_v0, %v13272_v3  ;;  %v9118_v1 = vpop.f32.mrb[26].mxu1  ;;  %v9210_v22 = vpop.f32.mrb[198].mxu0  ;;  %v13279_v3 = vld [vmem:[#allocation25_spill] sm:$0xff] }
 0x32c   : > { %v10110_v38 = vadd.f32 %v9118_v1, %v13273_v6  ;;  %v2744_v42 = vpop.f32.mrb[27].mxu1  ;;  %v11745_v54 = vpop.f32.mrb[199].mxu0  ;;  %v13280_v6 = vld [vmem:[#allocation26_spill] sm:$0xff] }
 0x32d   : > { %v3274_v26 = vrot.slane %v10109_v57, 7  ;;  %v10111_v29 = vadd.f32 %v2744_v42, %v13274_v60 }
 0x32e   : > { %9316 = vmatmul.mubr.bf16.gmra.mrb[48].mxu0 %v13197_v46  ;;  %9672 = vmatmul.mubr.bf16.gmra.mrb[164].mxu1 %v13197_v46  ;;  %v3278_v10 = vrot.slane %v10110_v38, 7 }
 0x32f   : > { %v3276_v58 = vrot.slane %v10111_v29, 7  ;;  %9319 = vmatprep.mubr.bf16.mxu0 %v13275_v27  ;;  %9675 = vmatprep.mubr.bf16.mxu1 %v13276_v36  ;;  %v11753_v23 = vsel %vm3204_vm0, %v3273_v24, %v3274_v26 }
 0x330   : > { %13277 = vst [vmem:[#allocation5_spill] sm:$0xff] %v11753_v23  ;;  %v13281_v23 = vld [vmem:[#allocation27_spill] sm:$0xff] }
 0x331   : > { %v9121_v50 = vpop.f32.mrb[28].mxu1  ;;  %v9213_v55 = vpop.f32.mrb[200].mxu0  ;;  %v11756_v61 = vsel %vm3204_vm0, %v3274_v26, %v3276_v58  ;;  %v13282_v58 = vld [vmem:[#allocation20_spill] sm:$0xff] }
 0x332   : > { %13278 = vst [vmem:[#allocation22_spill] sm:$0xff] %v11756_v61  ;;  %v2756_v45 = vpop.f32.mrb[29].mxu1  ;;  %v11758_v0 = vpop.f32.mrb[201].mxu0  ;;  %v13283_v55 = vld [vmem:[#allocation6_spill] sm:$0xff] }
 0x333   : > { %v10112_v57 = vadd.f32 %v2756_v45, %v13279_v3  ;;  %v9122_v1 = vpop.f32.mrb[30].mxu1  ;;  %v9214_v22 = vpop.f32.mrb[202].mxu0 }
 0x334   : > { %v10113_v42 = vadd.f32 %v9122_v1, %v13280_v6  ;;  %v2759_v60 = vpop.f32.mrb[31].mxu1  ;;  %v11762_v29 = vpop.f32.mrb[203].mxu0 }
 0x335   : > { %v3279_v24 = vrot.slane %v10112_v57, 7  ;;  %v10114_v50 = vadd.f32 %v2759_v60, %v13281_v23  ;;  %v13286_v23 = vld [vmem:[#allocation28_spill] sm:$0xff] }
 0x336   : > { %9320 = vmatmul.mubr.bf16.gmra.mrb[52].mxu0 %v13197_v46  ;;  %9676 = vmatmul.mubr.bf16.gmra.mrb[168].mxu1 %v13197_v46  ;;  %v3283_v34 = vrot.slane %v10113_v42, 7 }
 0x337   : > { %v3281_v26 = vrot.slane %v10114_v50, 7  ;;  %9323 = vmatprep.mubr.bf16.mxu0 %v13282_v58  ;;  %9679 = vmatprep.mubr.bf16.mxu1 %v13283_v55  ;;  %v11770_v45 = vsel %vm3204_vm0, %v3278_v10, %v3279_v24  ;;  %v13287_v50 = vld [vmem:[#allocation29_spill] sm:$0xff] }
 0x338   : > { %13284 = vst [vmem:[#allocation23_spill] sm:$0xff] %v11770_v45  ;;  %v13288_v45 = vld [vmem:[#allocation30_spill] sm:$0xff] }
 0x339   : > { %v9125_v3 = vpop.f32.mrb[32].mxu1  ;;  %v9217_v1 = vpop.f32.mrb[204].mxu0  ;;  %v11773_v22 = vsel %vm3204_vm0, %v3279_v24, %v3281_v26  ;;  %v13289_v26 = vld [vmem:[#allocation19_spill] sm:$0xff] }
 0x33a   : > { %13285 = vst [vmem:[#allocation24_spill] sm:$0xff] %v11773_v22  ;;  %v2771_v38 = vpop.f32.mrb[33].mxu1  ;;  %v11775_v57 = vpop.f32.mrb[205].mxu0  ;;  %v13290_v1 = vld [vmem:[#allocation9_spill] sm:$0xff] }
 0x33b   : > { %v10115_v6 = vadd.f32 %v2771_v38, %v13286_v23  ;;  %v9126_v60 = vpop.f32.mrb[34].mxu1  ;;  %v9218_v61 = vpop.f32.mrb[206].mxu0 }
 0x33c   : > { %v10116_v56 = vadd.f32 %v9126_v60, %v13287_v50  ;;  %v2774_v2 = vpop.f32.mrb[35].mxu1  ;;  %v11779_v31 = vpop.f32.mrb[207].mxu0  ;;  %v10651_v61 = vld [vmem:[%s13121_s3 + $0xb8] sm:$0xff]   ;;  %v13293_v60 = vld [vmem:[#allocation31_spill] sm:$0xff] }
 0x33d   : > { %v3284_v10 = vrot.slane %v10115_v6, 7  ;;  %v10117_v3 = vadd.f32 %v2774_v2, %v13288_v45  ;;  %9777 = vmatprep.subr.bf16.mxu1 %v10651_v61 }
 0x33e   : > { %9324 = vmatmul.mubr.bf16.gmra.mrb[56].mxu0 %v13197_v46  ;;  %9680 = vmatmul.mubr.bf16.gmra.mrb[172].mxu1 %v13197_v46 }
 0x33f   : > { %v3286_v24 = vrot.slane %v10117_v3, 7  ;;  %9327 = vmatprep.mubr.bf16.mxu0 %v13289_v26  ;;  %9683 = vmatprep.mubr.bf16.mxu1 %v13290_v1  ;;  %v11790_v38 = vsel %vm3204_vm0, %v3283_v34, %v3284_v10  ;;  %v3288_v34 = vrot.slane %v10116_v56, 7 }
 0x340   : > { %13291 = vst [vmem:[#allocation17_spill] sm:$0xff] %v11790_v38  ;;  %9778 = vmatpush3.bf16.msra.mxu1 %v10651_v61 }
 0x341   : > { %v9129_v42 = vpop.f32.mrb[36].mxu1  ;;  %v9221_v23 = vpop.f32.mrb[208].mxu0  ;;  %v11793_v2 = vsel %vm3204_vm0, %v3284_v10, %v3286_v24  ;;  %v13296_v24 = vld [vmem:[#allocation8_spill] sm:$0xff] }
 0x342   : > { %13292 = vst [vmem:[#allocation7_spill] sm:$0xff] %v11793_v2  ;;  %v2786_v45 = vpop.f32.mrb[37].mxu1  ;;  %v11795_v6 = vpop.f32.mrb[209].mxu0  ;;  %v13295_v23 = vld [vmem:[#allocation33_spill] sm:$0xff] }
 0x343   : > { %v10118_v50 = vadd.f32 %v2786_v45, %v13293_v60  ;;  %v9130_v3 = vpop.f32.mrb[38].mxu1  ;;  %v9222_v22 = vpop.f32.mrb[210].mxu0 }
 0x344   : > { %v10119_v25 = vadd.f32 %v9130_v3, %v13294_v4  ;;  %v2789_v28 = vpop.f32.mrb[39].mxu1  ;;  %v11799_v35 = vpop.f32.mrb[211].mxu0 }
 0x345   : > { %v3289_v42 = vrot.slane %v10118_v50, 7  ;;  %v10120_v38 = vadd.f32 %v2789_v28, %v13295_v23  ;;  %v13299_v28 = vld [vmem:[#allocation34_spill] sm:$0xff] }
 0x346   : > { %9328 = vmatmul.mubr.bf16.gmra.mrb[60].mxu0 %v13197_v46  ;;  %9684 = vmatmul.mubr.bf16.gmra.mrb[176].mxu1 %v13197_v46  ;;  %v3293_v19 = vrot.slane %v10119_v25, 7 }
 0x347   : > { %v3291_v10 = vrot.slane %v10120_v38, 7  ;;  %9687 = vmatprep.mubr.bf16.mxu1 %v13296_v24  ;;  %9347 = vmatprep.mubr.bf16.mxu0 %v13197_v46  ;;  %v11807_v22 = vsel %vm3204_vm0, %v3288_v34, %v3289_v42  ;;  %v13300_v38 = vld [vmem:[#allocation35_spill] sm:$0xff] }
 0x348   : > { %13297 = vst [vmem:[#allocation25_spill] sm:$0xff] %v11807_v22  ;;  %v13301_v22 = vld [vmem:[#allocation36_spill] sm:$0xff] }
 0x349   : > { %v9133_v4 = vpop.f32.mrb[40].mxu1  ;;  %v9225_v61 = vpop.f32.mrb[212].mxu0  ;;  %v11810_v45 = vsel %vm3204_vm0, %v3289_v42, %v3291_v10  ;;  %v13302_v10 = vld [vmem:[#allocation4_spill] sm:$0xff] }
 0x34a   : > { %13298 = vst [vmem:[#allocation26_spill] sm:$0xff] %v11810_v45  ;;  %v2801_v56 = vpop.f32.mrb[41].mxu1  ;;  %v11812_v60 = vpop.f32.mrb[213].mxu0  ;;  %v13303_v61 = vld [vmem:[#allocation11_spill] sm:$0xff] }
 0x34b   : > { %v10121_v50 = vadd.f32 %v2801_v56, %v13299_v28  ;;  %v9134_v3 = vpop.f32.mrb[42].mxu1  ;;  %v9226_v23 = vpop.f32.mrb[214].mxu0 }
 0x34c   : > { %v10122_v2 = vadd.f32 %v9134_v3, %v13300_v38  ;;  %v2804_v37 = vpop.f32.mrb[43].mxu1  ;;  %v11816_v40 = vpop.f32.mrb[215].mxu0 }
 0x34d   : > { %v3294_v34 = vrot.slane %v10121_v50, 7  ;;  %v10123_v4 = vadd.f32 %v2804_v37, %v13301_v22  ;;  %v13307_v37 = vld [vmem:[#allocation37_spill] sm:$0xff] }
 0x34e   : > { %9348 = vmatmul.mubr.bf16.vlgmr.msra.gmra.mrb[96].mxu0 %v13197_v46  ;;  %9688 = vmatmul.mubr.bf16.gmra.mrb[180].mxu1 %v13197_v46  ;;  %v3298_v14 = vrot.slane %v10122_v2, 7 }
 0x34f   : > { %v3296_v42 = vrot.slane %v10123_v4, 7  ;;  %9351 = vmatprep.mubr.bf16.mxu0 %v13302_v10  ;;  %9691 = vmatprep.mubr.bf16.mxu1 %v13303_v61  ;;  %v11824_v56 = vsel %vm3204_vm0, %v3293_v19, %v3294_v34  ;;  %v13308_v4 = vld [vmem:[#allocation38_spill] sm:$0xff] }
 0x350   : > { %13304 = vst [vmem:[#allocation27_spill] sm:$0xff] %v11824_v56  ;;  %v13310_v56 = vld [vmem:[#allocation39_spill] sm:$0xff] }
 0x351   : > { %v9137_v28 = vpop.f32.mrb[44].mxu1  ;;  %v9229_v3 = vpop.f32.mrb[216].mxu0  ;;  %v11827_v23 = vsel %vm3204_vm0, %v3294_v34, %v3296_v42  ;;  %v13311_v42 = vld [vmem:[#allocation3_spill] sm:$0xff] }
 0x352   : > { %13305 = vst [vmem:[#allocation20_spill] sm:$0xff] %v11827_v23  ;;  %v2816_v25 = vpop.f32.mrb[45].mxu1  ;;  %v11829_v50 = vpop.f32.mrb[217].mxu0  ;;  %v13312_v3 = vld [vmem:[#allocation10_spill] sm:$0xff] }
 0x353   : > { %13306 = vst [vmem:[#allocation6_spill] sm:$0xff] %v11829_v50  ;;  %v10124_v22 = vadd.f32 %v2816_v25, %v13307_v37  ;;  %v9138_v38 = vpop.f32.mrb[46].mxu1  ;;  %v9230_v45 = vpop.f32.mrb[218].mxu0 }
 0x354   : > { %v10125_v9 = vadd.f32 %v9138_v38, %v13308_v4  ;;  %v2819_v16 = vpop.f32.mrb[47].mxu1  ;;  %v11833_v5 = vpop.f32.mrb[219].mxu0 }
 0x355   : > { %13309 = vst [vmem:[#allocation28_spill] sm:$0xff] %v11833_v5  ;;  %v3299_v19 = vrot.slane %v10124_v22, 7  ;;  %v10126_v28 = vadd.f32 %v2819_v16, %v13310_v56  ;;  %v13316_v16 = vld [vmem:[#allocation40_spill] sm:$0xff] }
 0x356   : > { %9352 = vmatmul.mubr.bf16.gmra.mrb[100].mxu0 %v13197_v46  ;;  %9692 = vmatmul.mubr.bf16.gmra.mrb[184].mxu1 %v13197_v46  ;;  %v3303_v51 = vrot.slane %v10125_v9, 7  ;;  %v11863_v9 = vld [vmem:[%s13121_s3 + $0x200] sm:$0xff]  }
 0x357   : > { %v3301_v34 = vrot.slane %v10126_v28, 7  ;;  %9355 = vmatprep.mubr.bf16.mxu0 %v13311_v42  ;;  %9695 = vmatprep.mubr.bf16.mxu1 %v13312_v3  ;;  %v11841_v45 = vsel %vm3204_vm0, %v3298_v14, %v3299_v19  ;;  %v13317_v28 = vld [vmem:[#allocation41_spill] sm:$0xff] }
 0x358   : > { %13313 = vst [vmem:[#allocation29_spill] sm:$0xff] %v11841_v45  ;;  %v13319_v45 = vld [vmem:[#allocation42_spill] sm:$0xff]  ;;  %9907 = vmatprep.subr.bf16.mxu1 %v11863_v9 }
 0x359   : > { %v9141_v25 = vpop.f32.mrb[48].mxu1  ;;  %v9233_v37 = vpop.f32.mrb[220].mxu0  ;;  %v11844_v38 = vsel %vm3204_vm0, %v3299_v19, %v3301_v34  ;;  %v13320_v34 = vld [vmem:[#allocation13_spill] sm:$0xff] }
 0x35a   : > { %13314 = vst [vmem:[#allocation30_spill] sm:$0xff] %v11844_v38  ;;  %v2831_v2 = vpop.f32.mrb[49].mxu1  ;;  %v11846_v22 = vpop.f32.mrb[221].mxu0 }
 0x35b   : > { %13315 = vst [vmem:[#allocation9_spill] sm:$0xff] %v11846_v22  ;;  %v10127_v56 = vadd.f32 %v2831_v2, %v13316_v16  ;;  %v9142_v4 = vpop.f32.mrb[50].mxu1  ;;  %v9234_v23 = vpop.f32.mrb[222].mxu0 }
 0x35c   : > { %v10128_v63 = vadd.f32 %v9142_v4, %v13317_v28  ;;  %v2834_v62 = vpop.f32.mrb[51].mxu1  ;;  %v11850_v48 = vpop.f32.mrb[223].mxu0  ;;  %v10652_v23 = vld [vmem:[%s13121_s3 + $0x1c0] sm:$0xff]  }
 0x35d   : > { %13318 = vst [vmem:[#allocation31_spill] sm:$0xff] %v11850_v48  ;;  %v3304_v14 = vrot.slane %v10127_v56, 7  ;;  %v10129_v25 = vadd.f32 %v2834_v62, %v13319_v45  ;;  %9475 = vmatprep.subr.bf16.mxu0 %v10652_v23  ;;  %v13324_v4 = vld [vmem:[#allocation43_spill] sm:$0xff] }
 0x35e   : > { %9356 = vmatmul.mubr.bf16.gmra.mrb[104].mxu0 %v13197_v46  ;;  %9696 = vmatmul.mubr.bf16.gmra.mrb[188].mxu1 %v13197_v46 }
 0x35f   : > { %v3306_v19 = vrot.slane %v10129_v25, 7  ;;  %9359 = vmatprep.mubr.bf16.mxu0 %v10892_v33  ;;  %9699 = vmatprep.mubr.bf16.mxu1 %v13320_v34  ;;  %v11866_v62 = vsel %vm3204_vm0, %v3303_v51, %v3304_v14 }
 0x360   : > { %13321 = vst [vmem:[#allocation32_spill] sm:$0xff] %v11866_v62  ;;  %9476 = vmatpush3.bf16.msra.mxu0 %v10652_v23 }
 0x361   : > { %v9145_v45 = vpop.f32.mrb[52].mxu1  ;;  %v9237_v37 = vpop.f32.mrb[224].mxu0  ;;  %v11870_v2 = vsel %vm3204_vm0, %v3304_v14, %v3306_v19  ;;  %v13328_v19 = vld [vmem:[#allocation12_spill] sm:$0xff] }
 0x362   : > { %13322 = vst [vmem:[#allocation33_spill] sm:$0xff] %v11870_v2  ;;  %v2846_v16 = vpop.f32.mrb[53].mxu1  ;;  %v11872_v56 = vpop.f32.mrb[225].mxu0  ;;  %v3308_v45 = vrot.slane %v10128_v63, 7 }
 0x363   : > { %13323 = vst [vmem:[#allocation8_spill] sm:$0xff] %v11872_v56  ;;  %v10130_v28 = vadd.f32 %v2846_v16, %v13324_v4  ;;  %v9146_v25 = vpop.f32.mrb[54].mxu1  ;;  %v9238_v38 = vpop.f32.mrb[226].mxu0 }
 0x364   : > { %v10131_v11 = vadd.f32 %v9146_v25, %v13325_v53  ;;  %v2849_v51 = vpop.f32.mrb[55].mxu1  ;;  %v11876_v62 = vpop.f32.mrb[227].mxu0 }
 0x365   : > { %13326 = vst [vmem:[#allocation34_spill] sm:$0xff] %v11876_v62  ;;  %v3309_v37 = vrot.slane %v10130_v28, 7  ;;  %v10132_v3 = vadd.f32 %v2849_v51, %v13327_v44  ;;  %v13332_v44 = vld [vmem:[#allocation46_spill] sm:$0xff] }
 0x366   : > { %9360 = vmatmul.mubr.bf16.gmra.mrb[108].mxu0 %v13197_v46  ;;  %9700 = vmatmul.mubr.bf16.gmra.mrb[192].mxu1 %v13197_v46  ;;  %v3313_v48 = vrot.slane %v10131_v11, 7 }
 0x367   : > { %v3311_v14 = vrot.slane %v10132_v3, 7  ;;  %9363 = vmatprep.mubr.bf16.mxu0 %v10889_v30  ;;  %9703 = vmatprep.mubr.bf16.mxu1 %v13328_v19  ;;  %v11884_v38 = vsel %vm3204_vm0, %v3308_v45, %v3309_v37  ;;  %v13333_v3 = vld [vmem:[#allocation47_spill] sm:$0xff] }
 0x368   : > { %13329 = vst [vmem:[#allocation35_spill] sm:$0xff] %v11884_v38  ;;  %v13335_v38 = vld [vmem:[#allocation48_spill] sm:$0xff] }
 0x369   : > { %v9149_v53 = vpop.f32.mrb[56].mxu1  ;;  %v9241_v23 = vpop.f32.mrb[228].mxu0  ;;  %v11887_v16 = vsel %vm3204_vm0, %v3309_v37, %v3311_v14  ;;  %v13336_v14 = vld [vmem:[#allocation15_spill] sm:$0xff] }
 0x36a   : > { %13330 = vst [vmem:[#allocation36_spill] sm:$0xff] %v11887_v16  ;;  %v2861_v63 = vpop.f32.mrb[57].mxu1  ;;  %v11889_v4 = vpop.f32.mrb[229].mxu0 }
 0x36b   : > { %13331 = vst [vmem:[#allocation4_spill] sm:$0xff] %v11889_v4  ;;  %v10133_v28 = vadd.f32 %v2861_v63, %v13332_v44  ;;  %v9150_v25 = vpop.f32.mrb[58].mxu1  ;;  %v9242_v51 = vpop.f32.mrb[230].mxu0 }
 0x36c   : > { %v10134_v2 = vadd.f32 %v9150_v25, %v13333_v3  ;;  %v2864_v62 = vpop.f32.mrb[59].mxu1  ;;  %v11893_v56 = vpop.f32.mrb[231].mxu0 }
 0x36d   : > { %13334 = vst [vmem:[#allocation11_spill] sm:$0xff] %v11893_v56  ;;  %v3314_v45 = vrot.slane %v10133_v28, 7  ;;  %v10135_v53 = vadd.f32 %v2864_v62, %v13335_v38  ;;  %v13340_v62 = vld [vmem:[#allocation49_spill] sm:$0xff] }
 0x36e   : > { %9364 = vmatmul.mubr.bf16.gmra.mrb[112].mxu0 %v13197_v46  ;;  %9704 = vmatmul.mubr.bf16.gmra.mrb[196].mxu1 %v13197_v46  ;;  %v3318_v22 = vrot.slane %v10134_v2, 7 }
 0x36f   : > { %v3316_v37 = vrot.slane %v10135_v53, 7  ;;  %9367 = vmatprep.mubr.bf16.mxu0 %v10906_v59  ;;  %9707 = vmatprep.mubr.bf16.mxu1 %v13336_v14  ;;  %v11901_v23 = vsel %vm3204_vm0, %v3313_v48, %v3314_v45  ;;  %v13341_v53 = vld [vmem:[#allocation50_spill] sm:$0xff] }
 0x370   : > { %13337 = vst [vmem:[#allocation37_spill] sm:$0xff] %v11901_v23  ;;  %v13343_v23 = vld [vmem:[#allocation51_spill] sm:$0xff] }
 0x371   : > { %v9153_v63 = vpop.f32.mrb[60].mxu1  ;;  %v9245_v44 = vpop.f32.mrb[232].mxu0  ;;  %v11904_v25 = vsel %vm3204_vm0, %v3314_v45, %v3316_v37  ;;  %v13344_v37 = vld [vmem:[#allocation14_spill] sm:$0xff] }
 0x372   : > { %13338 = vst [vmem:[#allocation38_spill] sm:$0xff] %v11904_v25  ;;  %v2876_v11 = vpop.f32.mrb[61].mxu1  ;;  %v11906_v28 = vpop.f32.mrb[233].mxu0 }
 0x373   : > { %13339 = vst [vmem:[#allocation39_spill] sm:$0xff] %v11906_v28  ;;  %v10136_v38 = vadd.f32 %v2876_v11, %v13340_v62  ;;  %v9154_v51 = vpop.f32.mrb[62].mxu1  ;;  %v9246_v3 = vpop.f32.mrb[234].mxu0 }
 0x374   : > { %v10137_v16 = vadd.f32 %v9154_v51, %v13341_v53  ;;  %v2879_v56 = vpop.f32.mrb[63].mxu1  ;;  %v11910_v4 = vpop.f32.mrb[235].mxu0 }
 0x375   : > { %13342 = vst [vmem:[#allocation3_spill] sm:$0xff] %v11910_v4  ;;  %v3319_v48 = vrot.slane %v10136_v38, 7  ;;  %v10138_v63 = vadd.f32 %v2879_v56, %v13343_v23  ;;  %v13348_v56 = vld [vmem:[#allocation52_spill] sm:$0xff] }
 0x376   : > { %9368 = vmatmul.mubr.bf16.gmra.mrb[116].mxu0 %v13197_v46  ;;  %9708 = vmatmul.mubr.bf16.gmra.mrb[200].mxu1 %v13197_v46  ;;  %v3323_v5 = vrot.slane %v10137_v16, 7 }
 0x377   : > { %v3321_v45 = vrot.slane %v10138_v63, 7  ;;  %9371 = vmatprep.mubr.bf16.mxu0 %v10903_v52  ;;  %9711 = vmatprep.mubr.bf16.mxu1 %v13344_v37  ;;  %v11918_v44 = vsel %vm3204_vm0, %v3318_v22, %v3319_v48  ;;  %v13349_v63 = vld [vmem:[#allocation53_spill] sm:$0xff] }
 0x378   : > { %13345 = vst [vmem:[#allocation40_spill] sm:$0xff] %v11918_v44  ;;  %v13351_v44 = vld [vmem:[#allocation54_spill] sm:$0xff] }
 0x379   : > { %v9157_v11 = vpop.f32.mrb[64].mxu1  ;;  %v9249_v62 = vpop.f32.mrb[236].mxu0  ;;  %v11921_v51 = vsel %vm3204_vm0, %v3319_v48, %v3321_v45  ;;  %v13352_v45 = vld [vmem:[#allocation16_spill] sm:$0xff] }
 0x37a   : > { %13346 = vst [vmem:[#allocation41_spill] sm:$0xff] %v11921_v51  ;;  %v2891_v2 = vpop.f32.mrb[65].mxu1  ;;  %v11923_v38 = vpop.f32.mrb[237].mxu0  ;;  %v10654_v62 = vld [vmem:[%s13121_s3 + $0x1c8] sm:$0xff]  }
 0x37b   : > { %13347 = vst [vmem:[#allocation42_spill] sm:$0xff] %v11923_v38  ;;  %v10139_v23 = vadd.f32 %v2891_v2, %v13348_v56  ;;  %v9158_v3 = vpop.f32.mrb[66].mxu1  ;;  %v9250_v53 = vpop.f32.mrb[238].mxu0  ;;  %9477 = vmatprep.subr.bf16.mxu0 %v10654_v62  ;;  %v13357_v51 = vld [vmem:[#allocation56_spill] sm:$0xff] }
 0x37c   : > { %v10140_v25 = vadd.f32 %v9158_v3, %v13349_v63  ;;  %v2894_v4 = vpop.f32.mrb[67].mxu1  ;;  %v11927_v28 = vpop.f32.mrb[239].mxu0  ;;  %9478 = vmatpush3.bf16.msra.mxu0 %v10654_v62  ;;  %v13356_v3 = vld [vmem:[#allocation55_spill] sm:$0xff] }
 0x37d   : > { %13350 = vst [vmem:[#allocation13_spill] sm:$0xff] %v11927_v28  ;;  %v3324_v22 = vrot.slane %v10139_v23, 7  ;;  %v10141_v11 = vadd.f32 %v2894_v4, %v13351_v44 }
 0x37e   : > { %9372 = vmatmul.mubr.bf16.gmra.mrb[120].mxu0 %v13197_v46  ;;  %9712 = vmatmul.mubr.bf16.gmra.mrb[204].mxu1 %v13197_v46 }
 0x37f   : > { %v3326_v48 = vrot.slane %v10141_v11, 7  ;;  %9375 = vmatprep.mubr.bf16.mxu0 %v10920_v12  ;;  %9715 = vmatprep.mubr.bf16.mxu1 %v13352_v45  ;;  %v11938_v2 = vsel %vm3204_vm0, %v3323_v5, %v3324_v22  ;;  %v3328_v5 = vrot.slane %v10140_v25, 7 }
 0x380   : > { %13353 = vst [vmem:[#allocation43_spill] sm:$0xff] %v11938_v2 }
 0x381   : > { %v9161_v16 = vpop.f32.mrb[68].mxu1  ;;  %v9253_v56 = vpop.f32.mrb[240].mxu0  ;;  %v11941_v4 = vsel %vm3204_vm0, %v3324_v22, %v3326_v48 }
 0x382   : > { %13354 = vst [vmem:[#allocation44_spill] sm:$0xff] %v11941_v4  ;;  %v2906_v44 = vpop.f32.mrb[69].mxu1  ;;  %v11943_v23 = vpop.f32.mrb[241].mxu0  ;;  %v13359_v56 = vld [vmem:[#allocation57_spill] sm:$0xff] }
 0x383   : > { %13355 = vst [vmem:[#allocation45_spill] sm:$0xff] %v11943_v23  ;;  %v10142_v53 = vadd.f32 %v2906_v44, %v13356_v3  ;;  %v9162_v63 = vpop.f32.mrb[70].mxu1  ;;  %v9254_v11 = vpop.f32.mrb[242].mxu0 }
 0x384   : > { %v10143_v28 = vadd.f32 %v9162_v63, %v13357_v51  ;;  %v2909_v38 = vpop.f32.mrb[71].mxu1  ;;  %v11947_v50 = vpop.f32.mrb[243].mxu0 }
 0x385   : > { %13358 = vst [vmem:[#allocation12_spill] sm:$0xff] %v11947_v50  ;;  %v3329_v16 = vrot.slane %v10142_v53, 7  ;;  %v10144_v2 = vadd.f32 %v2909_v38, %v13359_v56  ;;  %v13363_v38 = vld [vmem:[#allocation58_spill] sm:$0xff] }
 0x386   : > { %9376 = vmatmul.mubr.bf16.gmra.mrb[124].mxu0 %v13197_v46  ;;  %9716 = vmatmul.mubr.bf16.gmra.mrb[208].mxu1 %v13197_v46  ;;  %v3333_v23 = vrot.slane %v10143_v28, 7 }
 0x387   : > { %v3331_v22 = vrot.slane %v10144_v2, 7  ;;  %9379 = vmatprep.mubr.bf16.mxu0 %v10917_v8  ;;  %9719 = vmatprep.mubr.bf16.mxu1 %v11029_v47  ;;  %v11955_v48 = vsel %vm3204_vm0, %v3328_v5, %v3329_v16  ;;  %v13364_v2 = vld [vmem:[#allocation59_spill] sm:$0xff] }
 0x388   : > { %13360 = vst [vmem:[#allocation46_spill] sm:$0xff] %v11955_v48  ;;  %v13366_v48 = vld [vmem:[#allocation60_spill] sm:$0xff] }
 0x389   : > { %v9165_v51 = vpop.f32.mrb[72].mxu1  ;;  %v9257_v62 = vpop.f32.mrb[244].mxu0  ;;  %v11958_v44 = vsel %vm3204_vm0, %v3329_v16, %v3331_v22 }
 0x38a   : > { %13361 = vst [vmem:[#allocation47_spill] sm:$0xff] %v11958_v44  ;;  %v2921_v25 = vpop.f32.mrb[73].mxu1  ;;  %v11960_v3 = vpop.f32.mrb[245].mxu0 }
 0x38b   : > { %13362 = vst [vmem:[#allocation48_spill] sm:$0xff] %v11960_v3  ;;  %v10145_v53 = vadd.f32 %v2921_v25, %v13363_v38  ;;  %v9166_v63 = vpop.f32.mrb[74].mxu1  ;;  %v9258_v11 = vpop.f32.mrb[246].mxu0 }
 0x38c   : > { %v10146_v56 = vadd.f32 %v9166_v63, %v13364_v2  ;;  %v2924_v4 = vpop.f32.mrb[75].mxu1  ;;  %v11964_v50 = vpop.f32.mrb[247].mxu0  ;;  %v13371_v2 = vld [vmem:[#allocation62_spill] sm:$0xff] }
 0x38d   : > { %13365 = vst [vmem:[#allocation15_spill] sm:$0xff] %v11964_v50  ;;  %v3334_v5 = vrot.slane %v10145_v53, 7  ;;  %v10147_v51 = vadd.f32 %v2924_v4, %v13366_v48  ;;  %v13370_v4 = vld [vmem:[#allocation61_spill] sm:$0xff] }
 0x38e   : > { %9380 = vmatmul.mubr.bf16.gmra.mrb[128].mxu0 %v13197_v46  ;;  %9720 = vmatmul.mubr.bf16.gmra.mrb[212].mxu1 %v13197_v46  ;;  %v3338_v3 = vrot.slane %v10146_v56, 7 }
 0x38f   : > { %v3336_v16 = vrot.slane %v10147_v51, 7  ;;  %9383 = vmatprep.mubr.bf16.mxu0 %v10943_v32  ;;  %9723 = vmatprep.mubr.bf16.mxu1 %v11050_v17  ;;  %v11972_v22 = vsel %vm3204_vm0, %v3333_v23, %v3334_v5 }
 0x390   : > { %13367 = vst [vmem:[#allocation49_spill] sm:$0xff] %v11972_v22  ;;  %v13373_v22 = vld [vmem:[#allocation63_spill] sm:$0xff] }
 0x391   : > { %v9169_v62 = vpop.f32.mrb[76].mxu1  ;;  %v9261_v25 = vpop.f32.mrb[248].mxu0  ;;  %v11975_v38 = vsel %vm3204_vm0, %v3334_v5, %v3336_v16 }
 0x392   : > { %13368 = vst [vmem:[#allocation50_spill] sm:$0xff] %v11975_v38  ;;  %v2936_v28 = vpop.f32.mrb[77].mxu1  ;;  %v11977_v53 = vpop.f32.mrb[249].mxu0 }
 0x393   : > { %13369 = vst [vmem:[#allocation51_spill] sm:$0xff] %v11977_v53  ;;  %v10148_v48 = vadd.f32 %v2936_v28, %v13370_v4  ;;  %v9170_v63 = vpop.f32.mrb[78].mxu1  ;;  %v9262_v11 = vpop.f32.mrb[250].mxu0 }
 0x394   : > { %v10149_v51 = vadd.f32 %v9170_v63, %v13371_v2  ;;  %v2939_v44 = vpop.f32.mrb[79].mxu1  ;;  %v11981_v50 = vpop.f32.mrb[251].mxu0  ;;  %v13378_v2 = vld [vmem:[#allocation65_spill] sm:$0xff] }
 0x395   : > { %13372 = vst [vmem:[#allocation14_spill] sm:$0xff] %v11981_v50  ;;  %v3339_v23 = vrot.slane %v10148_v48, 7  ;;  %v10150_v62 = vadd.f32 %v2939_v44, %v13373_v22  ;;  %v13377_v44 = vld [vmem:[#allocation64_spill] sm:$0xff] }
 0x396   : > { %9384 = vmatmul.mubr.bf16.gmra.mrb[132].mxu0 %v13197_v46  ;;  %9724 = vmatmul.mubr.bf16.gmra.mrb[216].mxu1 %v13197_v46  ;;  %v3343_v53 = vrot.slane %v10149_v51, 7 }
 0x397   : > { %v3341_v5 = vrot.slane %v10150_v62, 7  ;;  %9387 = vmatprep.mubr.bf16.mxu0 %v13269_v21  ;;  %9727 = vmatprep.mubr.bf16.mxu1 %v11047_v13  ;;  %v11989_v16 = vsel %vm3204_vm0, %v3338_v3, %v3339_v23 }
 0x398   : > { %13374 = vst [vmem:[#allocation52_spill] sm:$0xff] %v11989_v16  ;;  %v13380_v16 = vld [vmem:[#allocation66_spill] sm:$0xff] }
 0x399   : > { %v9173_v25 = vpop.f32.mrb[80].mxu1  ;;  %v9265_v28 = vpop.f32.mrb[252].mxu0  ;;  %v11992_v4 = vsel %vm3204_vm0, %v3339_v23, %v3341_v5 }
 0x39a   : > { %13375 = vst [vmem:[#allocation53_spill] sm:$0xff] %v11992_v4  ;;  %v2951_v56 = vpop.f32.mrb[81].mxu1  ;;  %v11994_v48 = vpop.f32.mrb[253].mxu0 }
 0x39b   : > { %13376 = vst [vmem:[#allocation54_spill] sm:$0xff] %v11994_v48  ;;  %v10151_v22 = vadd.f32 %v2951_v56, %v13377_v44  ;;  %v9174_v63 = vpop.f32.mrb[82].mxu1  ;;  %v9266_v11 = vpop.f32.mrb[254].mxu0 }
 0x39c   : > { %v10152_v62 = vadd.f32 %v9174_v63, %v13378_v2  ;;  %v2954_v38 = vpop.f32.mrb[83].mxu1  ;;  %v11998_v50 = vpop.f32.mrb[255].mxu0  ;;  %v13385_v2 = vld [vmem:[#allocation68_spill] sm:$0xff] }
 0x39d   : > { %13379 = vst [vmem:[#allocation16_spill] sm:$0xff] %v11998_v50  ;;  %v3344_v3 = vrot.slane %v10151_v22, 7  ;;  %v10153_v25 = vadd.f32 %v2954_v38, %v13380_v16  ;;  %v13384_v38 = vld [vmem:[#allocation67_spill] sm:$0xff] }
 0x39e   : > { %9388 = vmatmul.mubr.bf16.gmra.mrb[136].mxu0 %v13197_v46  ;;  %9728 = vmatmul.mubr.bf16.gmra.mrb[220].mxu1 %v13197_v46  ;;  %v3348_v48 = vrot.slane %v10152_v62, 7 }
 0x39f   : > { %v3346_v23 = vrot.slane %v10153_v25, 7  ;;  %9391 = vmatprep.mubr.bf16.mxu0 %v13276_v36  ;;  %9731 = vmatprep.mubr.bf16.mxu1 %v11062_v43  ;;  %v12006_v5 = vsel %vm3204_vm0, %v3343_v53, %v3344_v3 }
 0x3a0   : > { %13381 = vst [vmem:[#allocation55_spill] sm:$0xff] %v12006_v5  ;;  %v13387_v5 = vld [vmem:[#allocation69_spill] sm:$0xff] }
 0x3a1   : > { %v9177_v28 = vpop.f32.mrb[84].mxu1  ;;  %v9269_v56 = vpop.f32.mrb[0].mxu0  ;;  %v12009_v44 = vsel %vm3204_vm0, %v3344_v3, %v3346_v23  ;;  %v10656_v3 = vld [vmem:[%s13121_s3 + $0x1d0] sm:$0xff]  }
 0x3a2   : > { %13382 = vst [vmem:[#allocation56_spill] sm:$0xff] %v12009_v44  ;;  %v2966_v51 = vpop.f32.mrb[85].mxu1  ;;  %v12011_v22 = vpop.f32.mrb[1].mxu0  ;;  %9479 = vmatprep.subr.bf16.mxu0 %v10656_v3 }
 0x3a3   : > { %13383 = vst [vmem:[#allocation57_spill] sm:$0xff] %v12011_v22  ;;  %v10154_v16 = vadd.f32 %v2966_v51, %v13384_v38  ;;  %v9178_v63 = vpop.f32.mrb[86].mxu1  ;;  %v9270_v11 = vpop.f32.mrb[2].mxu0  ;;  %9480 = vmatpush3.bf16.msra.mxu0 %v10656_v3 }
 0x3a4   : > { %v10155_v25 = vadd.f32 %v9178_v63, %v13385_v2  ;;  %v2969_v4 = vpop.f32.mrb[87].mxu1  ;;  %v12015_v50 = vpop.f32.mrb[3].mxu0 }
 0x3a5   : > { %13386 = vst [vmem:[#allocation58_spill] sm:$0xff] %v12015_v50  ;;  %v3349_v53 = vrot.slane %v10154_v16, 7  ;;  %v10156_v28 = vadd.f32 %v2969_v4, %v13387_v5  ;;  %v13391_v16 = vld [vmem:[#allocation70_spill] sm:$0xff] }
 0x3a6   : > { %9392 = vmatmul.mubr.bf16.gmra.mrb[140].mxu0 %v13197_v46  ;;  %9732 = vmatmul.mubr.bf16.gmra.mrb[224].mxu1 %v13197_v46 }
 0x3a7   : > { %v3351_v23 = vrot.slane %v10156_v28, 7  ;;  %9395 = vmatprep.mubr.bf16.mxu0 %v13283_v55  ;;  %9735 = vmatprep.mubr.bf16.mxu1 %v11059_v39  ;;  %v12026_v56 = vsel %vm3204_vm0, %v3348_v48, %v3349_v53  ;;  %v13392_v28 = vld [vmem:[#allocation71_spill] sm:$0xff]  ;;  %v3353_v48 = vrot.slane %v10155_v25, 7 }
 0x3a8   : > { %13388 = vst [vmem:[#allocation59_spill] sm:$0xff] %v12026_v56 }
 0x3a9   : > { %v9181_v62 = vpop.f32.mrb[88].mxu1  ;;  %v9273_v51 = vpop.f32.mrb[4].mxu0  ;;  %v12029_v4 = vsel %vm3204_vm0, %v3349_v53, %v3351_v23 }
 0x3aa   : > { %13389 = vst [vmem:[#allocation60_spill] sm:$0xff] %v12029_v4  ;;  %v2981_v5 = vpop.f32.mrb[89].mxu1  ;;  %v12031_v38 = vpop.f32.mrb[5].mxu0  ;;  %v13394_v62 = vld [vmem:[#allocation72_spill] sm:$0xff] }
 0x3ab   : > { %13390 = vst [vmem:[#allocation61_spill] sm:$0xff] %v12031_v38  ;;  %v10157_v63 = vadd.f32 %v2981_v5, %v13391_v16  ;;  %v9182_v11 = vpop.f32.mrb[90].mxu1  ;;  %v9274_v2 = vpop.f32.mrb[6].mxu0 }
 0x3ac   : > { %v10158_v44 = vadd.f32 %v9182_v11, %v13392_v28  ;;  %v2984_v50 = vpop.f32.mrb[91].mxu1  ;;  %v12035_v22 = vpop.f32.mrb[7].mxu0 }
 0x3ad   : > { %13393 = vst [vmem:[#allocation62_spill] sm:$0xff] %v12035_v22  ;;  %v3354_v56 = vrot.slane %v10157_v63, 7  ;;  %v10159_v51 = vadd.f32 %v2984_v50, %v13394_v62  ;;  %v13397_v50 = vld [vmem:[#allocation73_spill] sm:$0xff]  ;;  %v13398_v62 = vld [vmem:[#allocation74_spill] sm:$0xff] }
 0x3ae   : > { %9396 = vmatmul.mubr.bf16.gmra.mrb[144].mxu0 %v13197_v46  ;;  %9736 = vmatmul.mubr.bf16.gmra.mrb[228].mxu1 %v13197_v46  ;;  %v3358_v38 = vrot.slane %v10158_v44, 7 }
 0x3af   : > { %v3356_v53 = vrot.slane %v10159_v51, 7  ;;  %9399 = vmatprep.mubr.bf16.mxu0 %v13290_v1  ;;  %9739 = vmatprep.mubr.bf16.mxu1 %v11074_v15  ;;  %v12043_v3 = vsel %vm3204_vm0, %v3353_v48, %v3354_v56 }
 0x3b0   : > { %13395 = vst [vmem:[#allocation63_spill] sm:$0xff] %v12043_v3  ;;  %v13399_v3 = vld [vmem:[#allocation75_spill] sm:$0xff] }
 0x3b1   : > { %v9185_v23 = vpop.f32.mrb[92].mxu1  ;;  %v9277_v5 = vpop.f32.mrb[8].mxu0  ;;  %v12046_v16 = vsel %vm3204_vm0, %v3354_v56, %v3356_v53 }
 0x3b2   : > { %13396 = vst [vmem:[#allocation64_spill] sm:$0xff] %v12046_v16  ;;  %v2996_v25 = vpop.f32.mrb[93].mxu1  ;;  %v12048_v63 = vpop.f32.mrb[9].mxu0 }
 0x3b3   : > { %v10160_v11 = vadd.f32 %v2996_v25, %v13397_v50  ;;  %v9186_v2 = vpop.f32.mrb[94].mxu1  ;;  %v9278_v28 = vpop.f32.mrb[10].mxu0  ;;  %v13401_v25 = vld [vmem:[#allocation76_spill] sm:$0xff] }
 0x3b4   : > { %v10161_v51 = vadd.f32 %v9186_v2, %v13398_v62  ;;  %v2999_v4 = vpop.f32.mrb[95].mxu1  ;;  %v12052_v22 = vpop.f32.mrb[11].mxu0  ;;  %v13402_v50 = vrot.slane %v13401_v25, 7  ;;  %v10662_v25 = vld [vmem:[%s13121_s3 + $0x1f0] sm:$0xff]  }
 0x3b5   : > { %v3359_v48 = vrot.slane %v10160_v11, 7  ;;  %v10162_v23 = vadd.f32 %v2999_v4, %v13399_v3  ;;  %v10658_v4 = vld [vmem:[%s13121_s3 + $0x1d8] sm:$0xff]  }
 0x3b6   : > { %v3107_v5 = vrot.slane %v10161_v51, 7  ;;  %9400 = vmatmul.mubr.bf16.gmra.mrb[148].mxu0 %v13197_v46  ;;  %9740 = vmatmul.mubr.bf16.gmra.mrb[232].mxu1 %v13197_v46 }
 0x3b7   : > { %v3361_v56 = vrot.slane %v10162_v23, 7  ;;  %9403 = vmatprep.mubr.bf16.mxu0 %v13296_v24  ;;  %9743 = vmatprep.mubr.bf16.mxu1 %v11071_v7  ;;  %v12060_v53 = vsel %vm3204_vm0, %v3358_v38, %v3359_v48  ;;  %v10659_v38 = vld [vmem:[%s13121_s3 + $0x1e0] sm:$0xff]  }
 0x3b8   : > { %13400 = vst [vmem:[#allocation65_spill] sm:$0xff] %v12060_v53  ;;  %v12065_v44 = vsel %vm3204_vm0, %v3107_v5, %v13402_v50  ;;  %9481 = vmatprep.subr.bf16.mxu0 %v10658_v4 }
 0x3b9   : > { %13403 = vst [vmem:[#allocation66_spill] sm:$0xff] %v12065_v44  ;;  %v9281_v11 = vpop.f32.mrb[12].mxu0  ;;  %v12071_v3 = vsel %vm3204_vm0, %v3359_v48, %v3361_v56  ;;  %9482 = vmatpush3.bf16.msra.mxu0 %v10658_v4  ;;  %v10660_v48 = vld [vmem:[%s13121_s3 + $0x1e8] sm:$0xff]  }
 0x3ba   : > { %13404 = vst [vmem:[#allocation67_spill] sm:$0xff] %v12071_v3  ;;  %v12073_v2 = vpop.f32.mrb[13].mxu0  ;;  %9483 = vmatprep.subr.bf16.mxu0 %v10659_v38  ;;  %v10663_v11 = vld [vmem:[%s13121_s3 + $0x1f8] sm:$0xff]  }
 0x3bb   : > { %v9282_v28 = vpop.f32.mrb[14].mxu0 }
 0x3bc   : > { %v12075_v62 = vpop.f32.mrb[15].mxu0 }
 0x3bd   : > { %9484 = vmatpush3.bf16.msra.mxu0 %v10659_v38 }
 0x3be   : > { %9404 = vmatmul.mubr.bf16.gmra.mrb[152].mxu0 %v13197_v46  ;;  %9744 = vmatmul.mubr.bf16.gmra.mrb[236].mxu1 %v13197_v46 }
 0x3bf   : > { %9407 = vmatprep.mubr.bf16.mxu0 %v13303_v61  ;;  %9747 = vmatprep.mubr.bf16.mxu1 %v13268_v20 }
 0x3c0   : > { %9485 = vmatprep.subr.bf16.mxu0 %v10660_v48 }
 0x3c1   : > { %v9285_v51 = vpop.f32.mrb[16].mxu0  ;;  %9486 = vmatpush3.bf16.msra.mxu0 %v10660_v48 }
 0x3c2   : > { %v12087_v23 = vpop.f32.mrb[17].mxu0  ;;  %9487 = vmatprep.subr.bf16.mxu0 %v10662_v25 }
 0x3c3   : > { %v9286_v5 = vpop.f32.mrb[18].mxu0 }
 0x3c4   : > { %v12089_v56 = vpop.f32.mrb[19].mxu0 }
 0x3c5   : > { %9488 = vmatpush3.bf16.msra.mxu0 %v10662_v25 }
 0x3c6   : > { %9408 = vmatmul.mubr.bf16.gmra.mrb[156].mxu0 %v13197_v46  ;;  %9748 = vmatmul.mubr.bf16.gmra.mrb[240].mxu1 %v13197_v46 }
 0x3c7   : > { %9751 = vmatprep.mubr.bf16.mxu1 %v13275_v27  ;;  %9411 = vmatprep.mubr.bf16.mxu0 %v13197_v46 }
 0x3c8   : > { %9489 = vmatprep.subr.bf16.mxu0 %v10663_v11 }
 0x3c9   : > { %v9289_v50 = vpop.f32.mrb[20].mxu0  ;;  %9490 = vmatpush3.bf16.msra.mxu0 %v10663_v11 }
 0x3ca   : > { %v12101_v4 = vpop.f32.mrb[21].mxu0 }
 0x3cb   : > { %v9290_v28 = vpop.f32.mrb[22].mxu0 }
 0x3cc   : > { %v12103_v38 = vpop.f32.mrb[23].mxu0 }
 0x3ce   : > { %9412 = vmatmul.mubr.bf16.gmra.mrb[160].mxu0 %v13197_v46  ;;  %9752 = vmatmul.mubr.bf16.gmra.mrb[244].mxu1 %v13197_v46 }
 0x3cf   : > { %9415 = vmatprep.mubr.bf16.mxu0 %v13320_v34  ;;  %9755 = vmatprep.mubr.bf16.mxu1 %v13282_v58 }
 0x3d1   : > { %v9293_v51 = vpop.f32.mrb[24].mxu0 }
 0x3d2   : > { %v12109_v48 = vpop.f32.mrb[25].mxu0 }
 0x3d3   : > { %v9294_v5 = vpop.f32.mrb[26].mxu0 }
 0x3d4   : > { %v12111_v25 = vpop.f32.mrb[27].mxu0 }
 0x3d6   : > { %9416 = vmatmul.mubr.bf16.gmra.mrb[164].mxu0 %v13197_v46  ;;  %9756 = vmatmul.mubr.bf16.gmra.mrb[248].mxu1 %v13197_v46 }
 0x3d7   : > { %9419 = vmatprep.mubr.bf16.mxu0 %v13328_v19  ;;  %9759 = vmatprep.mubr.bf16.mxu1 %v13289_v26 }
 0x3d9   : > { %v9297_v50 = vpop.f32.mrb[28].mxu0 }
 0x3da   : > { %v12117_v11 = vpop.f32.mrb[29].mxu0  ;;  %v10655_v50 = vld [vmem:[%s13121_s3 + $0x208] sm:$0xff]  }
 0x3db   : > { %v9298_v28 = vpop.f32.mrb[30].mxu0 }
 0x3dc   : > { %v12119_v3 = vpop.f32.mrb[31].mxu0 }
 0x3de   : > { %9420 = vmatmul.mubr.bf16.gmra.mrb[168].mxu0 %v13197_v46  ;;  %9760 = vmatmul.mubr.bf16.gmra.mrb[252].mxu1 %v13197_v46 }
 0x3df   : > { %9423 = vmatprep.mubr.bf16.mxu0 %v13336_v14  ;;  %9779 = vmatprep.mubr.bf16.mxu1 %v13197_v46 }
 0x3e1   : > { %v9301_v51 = vpop.f32.mrb[32].mxu0 }
 0x3e2   : > { %v12125_v5 = vpop.f32.mrb[33].mxu0 }
 0x3e3   : > { %v9302_v53 = vpop.f32.mrb[34].mxu0 }
 0x3e4   : > { %v12127_v16 = vpop.f32.mrb[35].mxu0  ;;  %v10657_v53 = vld [vmem:[%s13121_s3 + $0x210] sm:$0xff]  }
 0x3e5   : > { %13405 = vst [vmem:[#allocation68_spill] sm:$0xff] %v12127_v16 }
 0x3e6   : > { %9424 = vmatmul.mubr.bf16.gmra.mrb[172].mxu0 %v13197_v46  ;;  %9780 = vmatmul.mubr.bf16.vlgmr.msra.gmra.mrb[128].mxu1 %v13197_v46 }
 0x3e7   : > { %9908 = vmatpush3.bf16.msra.mxu1 %v11863_v9  ;;  %9427 = vmatprep.mubr.bf16.mxu0 %v13344_v37  ;;  %v10661_v9 = vld [vmem:[%s13121_s3 + $0x218] sm:$0xff]  }
 0x3e8   : > { %9783 = vmatprep.mubr.bf16.mxu1 %v13302_v10  ;;  %9909 = vmatprep.subr.bf16.mxu1 %v10655_v50 }
 0x3e9   : > { %v9305_v28 = vpop.f32.mrb[36].mxu0 }
 0x3ea   : > { %v12140_v51 = vpop.f32.mrb[37].mxu0 }
 0x3eb   : > { %13406 = vst [vmem:[#allocation69_spill] sm:$0xff] %v12140_v51  ;;  %9910 = vmatpush3.bf16.msra.mxu1 %v10655_v50  ;;  %v9306_v26 = vpop.f32.mrb[38].mxu0 }
 0x3ec   : > { %v12142_v44 = vpop.f32.mrb[39].mxu0  ;;  %9911 = vmatprep.subr.bf16.mxu1 %v10657_v53  ;;  %v10664_v26 = vld [vmem:[%s13121_s3 + $0x220] sm:$0xff]  }
 0x3ed   : > { %13407 = vst [vmem:[#allocation70_spill] sm:$0xff] %v12142_v44 }
 0x3ee   : > { %9428 = vmatmul.mubr.bf16.gmra.mrb[176].mxu0 %v13197_v46  ;;  %9784 = vmatmul.mubr.bf16.gmra.mrb[132].mxu1 %v13197_v46 }
 0x3ef   : > { %9431 = vmatprep.mubr.bf16.mxu0 %v13352_v45  ;;  %9787 = vmatprep.mubr.bf16.mxu1 %v13311_v42 }
 0x3f0   : > { %9912 = vmatpush3.bf16.msra.mxu1 %v10657_v53 }
 0x3f1   : > { %v9309_v10 = vpop.f32.mrb[40].mxu0  ;;  %9913 = vmatprep.subr.bf16.mxu1 %v10661_v9 }
 0x3f2   : > { %v12154_v50 = vpop.f32.mrb[41].mxu0 }
 0x3f3   : > { %13408 = vst [vmem:[#allocation71_spill] sm:$0xff] %v12154_v50  ;;  %v9310_v28 = vpop.f32.mrb[42].mxu0 }
 0x3f4   : > { %v12156_v44 = vpop.f32.mrb[43].mxu0  ;;  %9914 = vmatpush3.bf16.msra.mxu1 %v10661_v9 }
 0x3f5   : > { %13409 = vst [vmem:[#allocation72_spill] sm:$0xff] %v12156_v44  ;;  %9915 = vmatprep.subr.bf16.mxu1 %v10664_v26 }
 0x3f6   : > { %9432 = vmatmul.mubr.bf16.gmra.mrb[180].mxu0 %v13197_v46  ;;  %9788 = vmatmul.mubr.bf16.gmra.mrb[136].mxu1 %v13197_v46 }
 0x3f7   : > { %9435 = vmatprep.mubr.bf16.mxu0 %v11029_v47  ;;  %9791 = vmatprep.mubr.bf16.mxu1 %v10892_v33 }
 0x3f8   : > { %9916 = vmatpush3.bf16.msra.mxu1 %v10664_v26 }
 0x3f9   : > { %v9313_v53 = vpop.f32.mrb[44].mxu0 }
 0x3fa   : > { %v12162_v10 = vpop.f32.mrb[45].mxu0 }
 0x3fb   : > { %13410 = vst [vmem:[#allocation73_spill] sm:$0xff] %v12162_v10  ;;  %v9314_v51 = vpop.f32.mrb[46].mxu0 }
 0x3fc   : > { %v12164_v16 = vpop.f32.mrb[47].mxu0  ;;  %v10665_v51 = vld [vmem:[%s13121_s3 + $0x228] sm:$0xff]  }
 0x3fd   : > { %13411 = vst [vmem:[#allocation74_spill] sm:$0xff] %v12164_v16  ;;  %9917 = vmatprep.subr.bf16.mxu1 %v10665_v51 }
 0x3fe   : > { %9436 = vmatmul.mubr.bf16.gmra.mrb[184].mxu0 %v13197_v46  ;;  %9792 = vmatmul.mubr.bf16.gmra.mrb[140].mxu1 %v13197_v46 }
 0x3ff   : > { %9439 = vmatprep.mubr.bf16.mxu0 %v11050_v17  ;;  %9795 = vmatprep.mubr.bf16.mxu1 %v10889_v30 }
 0x400   : > { %9918 = vmatpush3.bf16.msra.mxu1 %v10665_v51 }
 0x401   : > { %v9317_v9 = vpop.f32.mrb[48].mxu0 }
 0x402   : > { %v12170_v28 = vpop.f32.mrb[49].mxu0 }
 0x403   : > { %13412 = vst [vmem:[#allocation75_spill] sm:$0xff] %v12170_v28  ;;  %v9318_v44 = vpop.f32.mrb[50].mxu0 }
 0x404   : > { %v12172_v50 = vpop.f32.mrb[51].mxu0 }
 0x405   : > { %13413 = vst [vmem:[#allocation76_spill] sm:$0xff] %v12172_v50 }
 0x406   : > { %9440 = vmatmul.mubr.bf16.gmra.mrb[188].mxu0 %v13197_v46  ;;  %9796 = vmatmul.mubr.bf16.gmra.mrb[144].mxu1 %v13197_v46 }
 0x407   : > { %9443 = vmatprep.mubr.bf16.mxu0 %v11047_v13  ;;  %9799 = vmatprep.mubr.bf16.mxu1 %v10906_v59 }
 0x409   : > { %v9321_v26 = vpop.f32.mrb[52].mxu0 }
 0x40a   : > { %v12181_v53 = vpop.f32.mrb[53].mxu0 }
 0x40b   : > { %v9322_v44 = vpop.f32.mrb[54].mxu0 }
 0x40c   : > { %v12183_v9 = vpop.f32.mrb[55].mxu0 }
 0x40d   : > { %13414 = vst [vmem:[#allocation102_spill] sm:$0xff] %v12183_v9 }
 0x40e   : > { %9444 = vmatmul.mubr.bf16.gmra.mrb[64].mxu0 %v13197_v46  ;;  %9800 = vmatmul.mubr.bf16.gmra.mrb[148].mxu1 %v13197_v46 }
 0x40f   : > { %9447 = vmatprep.mubr.bf16.mxu0 %v11062_v43  ;;  %9803 = vmatprep.mubr.bf16.mxu1 %v10903_v52 }
 0x411   : > { %v9325_v50 = vpop.f32.mrb[56].mxu0 }
 0x412   : > { %v12189_v28 = vpop.f32.mrb[57].mxu0 }
 0x413   : > { %13415 = vst [vmem:[#allocation103_spill] sm:$0xff] %v12189_v28  ;;  %v9326_v16 = vpop.f32.mrb[58].mxu0 }
 0x414   : > { %v12191_v10 = vpop.f32.mrb[59].mxu0 }
 0x415   : > { %13416 = vst [vmem:[#allocation104_spill] sm:$0xff] %v12191_v10 }
 0x416   : > { %9448 = vmatmul.mubr.bf16.gmra.mrb[68].mxu0 %v13197_v46  ;;  %9804 = vmatmul.mubr.bf16.gmra.mrb[152].mxu1 %v13197_v46 }
 0x417   : > { %9451 = vmatprep.mubr.bf16.mxu0 %v11059_v39  ;;  %9807 = vmatprep.mubr.bf16.mxu1 %v10920_v12 }
 0x419   : > { %v9329_v51 = vpop.f32.mrb[60].mxu0 }
 0x41a   : > { %v12197_v26 = vpop.f32.mrb[61].mxu0 }
 0x41b   : > { %13417 = vst [vmem:[#allocation105_spill] sm:$0xff] %v12197_v26  ;;  %v9330_v44 = vpop.f32.mrb[62].mxu0 }
 0x41c   : > { %v12199_v9 = vpop.f32.mrb[63].mxu0  ;;  %v10666_v44 = vld [vmem:[%s13121_s3 + $0x230] sm:$0xff]  }
 0x41d   : > { %9919 = vmatprep.subr.bf16.mxu1 %v10666_v44 }
 0x41e   : > { %9452 = vmatmul.mubr.bf16.gmra.mrb[72].mxu0 %v13197_v46  ;;  %9808 = vmatmul.mubr.bf16.gmra.mrb[156].mxu1 %v13197_v46 }
 0x41f   : > { %9455 = vmatprep.mubr.bf16.mxu0 %v11074_v15  ;;  %9811 = vmatprep.mubr.bf16.mxu1 %v10917_v8 }
 0x420   : > { %9920 = vmatpush3.bf16.msra.mxu1 %v10666_v44 }
 0x421   : > { %v9349_v16 = vpop.f32.mrb[96].mxu0 }
 0x422   : > { %v4073_v50 = vpop.f32.mrb[97].mxu0 }
 0x423   : > { %v12206_v10 = vadd.f32 %v4073_v50, %v11722_v18  ;;  %v9350_v28 = vpop.f32.mrb[98].mxu0 }
 0x424   : > { %v4076_v51 = vpop.f32.mrb[99].mxu0 }
 0x425   : > { %v12209_v26 = vadd.f32 %v4076_v51, %v11726_v49 }
 0x426   : > { %9456 = vmatmul.mubr.bf16.gmra.mrb[76].mxu0 %v13197_v46  ;;  %9812 = vmatmul.mubr.bf16.gmra.mrb[160].mxu1 %v13197_v46 }
 0x427   : > { %13418 = vst [vmem:[#allocation106_spill] sm:$0xff] %v12209_v26  ;;  %9459 = vmatprep.mubr.bf16.mxu0 %v11071_v7  ;;  %9815 = vmatprep.mubr.bf16.mxu1 %v10943_v32 }
 0x429   : > { %v9353_v18 = vpop.f32.mrb[100].mxu0 }
 0x42a   : > { %v4087_v28 = vpop.f32.mrb[101].mxu0 }
 0x42b   : > { %v12219_v16 = vadd.f32 %v4087_v28, %v11741_v41  ;;  %v9354_v49 = vpop.f32.mrb[102].mxu0 }
 0x42c   : > { %v4090_v50 = vpop.f32.mrb[103].mxu0 }
 0x42d   : > { %v12222_v51 = vadd.f32 %v4090_v50, %v11745_v54 }
 0x42e   : > { %9460 = vmatmul.mubr.bf16.gmra.mrb[80].mxu0 %v13197_v46  ;;  %9816 = vmatmul.mubr.bf16.gmra.mrb[164].mxu1 %v13197_v46 }
 0x42f   : > { %9463 = vmatprep.mubr.bf16.mxu0 %v13268_v20  ;;  %9819 = vmatprep.mubr.bf16.mxu1 %v13269_v21 }
 0x431   : > { %v9357_v26 = vpop.f32.mrb[104].mxu0 }
 0x432   : > { %v4101_v18 = vpop.f32.mrb[105].mxu0 }
 0x433   : > { %v12229_v44 = vadd.f32 %v4101_v18, %v11758_v0  ;;  %v9358_v41 = vpop.f32.mrb[106].mxu0 }
 0x434   : > { %v4104_v28 = vpop.f32.mrb[107].mxu0 }
 0x435   : > { %v12232_v49 = vadd.f32 %v4104_v28, %v11762_v29 }
 0x436   : > { %9464 = vmatmul.mubr.bf16.gmra.mrb[84].mxu0 %v13197_v46  ;;  %9820 = vmatmul.mubr.bf16.gmra.mrb[168].mxu1 %v13197_v46 }
 0x437   : > { %9467 = vmatprep.mubr.bf16.mxu0 %v13275_v27  ;;  %9823 = vmatprep.mubr.bf16.mxu1 %v13276_v36 }
 0x439   : > { %v9361_v54 = vpop.f32.mrb[108].mxu0 }
 0x43a   : > { %v4115_v50 = vpop.f32.mrb[109].mxu0 }
 0x43b   : > { %v12239_v26 = vadd.f32 %v4115_v50, %v11775_v57  ;;  %v9362_v0 = vpop.f32.mrb[110].mxu0 }
 0x43c   : > { %v4118_v18 = vpop.f32.mrb[111].mxu0 }
 0x43d   : > { %v12242_v41 = vadd.f32 %v4118_v18, %v11779_v31  ;;  %v10667_v31 = vld [vmem:[%s13121_s3 + $0x238] sm:$0xff]  }
 0x43e   : > { %9468 = vmatmul.mubr.bf16.gmra.mrb[88].mxu0 %v13197_v46  ;;  %9824 = vmatmul.mubr.bf16.gmra.mrb[172].mxu1 %v13197_v46 }
 0x43f   : > { %9471 = vmatprep.mubr.bf16.mxu0 %v13282_v58  ;;  %9827 = vmatprep.mubr.bf16.mxu1 %v13283_v55 }
 0x440   : > { %9921 = vmatprep.subr.bf16.mxu1 %v10667_v31 }
 0x441   : > { %v9365_v29 = vpop.f32.mrb[112].mxu0  ;;  %9922 = vmatpush3.bf16.msra.mxu1 %v10667_v31  ;;  %v13422_v31 = vld [vmem:[#allocation6_spill] sm:$0xff] }
 0x442   : > { %v4129_v28 = vpop.f32.mrb[113].mxu0 }
 0x443   : > { %v12249_v54 = vadd.f32 %v4129_v28, %v11795_v6  ;;  %v9366_v57 = vpop.f32.mrb[114].mxu0 }
 0x444   : > { %v4132_v50 = vpop.f32.mrb[115].mxu0 }
 0x445   : > { %v12252_v0 = vadd.f32 %v4132_v50, %v11799_v35 }
 0x446   : > { %9472 = vmatmul.mubr.bf16.gmra.mrb[92].mxu0 %v13197_v46  ;;  %9828 = vmatmul.mubr.bf16.gmra.mrb[176].mxu1 %v13197_v46 }
 0x447   : > { %13419 = vst [vmem:[#allocation107_spill] sm:$0xff] %v12252_v0  ;;  %9491 = vmatprep.mubr.bf16.mxu0 %v13311_v42  ;;  %9831 = vmatprep.mubr.bf16.mxu1 %v13290_v1 }
 0x449   : > { %v9369_v6 = vpop.f32.mrb[116].mxu0 }
 0x44a   : > { %v4143_v18 = vpop.f32.mrb[117].mxu0 }
 0x44b   : > { %v12262_v29 = vadd.f32 %v4143_v18, %v11812_v60  ;;  %v9370_v35 = vpop.f32.mrb[118].mxu0 }
 0x44c   : > { %v4146_v28 = vpop.f32.mrb[119].mxu0  ;;  %v13424_v35 = vld [vmem:[#allocation28_spill] sm:$0xff] }
 0x44d   : > { %13420 = vst [vmem:[#allocation108_spill] sm:$0xff] %v12262_v29  ;;  %v12265_v57 = vadd.f32 %v4146_v28, %v11816_v40 }
 0x44e   : > { %9492 = vmatmul.mubr.bf16.vlgmr.msra.gmra.mrb[192].mxu0 %v13197_v46  ;;  %9832 = vmatmul.mubr.bf16.gmra.mrb[180].mxu1 %v13197_v46 }
 0x44f   : > { %13421 = vst [vmem:[#allocation109_spill] sm:$0xff] %v12265_v57  ;;  %9495 = vmatprep.mubr.bf16.mxu0 %v10892_v33  ;;  %9835 = vmatprep.mubr.bf16.mxu1 %v13296_v24 }
 0x451   : > { %v9373_v50 = vpop.f32.mrb[120].mxu0 }
 0x452   : > { %v4157_v6 = vpop.f32.mrb[121].mxu0  ;;  %v13426_v50 = vld [vmem:[#allocation9_spill] sm:$0xff] }
 0x453   : > { %v12272_v0 = vadd.f32 %v4157_v6, %v13422_v31  ;;  %v9374_v60 = vpop.f32.mrb[122].mxu0 }
 0x454   : > { %v4160_v18 = vpop.f32.mrb[123].mxu0  ;;  %v13428_v60 = vld [vmem:[#allocation31_spill] sm:$0xff] }
 0x455   : > { %13423 = vst [vmem:[#allocation6_spill] sm:$0xff] %v12272_v0  ;;  %v12275_v29 = vadd.f32 %v4160_v18, %v13424_v35 }
 0x456   : > { %9496 = vmatmul.mubr.bf16.gmra.mrb[196].mxu0 %v13197_v46  ;;  %9836 = vmatmul.mubr.bf16.gmra.mrb[184].mxu1 %v13197_v46 }
 0x457   : > { %13425 = vst [vmem:[#allocation28_spill] sm:$0xff] %v12275_v29  ;;  %9499 = vmatprep.mubr.bf16.mxu0 %v10889_v30  ;;  %9839 = vmatprep.mubr.bf16.mxu1 %v13303_v61 }
 0x459   : > { %v9377_v40 = vpop.f32.mrb[124].mxu0 }
 0x45a   : > { %v4171_v28 = vpop.f32.mrb[125].mxu0  ;;  %v13430_v40 = vld [vmem:[#allocation8_spill] sm:$0xff] }
 0x45b   : > { %v12282_v57 = vadd.f32 %v4171_v28, %v13426_v50  ;;  %v9378_v6 = vpop.f32.mrb[126].mxu0 }
 0x45c   : > { %v4174_v31 = vpop.f32.mrb[127].mxu0  ;;  %v13432_v6 = vld [vmem:[#allocation34_spill] sm:$0xff] }
 0x45d   : > { %13427 = vst [vmem:[#allocation9_spill] sm:$0xff] %v12282_v57  ;;  %v12285_v0 = vadd.f32 %v4174_v31, %v13428_v60 }
 0x45e   : > { %9500 = vmatmul.mubr.bf16.gmra.mrb[200].mxu0 %v13197_v46  ;;  %9840 = vmatmul.mubr.bf16.gmra.mrb[188].mxu1 %v13197_v46 }
 0x45f   : > { %13429 = vst [vmem:[#allocation31_spill] sm:$0xff] %v12285_v0  ;;  %9503 = vmatprep.mubr.bf16.mxu0 %v10906_v59  ;;  %9843 = vmatprep.mubr.bf16.mxu1 %v13197_v46 }
 0x461   : > { %v9381_v18 = vpop.f32.mrb[128].mxu0 }
 0x462   : > { %v4185_v35 = vpop.f32.mrb[129].mxu0  ;;  %v13433_v18 = vld [vmem:[#allocation4_spill] sm:$0xff] }
 0x463   : > { %v12292_v29 = vadd.f32 %v4185_v35, %v13430_v40  ;;  %v9382_v28 = vpop.f32.mrb[130].mxu0 }
 0x464   : > { %v4188_v50 = vpop.f32.mrb[131].mxu0  ;;  %v13435_v28 = vld [vmem:[#allocation11_spill] sm:$0xff] }
 0x465   : > { %13431 = vst [vmem:[#allocation8_spill] sm:$0xff] %v12292_v29  ;;  %v12295_v57 = vadd.f32 %v4188_v50, %v13432_v6  ;;  %v13437_v6 = vld [vmem:[#allocation39_spill] sm:$0xff] }
 0x466   : > { %9504 = vmatmul.mubr.bf16.gmra.mrb[204].mxu0 %v13197_v46  ;;  %9844 = vmatmul.mubr.bf16.gmra.mrb[192].mxu1 %v13197_v46 }
 0x467   : > { %9507 = vmatprep.mubr.bf16.mxu0 %v10903_v52  ;;  %9847 = vmatprep.mubr.bf16.mxu1 %v13320_v34 }
 0x469   : > { %v9385_v31 = vpop.f32.mrb[132].mxu0 }
 0x46a   : > { %v4199_v60 = vpop.f32.mrb[133].mxu0 }
 0x46b   : > { %v12302_v0 = vadd.f32 %v4199_v60, %v13433_v18  ;;  %v9386_v35 = vpop.f32.mrb[134].mxu0 }
 0x46c   : > { %v4202_v40 = vpop.f32.mrb[135].mxu0  ;;  %v13439_v35 = vld [vmem:[#allocation3_spill] sm:$0xff] }
 0x46d   : > { %13434 = vst [vmem:[#allocation34_spill] sm:$0xff] %v12302_v0  ;;  %v12305_v29 = vadd.f32 %v4202_v40, %v13435_v28 }
 0x46e   : > { %9508 = vmatmul.mubr.bf16.gmra.mrb[208].mxu0 %v13197_v46  ;;  %9848 = vmatmul.mubr.bf16.gmra.mrb[196].mxu1 %v13197_v46 }
 0x46f   : > { %13436 = vst [vmem:[#allocation4_spill] sm:$0xff] %v12305_v29  ;;  %9511 = vmatprep.mubr.bf16.mxu0 %v10920_v12  ;;  %9851 = vmatprep.mubr.bf16.mxu1 %v13328_v19 }
 0x471   : > { %v9389_v50 = vpop.f32.mrb[136].mxu0 }
 0x472   : > { %v4213_v34 = vpop.f32.mrb[137].mxu0  ;;  %v13441_v50 = vld [vmem:[#allocation42_spill] sm:$0xff] }
 0x473   : > { %v12312_v31 = vadd.f32 %v4213_v34, %v13437_v6  ;;  %v9390_v60 = vpop.f32.mrb[138].mxu0 }
 0x474   : > { %v4216_v18 = vpop.f32.mrb[139].mxu0  ;;  %v13443_v60 = vld [vmem:[#allocation13_spill] sm:$0xff] }
 0x475   : > { %13438 = vst [vmem:[#allocation11_spill] sm:$0xff] %v12312_v31  ;;  %v12315_v0 = vadd.f32 %v4216_v18, %v13439_v35 }
 0x476   : > { %9512 = vmatmul.mubr.bf16.gmra.mrb[212].mxu0 %v13197_v46  ;;  %9852 = vmatmul.mubr.bf16.gmra.mrb[200].mxu1 %v13197_v46 }
 0x477   : > { %13440 = vst [vmem:[#allocation39_spill] sm:$0xff] %v12315_v0  ;;  %9515 = vmatprep.mubr.bf16.mxu0 %v10917_v8  ;;  %9855 = vmatprep.mubr.bf16.mxu1 %v13336_v14 }
 0x479   : > { %v9393_v40 = vpop.f32.mrb[140].mxu0 }
 0x47a   : > { %v4227_v28 = vpop.f32.mrb[141].mxu0  ;;  %v13445_v40 = vld [vmem:[#allocation45_spill] sm:$0xff] }
 0x47b   : > { %v12322_v29 = vadd.f32 %v4227_v28, %v13441_v50  ;;  %v9394_v34 = vpop.f32.mrb[142].mxu0 }
 0x47c   : > { %v4230_v6 = vpop.f32.mrb[143].mxu0  ;;  %v13447_v34 = vld [vmem:[#allocation12_spill] sm:$0xff] }
 0x47d   : > { %13442 = vst [vmem:[#allocation3_spill] sm:$0xff] %v12322_v29  ;;  %v12325_v31 = vadd.f32 %v4230_v6, %v13443_v60 }
 0x47e   : > { %9516 = vmatmul.mubr.bf16.gmra.mrb[216].mxu0 %v13197_v46  ;;  %9856 = vmatmul.mubr.bf16.gmra.mrb[204].mxu1 %v13197_v46 }
 0x47f   : > { %13444 = vst [vmem:[#allocation42_spill] sm:$0xff] %v12325_v31  ;;  %9519 = vmatprep.mubr.bf16.mxu0 %v10943_v32  ;;  %9859 = vmatprep.mubr.bf16.mxu1 %v13344_v37 }
 0x481   : > { %v9397_v18 = vpop.f32.mrb[144].mxu0 }
 0x482   : > { %v4241_v35 = vpop.f32.mrb[145].mxu0  ;;  %v13449_v18 = vld [vmem:[#allocation48_spill] sm:$0xff] }
 0x483   : > { %v12332_v0 = vadd.f32 %v4241_v35, %v13445_v40  ;;  %v9398_v28 = vpop.f32.mrb[146].mxu0 }
 0x484   : > { %v4244_v50 = vpop.f32.mrb[147].mxu0  ;;  %v13451_v28 = vld [vmem:[#allocation15_spill] sm:$0xff] }
 0x485   : > { %13446 = vst [vmem:[#allocation13_spill] sm:$0xff] %v12332_v0  ;;  %v12335_v29 = vadd.f32 %v4244_v50, %v13447_v34 }
 0x486   : > { %9520 = vmatmul.mubr.bf16.gmra.mrb[220].mxu0 %v13197_v46  ;;  %9860 = vmatmul.mubr.bf16.gmra.mrb[208].mxu1 %v13197_v46 }
 0x487   : > { %13448 = vst [vmem:[#allocation45_spill] sm:$0xff] %v12335_v29  ;;  %9523 = vmatprep.mubr.bf16.mxu0 %v13269_v21  ;;  %9863 = vmatprep.mubr.bf16.mxu1 %v13352_v45 }
 0x489   : > { %v9401_v6 = vpop.f32.mrb[148].mxu0 }
 0x48a   : > { %v4255_v60 = vpop.f32.mrb[149].mxu0  ;;  %v13453_v6 = vld [vmem:[#allocation51_spill] sm:$0xff] }
 0x48b   : > { %v12342_v31 = vadd.f32 %v4255_v60, %v13449_v18  ;;  %v9402_v35 = vpop.f32.mrb[150].mxu0 }
 0x48c   : > { %v4258_v40 = vpop.f32.mrb[151].mxu0  ;;  %v13455_v35 = vld [vmem:[#allocation14_spill] sm:$0xff] }
 0x48d   : > { %13450 = vst [vmem:[#allocation12_spill] sm:$0xff] %v12342_v31  ;;  %v12345_v0 = vadd.f32 %v4258_v40, %v13451_v28 }
 0x48e   : > { %9524 = vmatmul.mubr.bf16.gmra.mrb[224].mxu0 %v13197_v46  ;;  %9864 = vmatmul.mubr.bf16.gmra.mrb[212].mxu1 %v13197_v46 }
 0x48f   : > { %13452 = vst [vmem:[#allocation48_spill] sm:$0xff] %v12345_v0  ;;  %9527 = vmatprep.mubr.bf16.mxu0 %v13276_v36  ;;  %9867 = vmatprep.mubr.bf16.mxu1 %v11029_v47 }
 0x491   : > { %v9405_v50 = vpop.f32.mrb[152].mxu0 }
 0x492   : > { %v4269_v34 = vpop.f32.mrb[153].mxu0  ;;  %v13457_v50 = vld [vmem:[#allocation54_spill] sm:$0xff] }
 0x493   : > { %v12352_v29 = vadd.f32 %v4269_v34, %v13453_v6  ;;  %v9406_v60 = vpop.f32.mrb[154].mxu0 }
 0x494   : > { %v4272_v18 = vpop.f32.mrb[155].mxu0  ;;  %v13459_v60 = vld [vmem:[#allocation16_spill] sm:$0xff] }
 0x495   : > { %13454 = vst [vmem:[#allocation15_spill] sm:$0xff] %v12352_v29  ;;  %v12355_v31 = vadd.f32 %v4272_v18, %v13455_v35 }
 0x496   : > { %9528 = vmatmul.mubr.bf16.gmra.mrb[228].mxu0 %v13197_v46  ;;  %9868 = vmatmul.mubr.bf16.gmra.mrb[216].mxu1 %v13197_v46 }
 0x497   : > { %13456 = vst [vmem:[#allocation51_spill] sm:$0xff] %v12355_v31  ;;  %9531 = vmatprep.mubr.bf16.mxu0 %v13283_v55  ;;  %9871 = vmatprep.mubr.bf16.mxu1 %v11050_v17 }
 0x499   : > { %v9409_v40 = vpop.f32.mrb[156].mxu0 }
 0x49a   : > { %v4283_v28 = vpop.f32.mrb[157].mxu0  ;;  %v13461_v40 = vld [vmem:[#allocation57_spill] sm:$0xff] }
 0x49b   : > { %v12362_v0 = vadd.f32 %v4283_v28, %v13457_v50  ;;  %v9410_v34 = vpop.f32.mrb[158].mxu0 }
 0x49c   : > { %v4286_v6 = vpop.f32.mrb[159].mxu0  ;;  %v13463_v34 = vld [vmem:[#allocation58_spill] sm:$0xff] }
 0x49d   : > { %13458 = vst [vmem:[#allocation14_spill] sm:$0xff] %v12362_v0  ;;  %v12365_v29 = vadd.f32 %v4286_v6, %v13459_v60 }
 0x49e   : > { %9532 = vmatmul.mubr.bf16.gmra.mrb[232].mxu0 %v13197_v46  ;;  %9872 = vmatmul.mubr.bf16.gmra.mrb[220].mxu1 %v13197_v46 }
 0x49f   : > { %13460 = vst [vmem:[#allocation54_spill] sm:$0xff] %v12365_v29  ;;  %9535 = vmatprep.mubr.bf16.mxu0 %v13290_v1  ;;  %9875 = vmatprep.mubr.bf16.mxu1 %v11047_v13 }
 0x4a1   : > { %v9413_v18 = vpop.f32.mrb[160].mxu0 }
 0x4a2   : > { %v4297_v35 = vpop.f32.mrb[161].mxu0  ;;  %v13464_v18 = vld [vmem:[#allocation61_spill] sm:$0xff] }
 0x4a3   : > { %v12372_v31 = vadd.f32 %v4297_v35, %v13461_v40  ;;  %v9414_v28 = vpop.f32.mrb[162].mxu0 }
 0x4a4   : > { %v4300_v50 = vpop.f32.mrb[163].mxu0  ;;  %v13465_v28 = vld [vmem:[#allocation62_spill] sm:$0xff] }
 0x4a5   : > { %13462 = vst [vmem:[#allocation16_spill] sm:$0xff] %v12372_v31  ;;  %v12375_v0 = vadd.f32 %v4300_v50, %v13463_v34 }
 0x4a6   : > { %9536 = vmatmul.mubr.bf16.gmra.mrb[236].mxu0 %v13197_v46  ;;  %9876 = vmatmul.mubr.bf16.gmra.mrb[224].mxu1 %v13197_v46 }
 0x4a7   : > { %9539 = vmatprep.mubr.bf16.mxu0 %v13296_v24  ;;  %9879 = vmatprep.mubr.bf16.mxu1 %v11062_v43 }
 0x4a9   : > { %v9417_v6 = vpop.f32.mrb[164].mxu0 }
 0x4aa   : > { %v4311_v60 = vpop.f32.mrb[165].mxu0 }
 0x4ab   : > { %v12382_v29 = vadd.f32 %v4311_v60, %v13464_v18  ;;  %v9418_v35 = vpop.f32.mrb[166].mxu0 }
 0x4ac   : > { %v4314_v40 = vpop.f32.mrb[167].mxu0 }
 0x4ad   : > { %v12385_v31 = vadd.f32 %v4314_v40, %v13465_v28  ;;  %v13467_v40 = vld [vmem:[#allocation10_spill] sm:$0xff] }
 0x4ae   : > { %9540 = vmatmul.mubr.bf16.gmra.mrb[240].mxu0 %v13197_v46  ;;  %9880 = vmatmul.mubr.bf16.gmra.mrb[228].mxu1 %v13197_v46 }
 0x4af   : > { %13466 = vst [vmem:[#allocation57_spill] sm:$0xff] %v12385_v31  ;;  %9543 = vmatprep.mubr.bf16.mxu0 %v13303_v61  ;;  %9883 = vmatprep.mubr.bf16.mxu1 %v11059_v39 }
 0x4b1   : > { %v9421_v50 = vpop.f32.mrb[168].mxu0 }
 0x4b2   : > { %v4325_v34 = vpop.f32.mrb[169].mxu0 }
 0x4b3   : > { %v12392_v6 = vadd.f32 %v4325_v34, %v12048_v63  ;;  %v9422_v60 = vpop.f32.mrb[170].mxu0 }
 0x4b4   : > { %v4328_v18 = vpop.f32.mrb[171].mxu0 }
 0x4b5   : > { %v12395_v35 = vadd.f32 %v4328_v18, %v12052_v22 }
 0x4b6   : > { %9544 = vmatmul.mubr.bf16.gmra.mrb[244].mxu0 %v13197_v46  ;;  %9884 = vmatmul.mubr.bf16.gmra.mrb[232].mxu1 %v13197_v46 }
 0x4b7   : > { %9547 = vmatprep.mubr.bf16.mxu0 %v13467_v40  ;;  %9887 = vmatprep.mubr.bf16.mxu1 %v11074_v15 }
 0x4b9   : > { %v9425_v28 = vpop.f32.mrb[172].mxu0 }
 0x4ba   : > { %v4339_v31 = vpop.f32.mrb[173].mxu0 }
 0x4bb   : > { %v12402_v50 = vadd.f32 %v4339_v31, %v12073_v2  ;;  %v9426_v63 = vpop.f32.mrb[174].mxu0 }
 0x4bc   : > { %v4342_v34 = vpop.f32.mrb[175].mxu0 }
 0x4bd   : > { %v12405_v60 = vadd.f32 %v4342_v34, %v12075_v62 }
 0x4be   : > { %9548 = vmatmul.mubr.bf16.gmra.mrb[248].mxu0 %v13197_v46  ;;  %9888 = vmatmul.mubr.bf16.gmra.mrb[236].mxu1 %v13197_v46 }
 0x4bf   : > { %9891 = vmatprep.mubr.bf16.mxu1 %v11071_v7  ;;  %9551 = vmatprep.mubr.bf16.mxu0 %v13197_v46 }
 0x4c1   : > { %v9429_v22 = vpop.f32.mrb[176].mxu0 }
 0x4c2   : > { %v4353_v18 = vpop.f32.mrb[177].mxu0 }
 0x4c3   : > { %v12412_v28 = vadd.f32 %v4353_v18, %v12087_v23  ;;  %v9430_v2 = vpop.f32.mrb[178].mxu0 }
 0x4c4   : > { %v4356_v31 = vpop.f32.mrb[179].mxu0 }
 0x4c5   : > { %v12415_v63 = vadd.f32 %v4356_v31, %v12089_v56 }
 0x4c6   : > { %9552 = vmatmul.mubr.bf16.gmra.mrb[252].mxu0 %v13197_v46  ;;  %9892 = vmatmul.mubr.bf16.gmra.mrb[240].mxu1 %v13197_v46 }
 0x4c7   : > { %9555 = vmatprep.mubr.bf16.mxu0 %v13328_v19  ;;  %9895 = vmatprep.mubr.bf16.mxu1 %v13268_v20 }
 0x4c9   : > { %v9433_v62 = vpop.f32.mrb[180].mxu0 }
 0x4ca   : > { %v4367_v34 = vpop.f32.mrb[181].mxu0 }
 0x4cb   : > { %v12422_v22 = vadd.f32 %v4367_v34, %v12101_v4  ;;  %v9434_v23 = vpop.f32.mrb[182].mxu0 }
 0x4cc   : > { %v4370_v18 = vpop.f32.mrb[183].mxu0 }
 0x4cd   : > { %v12425_v2 = vadd.f32 %v4370_v18, %v12103_v38 }
 0x4ce   : > { %9556 = vmatmul.mubr.bf16.gmra.mrb[0].mxu0 %v13197_v46  ;;  %9896 = vmatmul.mubr.bf16.gmra.mrb[244].mxu1 %v13197_v46 }
 0x4cf   : > { %9559 = vmatprep.mubr.bf16.mxu0 %v13336_v14  ;;  %9899 = vmatprep.mubr.bf16.mxu1 %v13275_v27 }
 0x4d1   : > { %v9437_v56 = vpop.f32.mrb[184].mxu0 }
 0x4d2   : > { %v4381_v31 = vpop.f32.mrb[185].mxu0 }
 0x4d3   : > { %v12432_v62 = vadd.f32 %v4381_v31, %v12109_v48  ;;  %v9438_v4 = vpop.f32.mrb[186].mxu0 }
 0x4d4   : > { %v4384_v34 = vpop.f32.mrb[187].mxu0 }
 0x4d5   : > { %v12435_v23 = vadd.f32 %v4384_v34, %v12111_v25 }
 0x4d6   : > { %9560 = vmatmul.mubr.bf16.gmra.mrb[4].mxu0 %v13197_v46  ;;  %9900 = vmatmul.mubr.bf16.gmra.mrb[248].mxu1 %v13197_v46 }
 0x4d7   : > { %9563 = vmatprep.mubr.bf16.mxu0 %v13344_v37  ;;  %9903 = vmatprep.mubr.bf16.mxu1 %v13282_v58 }
 0x4d9   : > { %v9441_v38 = vpop.f32.mrb[188].mxu0 }
 0x4da   : > { %v4395_v18 = vpop.f32.mrb[189].mxu0 }
 0x4db   : > { %v12442_v56 = vadd.f32 %v4395_v18, %v12117_v11  ;;  %v9442_v48 = vpop.f32.mrb[190].mxu0 }
 0x4dc   : > { %v4398_v31 = vpop.f32.mrb[191].mxu0  ;;  %v13470_v48 = vld [vmem:[#allocation68_spill] sm:$0xff] }
 0x4dd   : > { %13468 = vst [vmem:[#allocation58_spill] sm:$0xff] %v12442_v56  ;;  %v12445_v4 = vadd.f32 %v4398_v31, %v12119_v3  ;;  %v13471_v31 = vld [vmem:[#allocation69_spill] sm:$0xff] }
 0x4de   : > { %9564 = vmatmul.mubr.bf16.gmra.mrb[8].mxu0 %v13197_v46  ;;  %9904 = vmatmul.mubr.bf16.gmra.mrb[252].mxu1 %v13197_v46 }
 0x4df   : > { %9567 = vmatprep.mubr.bf16.mxu0 %v13352_v45  ;;  %9923 = vmatprep.mubr.bf16.mxu1 %v13311_v42 }
 0x4e1   : > { %v9445_v25 = vpop.f32.mrb[64].mxu0 }
 0x4e2   : > { %v4409_v34 = vpop.f32.mrb[65].mxu0 }
 0x4e3   : > { %v12452_v38 = vadd.f32 %v4409_v34, %v12125_v5  ;;  %v9446_v11 = vpop.f32.mrb[66].mxu0 }
 0x4e4   : > { %v4412_v18 = vpop.f32.mrb[67].mxu0  ;;  %v13473_v11 = vld [vmem:[#allocation70_spill] sm:$0xff] }
 0x4e5   : > { %13469 = vst [vmem:[#allocation61_spill] sm:$0xff] %v12452_v38  ;;  %v12455_v56 = vadd.f32 %v4412_v18, %v13470_v48  ;;  %v13474_v48 = vld [vmem:[#allocation71_spill] sm:$0xff] }
 0x4e6   : > { %9568 = vmatmul.mubr.bf16.gmra.mrb[12].mxu0 %v13197_v46  ;;  %9924 = vmatmul.mubr.bf16.vlgmr.msra.gmra.mrb[128].mxu1 %v13197_v46 }
 0x4e7   : > { %9571 = vmatprep.mubr.bf16.mxu0 %v11029_v47  ;;  %9927 = vmatprep.mubr.bf16.mxu1 %v10892_v33 }
 0x4e9   : > { %v9449_v3 = vpop.f32.mrb[68].mxu0 }
 0x4ea   : > { %v4423_v42 = vpop.f32.mrb[69].mxu0 }
 0x4eb   : > { %v12462_v25 = vadd.f32 %v4423_v42, %v13471_v31  ;;  %v9450_v5 = vpop.f32.mrb[70].mxu0 }
 0x4ec   : > { %v4426_v34 = vpop.f32.mrb[71].mxu0  ;;  %v13476_v5 = vld [vmem:[#allocation72_spill] sm:$0xff] }
 0x4ed   : > { %13472 = vst [vmem:[#allocation62_spill] sm:$0xff] %v12462_v25  ;;  %v12465_v38 = vadd.f32 %v4426_v34, %v13473_v11  ;;  %v13477_v11 = vld [vmem:[#allocation73_spill] sm:$0xff] }
 0x4ee   : > { %9572 = vmatmul.mubr.bf16.gmra.mrb[16].mxu0 %v13197_v46  ;;  %9928 = vmatmul.mubr.bf16.gmra.mrb[132].mxu1 %v13197_v46 }
 0x4ef   : > { %9575 = vmatprep.mubr.bf16.mxu0 %v11050_v17  ;;  %9931 = vmatprep.mubr.bf16.mxu1 %v10889_v30 }
 0x4f1   : > { %v9453_v18 = vpop.f32.mrb[72].mxu0 }
 0x4f2   : > { %v4437_v33 = vpop.f32.mrb[73].mxu0 }
 0x4f3   : > { %v12472_v3 = vadd.f32 %v4437_v33, %v13474_v48  ;;  %v9454_v42 = vpop.f32.mrb[74].mxu0 }
 0x4f4   : > { %v4440_v31 = vpop.f32.mrb[75].mxu0  ;;  %v13479_v42 = vld [vmem:[#allocation74_spill] sm:$0xff] }
 0x4f5   : > { %13475 = vst [vmem:[#allocation10_spill] sm:$0xff] %v12472_v3  ;;  %v12475_v25 = vadd.f32 %v4440_v31, %v13476_v5  ;;  %v13480_v5 = vld [vmem:[#allocation75_spill] sm:$0xff] }
 0x4f6   : > { %9576 = vmatmul.mubr.bf16.gmra.mrb[20].mxu0 %v13197_v46  ;;  %9932 = vmatmul.mubr.bf16.gmra.mrb[136].mxu1 %v13197_v46 }
 0x4f7   : > { %9579 = vmatprep.mubr.bf16.mxu0 %v11047_v13  ;;  %9935 = vmatprep.mubr.bf16.mxu1 %v10906_v59 }
 0x4f9   : > { %v9457_v34 = vpop.f32.mrb[76].mxu0 }
 0x4fa   : > { %v4451_v30 = vpop.f32.mrb[77].mxu0 }
 0x4fb   : > { %v12482_v18 = vadd.f32 %v4451_v30, %v13477_v11  ;;  %v9458_v33 = vpop.f32.mrb[78].mxu0 }
 0x4fc   : > { %v4454_v48 = vpop.f32.mrb[79].mxu0  ;;  %v13482_v33 = vld [vmem:[#allocation76_spill] sm:$0xff] }
 0x4fd   : > { %13478 = vst [vmem:[#allocation68_spill] sm:$0xff] %v12482_v18  ;;  %v12485_v3 = vadd.f32 %v4454_v48, %v13479_v42 }
 0x4fe   : > { %9580 = vmatmul.mubr.bf16.gmra.mrb[24].mxu0 %v13197_v46  ;;  %9936 = vmatmul.mubr.bf16.gmra.mrb[140].mxu1 %v13197_v46 }
 0x4ff   : > { %9583 = vmatprep.mubr.bf16.mxu0 %v11062_v43  ;;  %9939 = vmatprep.mubr.bf16.mxu1 %v10903_v52 }
 0x501   : > { %v9461_v31 = vpop.f32.mrb[80].mxu0 }
 0x502   : > { %v4465_v59 = vpop.f32.mrb[81].mxu0 }
 0x503   : > { %v12492_v34 = vadd.f32 %v4465_v59, %v13480_v5  ;;  %v9462_v30 = vpop.f32.mrb[82].mxu0  ;;  %v13485_v5 = vld [vmem:[#allocation102_spill] sm:$0xff] }
 0x504   : > { %v4468_v11 = vpop.f32.mrb[83].mxu0 }
 0x505   : > { %13481 = vst [vmem:[#allocation69_spill] sm:$0xff] %v12492_v34  ;;  %v12495_v18 = vadd.f32 %v4468_v11, %v13482_v33  ;;  %v13487_v33 = vld [vmem:[#allocation103_spill] sm:$0xff] }
 0x506   : > { %9584 = vmatmul.mubr.bf16.gmra.mrb[28].mxu0 %v13197_v46  ;;  %9940 = vmatmul.mubr.bf16.gmra.mrb[144].mxu1 %v13197_v46 }
 0x507   : > { %13483 = vst [vmem:[#allocation70_spill] sm:$0xff] %v12495_v18  ;;  %9587 = vmatprep.mubr.bf16.mxu0 %v11059_v39  ;;  %9943 = vmatprep.mubr.bf16.mxu1 %v10920_v12 }
 0x509   : > { %v9465_v48 = vpop.f32.mrb[84].mxu0 }
 0x50a   : > { %v4479_v52 = vpop.f32.mrb[85].mxu0 }
 0x50b   : > { %v12502_v42 = vadd.f32 %v4479_v52, %v12181_v53  ;;  %v9466_v31 = vpop.f32.mrb[86].mxu0 }
 0x50c   : > { %v4482_v59 = vpop.f32.mrb[87].mxu0  ;;  %v13489_v31 = vld [vmem:[#allocation104_spill] sm:$0xff] }
 0x50d   : > { %13484 = vst [vmem:[#allocation71_spill] sm:$0xff] %v12502_v42  ;;  %v12505_v30 = vadd.f32 %v4482_v59, %v13485_v5  ;;  %v13491_v5 = vld [vmem:[#allocation105_spill] sm:$0xff] }
 0x50e   : > { %9588 = vmatmul.mubr.bf16.gmra.mrb[32].mxu0 %v13197_v46  ;;  %9944 = vmatmul.mubr.bf16.gmra.mrb[148].mxu1 %v13197_v46 }
 0x50f   : > { %13486 = vst [vmem:[#allocation72_spill] sm:$0xff] %v12505_v30  ;;  %9591 = vmatprep.mubr.bf16.mxu0 %v11074_v15  ;;  %9947 = vmatprep.mubr.bf16.mxu1 %v10917_v8 }
 0x511   : > { %v9469_v11 = vpop.f32.mrb[88].mxu0 }
 0x512   : > { %v4493_v12 = vpop.f32.mrb[89].mxu0 }
 0x513   : > { %v12512_v48 = vadd.f32 %v4493_v12, %v13487_v33  ;;  %v9470_v53 = vpop.f32.mrb[90].mxu0 }
 0x514   : > { %v4496_v52 = vpop.f32.mrb[91].mxu0 }
 0x515   : > { %13488 = vst [vmem:[#allocation73_spill] sm:$0xff] %v12512_v48  ;;  %v12515_v42 = vadd.f32 %v4496_v52, %v13489_v31 }
 0x516   : > { %9592 = vmatmul.mubr.bf16.gmra.mrb[36].mxu0 %v13197_v46  ;;  %9948 = vmatmul.mubr.bf16.gmra.mrb[152].mxu1 %v13197_v46 }
 0x517   : > { %13490 = vst [vmem:[#allocation74_spill] sm:$0xff] %v12515_v42  ;;  %9595 = vmatprep.mubr.bf16.mxu0 %v11071_v7  ;;  %9951 = vmatprep.mubr.bf16.mxu1 %v10943_v32 }
 0x519   : > { %v9473_v59 = vpop.f32.mrb[92].mxu0 }
 0x51a   : > { %v4507_v8 = vpop.f32.mrb[93].mxu0 }
 0x51b   : > { %v12522_v11 = vadd.f32 %v4507_v8, %v13491_v5  ;;  %v9474_v12 = vpop.f32.mrb[94].mxu0  ;;  %v13494_v5 = vld [vmem:[#allocation66_spill] sm:$0xff] }
 0x51c   : > { %v4510_v33 = vpop.f32.mrb[95].mxu0 }
 0x51d   : > { %13492 = vst [vmem:[#allocation75_spill] sm:$0xff] %v12522_v11  ;;  %v12525_v53 = vadd.f32 %v4510_v33, %v12199_v9  ;;  %v13495_v11 = vld [vmem:[#allocation106_spill] sm:$0xff]  ;;  %v13496_v33 = vld [vmem:[#allocation77_spill] sm:$0xff] }
 0x51e   : > { %9596 = vmatmul.mubr.bf16.gmra.mrb[40].mxu0 %v13197_v46  ;;  %9952 = vmatmul.mubr.bf16.gmra.mrb[156].mxu1 %v13197_v46 }
 0x51f   : > { %13493 = vst [vmem:[#allocation76_spill] sm:$0xff] %v12525_v53  ;;  %9599 = vmatprep.mubr.bf16.mxu0 %v13268_v20  ;;  %9955 = vmatprep.mubr.bf16.mxu1 %v13269_v21 }
 0x521   : > { %v9493_v52 = vpop.f32.mrb[192].mxu0 }
 0x522   : > { %v4619_v32 = vpop.f32.mrb[193].mxu0 }
 0x523   : > { %v5066_v31 = vadd.f32 %v4619_v32, %v12206_v10  ;;  %v9494_v59 = vpop.f32.mrb[194].mxu0 }
 0x524   : > { %v4622_v8 = vpop.f32.mrb[195].mxu0  ;;  %v13497_v59 = vld [vmem:[#allocation78_spill] sm:$0xff] }
 0x525   : > { %v12533_v12 = vadd.f32 %v5066_v31, %v13494_v5  ;;  %v5067_v9 = vadd.f32 %v4622_v8, %v13495_v11  ;;  %v13498_v8 = vld [vmem:[#allocation79_spill] sm:$0xff] }
 0x526   : > { %9600 = vmatmul.mubr.bf16.gmra.mrb[44].mxu0 %v13197_v46  ;;  %9956 = vmatmul.mubr.bf16.gmra.mrb[160].mxu1 %v13197_v46 }
 0x527   : > { %v12539_v53 = vadd.f32 %v5067_v9, %v13496_v33  ;;  %9603 = vmatprep.mubr.bf16.mxu0 %v13275_v27  ;;  %9959 = vmatprep.mubr.bf16.mxu1 %v13276_v36 }
 0x529   : > { %v9497_v21 = vpop.f32.mrb[196].mxu0 }
 0x52a   : > { %v4633_v10 = vpop.f32.mrb[197].mxu0 }
 0x52b   : > { %v5068_v52 = vadd.f32 %v4633_v10, %v12219_v16  ;;  %v9498_v32 = vpop.f32.mrb[198].mxu0 }
 0x52c   : > { %v4636_v31 = vpop.f32.mrb[199].mxu0 }
 0x52d   : > { %v12545_v5 = vadd.f32 %v5068_v52, %v13497_v59  ;;  %v5069_v11 = vadd.f32 %v4636_v31, %v12222_v51  ;;  %v13499_v52 = vld [vmem:[#allocation80_spill] sm:$0xff]  ;;  %v13500_v31 = vld [vmem:[#allocation81_spill] sm:$0xff] }
 0x52e   : > { %9604 = vmatmul.mubr.bf16.gmra.mrb[48].mxu0 %v13197_v46  ;;  %9960 = vmatmul.mubr.bf16.gmra.mrb[164].mxu1 %v13197_v46 }
 0x52f   : > { %v12551_v9 = vadd.f32 %v5069_v11, %v13498_v8  ;;  %9607 = vmatprep.mubr.bf16.mxu0 %v13282_v58  ;;  %9963 = vmatprep.mubr.bf16.mxu1 %v13283_v55  ;;  %v13501_v11 = vld [vmem:[#allocation19_spill] sm:$0xff] }
 0x531   : > { %v9501_v36 = vpop.f32.mrb[200].mxu0 }
 0x532   : > { %v4647_v16 = vpop.f32.mrb[201].mxu0 }
 0x533   : > { %v5070_v33 = vadd.f32 %v4647_v16, %v12229_v44  ;;  %v9502_v21 = vpop.f32.mrb[202].mxu0 }
 0x534   : > { %v4650_v10 = vpop.f32.mrb[203].mxu0 }
 0x535   : > { %v12557_v32 = vadd.f32 %v5070_v33, %v13499_v52  ;;  %v5071_v51 = vadd.f32 %v4650_v10, %v12232_v49  ;;  %v13502_v33 = vld [vmem:[#allocation82_spill] sm:$0xff]  ;;  %v13503_v10 = vld [vmem:[#allocation83_spill] sm:$0xff] }
 0x536   : > { %9608 = vmatmul.mubr.bf16.gmra.mrb[52].mxu0 %v13197_v46  ;;  %9964 = vmatmul.mubr.bf16.gmra.mrb[168].mxu1 %v13197_v46 }
 0x537   : > { %v12563_v59 = vadd.f32 %v5071_v51, %v13500_v31  ;;  %9611 = vmatprep.mubr.bf16.mxu0 %v13501_v11  ;;  %9967 = vmatprep.mubr.bf16.mxu1 %v13290_v1 }
 0x539   : > { %v9505_v55 = vpop.f32.mrb[204].mxu0 }
 0x53a   : > { %v4661_v44 = vpop.f32.mrb[205].mxu0 }
 0x53b   : > { %v5072_v8 = vadd.f32 %v4661_v44, %v12239_v26  ;;  %v9506_v36 = vpop.f32.mrb[206].mxu0  ;;  %v13504_v44 = vld [vmem:[#allocation85_spill] sm:$0xff] }
 0x53c   : > { %v4664_v16 = vpop.f32.mrb[207].mxu0 }
 0x53d   : > { %v12569_v21 = vadd.f32 %v5072_v8, %v13502_v33  ;;  %v5073_v49 = vadd.f32 %v4664_v16, %v12242_v41  ;;  %v13505_v41 = vld [vmem:[#allocation107_spill] sm:$0xff] }
 0x53e   : > { %9612 = vmatmul.mubr.bf16.gmra.mrb[56].mxu0 %v13197_v46  ;;  %9968 = vmatmul.mubr.bf16.gmra.mrb[172].mxu1 %v13197_v46  ;;  %v13506_v16 = vld [vmem:[#allocation87_spill] sm:$0xff] }
 0x53f   : > { %v12575_v52 = vadd.f32 %v5073_v49, %v13503_v10  ;;  %9971 = vmatprep.mubr.bf16.mxu1 %v13296_v24  ;;  %9615 = vmatprep.mubr.bf16.mxu0 %v13197_v46  ;;  %v13507_v10 = vld [vmem:[#allocation108_spill] sm:$0xff] }
 0x541   : > { %v9509_v1 = vpop.f32.mrb[208].mxu0 }
 0x542   : > { %v4675_v26 = vpop.f32.mrb[209].mxu0 }
 0x543   : > { %v5074_v51 = vadd.f32 %v4675_v26, %v12249_v54  ;;  %v9510_v31 = vpop.f32.mrb[210].mxu0 }
 0x544   : > { %v4678_v55 = vpop.f32.mrb[211].mxu0  ;;  %v13508_v31 = vld [vmem:[#allocation89_spill] sm:$0xff] }
 0x545   : > { %v12581_v8 = vadd.f32 %v5074_v51, %v13504_v44  ;;  %v5075_v36 = vadd.f32 %v4678_v55, %v13505_v41  ;;  %v13509_v44 = vld [vmem:[#allocation109_spill] sm:$0xff]  ;;  %v13510_v41 = vld [vmem:[#allocation91_spill] sm:$0xff] }
 0x546   : > { %9616 = vmatmul.mubr.bf16.gmra.mrb[60].mxu0 %v13197_v46  ;;  %9972 = vmatmul.mubr.bf16.gmra.mrb[176].mxu1 %v13197_v46 }
 0x547   : > { %v12587_v33 = vadd.f32 %v5075_v36, %v13506_v16  ;;  %9975 = vmatprep.mubr.bf16.mxu1 %v13303_v61  ;;  %v13511_v16 = vld [vmem:[#allocation6_spill] sm:$0xff] }
 0x549   : > { %v9513_v24 = vpop.f32.mrb[212].mxu0 }
 0x54a   : > { %v4689_v49 = vpop.f32.mrb[213].mxu0 }
 0x54b   : > { %v5076_v54 = vadd.f32 %v4689_v49, %v13507_v10  ;;  %v9514_v1 = vpop.f32.mrb[214].mxu0  ;;  %v13512_v10 = vld [vmem:[#allocation93_spill] sm:$0xff] }
 0x54c   : > { %v4692_v26 = vpop.f32.mrb[215].mxu0 }
 0x54d   : > { %v12592_v51 = vadd.f32 %v5076_v54, %v13508_v31  ;;  %v5077_v55 = vadd.f32 %v4692_v26, %v13509_v44  ;;  %v13513_v54 = vld [vmem:[#allocation28_spill] sm:$0xff]  ;;  %v13514_v26 = vld [vmem:[#allocation95_spill] sm:$0xff] }
 0x54e   : > { %9976 = vmatmul.mubr.bf16.gmra.mrb[180].mxu1 %v13197_v46 }
 0x54f   : > { %v12597_v42 = vadd.f32 %v5077_v55, %v13510_v41  ;;  %9979 = vmatprep.mubr.bf16.mxu1 %v13467_v40  ;;  %v13515_v41 = vld [vmem:[#allocation9_spill] sm:$0xff] }
 0x551   : > { %v9517_v36 = vpop.f32.mrb[216].mxu0 }
 0x552   : > { %v4703_v61 = vpop.f32.mrb[217].mxu0 }
 0x553   : > { %v5078_v24 = vadd.f32 %v4703_v61, %v13511_v16  ;;  %v9518_v48 = vpop.f32.mrb[218].mxu0 }
 0x554   : > { %v4706_v49 = vpop.f32.mrb[219].mxu0  ;;  %v13516_v48 = vld [vmem:[#allocation97_spill] sm:$0xff] }
 0x555   : > { %v12602_v1 = vadd.f32 %v5078_v24, %v13512_v10  ;;  %v5079_v31 = vadd.f32 %v4706_v49, %v13513_v54  ;;  %v13517_v24 = vld [vmem:[#allocation31_spill] sm:$0xff]  ;;  %v13518_v49 = vld [vmem:[#allocation100_spill] sm:$0xff] }
 0x556   : > { %9980 = vmatmul.mubr.bf16.gmra.mrb[184].mxu1 %v13197_v46 }
 0x557   : > { %v12607_v44 = vadd.f32 %v5079_v31, %v13514_v26  ;;  %9983 = vmatprep.mubr.bf16.mxu1 %v13197_v46 }
 0x559   : > { %v9521_v55 = vpop.f32.mrb[220].mxu0 }
 0x55a   : > { %v4717_v40 = vpop.f32.mrb[221].mxu0  ;;  %v13519_v55 = vld [vmem:[#allocation8_spill] sm:$0xff] }
 0x55b   : > { %v5080_v36 = vadd.f32 %v4717_v40, %v13515_v41  ;;  %v9522_v30 = vpop.f32.mrb[222].mxu0 }
 0x55c   : > { %v4720_v61 = vpop.f32.mrb[223].mxu0  ;;  %v13520_v30 = vld [vmem:[#allocation99_spill] sm:$0xff] }
 0x55d   : > { %v12612_v16 = vadd.f32 %v5080_v36, %v13516_v48  ;;  %v5081_v10 = vadd.f32 %v4720_v61, %v13517_v24  ;;  %v13521_v61 = vld [vmem:[#allocation84_spill] sm:$0xff] }
 0x55e   : > { %9984 = vmatmul.mubr.bf16.gmra.mrb[188].mxu1 %v13197_v46 }
 0x55f   : > { %v12617_v54 = vadd.f32 %v5081_v10, %v13518_v49  ;;  %9987 = vmatprep.mubr.bf16.mxu1 %v13328_v19  ;;  %v13523_v10 = vld [vmem:[#allocation34_spill] sm:$0xff] }
 0x561   : > { %v9525_v31 = vpop.f32.mrb[224].mxu0 }
 0x562   : > { %v4731_v26 = vpop.f32.mrb[225].mxu0 }
 0x563   : > { %v5082_v18 = vadd.f32 %v4731_v26, %v13519_v55  ;;  %v9526_v34 = vpop.f32.mrb[226].mxu0 }
 0x564   : > { %v4734_v40 = vpop.f32.mrb[227].mxu0  ;;  %v13524_v34 = vld [vmem:[#allocation86_spill] sm:$0xff] }
 0x565   : > { %v12622_v41 = vadd.f32 %v5082_v18, %v13520_v30  ;;  %v5083_v36 = vadd.f32 %v4734_v40, %v12295_v57  ;;  %v13525_v18 = vld [vmem:[#allocation4_spill] sm:$0xff] }
 0x566   : > { %9988 = vmatmul.mubr.bf16.gmra.mrb[192].mxu1 %v13197_v46  ;;  %v13526_v57 = vld [vmem:[#allocation88_spill] sm:$0xff] }
 0x567   : > { %v12627_v48 = vadd.f32 %v5083_v36, %v13521_v61  ;;  %9991 = vmatprep.mubr.bf16.mxu1 %v13336_v14  ;;  %v13528_v61 = vld [vmem:[#allocation11_spill] sm:$0xff] }
 0x569   : > { %13522 = vst [vmem:[#allocation102_spill] sm:$0xff] %v12627_v48  ;;  %v9529_v24 = vpop.f32.mrb[228].mxu0 }
 0x56a   : > { %v4745_v19 = vpop.f32.mrb[229].mxu0 }
 0x56b   : > { %v5084_v49 = vadd.f32 %v4745_v19, %v13523_v10  ;;  %v9530_v31 = vpop.f32.mrb[230].mxu0  ;;  %v13529_v10 = vld [vmem:[#allocation90_spill] sm:$0xff] }
 0x56c   : > { %v4748_v26 = vpop.f32.mrb[231].mxu0 }
 0x56d   : > { %v12632_v55 = vadd.f32 %v5084_v49, %v13524_v34  ;;  %v5085_v30 = vadd.f32 %v4748_v26, %v13525_v18  ;;  %v13530_v49 = vld [vmem:[#allocation39_spill] sm:$0xff]  ;;  %v13531_v26 = vld [vmem:[#allocation92_spill] sm:$0xff] }
 0x56e   : > { %9992 = vmatmul.mubr.bf16.gmra.mrb[196].mxu1 %v13197_v46 }
 0x56f   : > { %v12637_v40 = vadd.f32 %v5085_v30, %v13526_v57  ;;  %9995 = vmatprep.mubr.bf16.mxu1 %v13344_v37  ;;  %v13533_v57 = vld [vmem:[#allocation3_spill] sm:$0xff] }
 0x571   : > { %13527 = vst [vmem:[#allocation103_spill] sm:$0xff] %v12637_v40  ;;  %v9533_v36 = vpop.f32.mrb[232].mxu0 }
 0x572   : > { %v4759_v14 = vpop.f32.mrb[233].mxu0 }
 0x573   : > { %v5086_v24 = vadd.f32 %v4759_v14, %v13528_v61  ;;  %v9534_v48 = vpop.f32.mrb[234].mxu0 }
 0x574   : > { %v4762_v19 = vpop.f32.mrb[235].mxu0  ;;  %v13534_v48 = vld [vmem:[#allocation94_spill] sm:$0xff] }
 0x575   : > { %v12642_v31 = vadd.f32 %v5086_v24, %v13529_v10  ;;  %v5087_v34 = vadd.f32 %v4762_v19, %v13530_v49  ;;  %v13535_v24 = vld [vmem:[#allocation42_spill] sm:$0xff]  ;;  %v13536_v19 = vld [vmem:[#allocation96_spill] sm:$0xff] }
 0x576   : > { %9996 = vmatmul.mubr.bf16.gmra.mrb[200].mxu1 %v13197_v46 }
 0x577   : > { %v12647_v18 = vadd.f32 %v5087_v34, %v13531_v26  ;;  %9999 = vmatprep.mubr.bf16.mxu1 %v13352_v45  ;;  %v13538_v26 = vld [vmem:[#allocation13_spill] sm:$0xff] }
 0x579   : > { %13532 = vst [vmem:[#allocation104_spill] sm:$0xff] %v12647_v18  ;;  %v9537_v30 = vpop.f32.mrb[236].mxu0 }
 0x57a   : > { %v4773_v37 = vpop.f32.mrb[237].mxu0 }
 0x57b   : > { %v5088_v36 = vadd.f32 %v4773_v37, %v13533_v57  ;;  %v9538_v40 = vpop.f32.mrb[238].mxu0 }
 0x57c   : > { %v4776_v14 = vpop.f32.mrb[239].mxu0  ;;  %v13539_v40 = vld [vmem:[#allocation98_spill] sm:$0xff] }
 0x57d   : > { %v12652_v61 = vadd.f32 %v5088_v36, %v13534_v48  ;;  %v5089_v10 = vadd.f32 %v4776_v14, %v13535_v24  ;;  %v13540_v36 = vld [vmem:[#allocation45_spill] sm:$0xff] }
 0x57e   : > { %10000 = vmatmul.mubr.bf16.gmra.mrb[204].mxu1 %v13197_v46  ;;  %v13541_v14 = vld [vmem:[#allocation101_spill] sm:$0xff] }
 0x57f   : > { %v12657_v49 = vadd.f32 %v5089_v10, %v13536_v19  ;;  %10003 = vmatprep.mubr.bf16.mxu1 %v11029_v47  ;;  %v13543_v19 = vld [vmem:[#allocation12_spill] sm:$0xff] }
 0x581   : > { %13537 = vst [vmem:[#allocation105_spill] sm:$0xff] %v12657_v49  ;;  %v9541_v34 = vpop.f32.mrb[240].mxu0 }
 0x582   : > { %v4787_v45 = vpop.f32.mrb[241].mxu0 }
 0x583   : > { %v5090_v30 = vadd.f32 %v4787_v45, %v13538_v26  ;;  %v9542_v18 = vpop.f32.mrb[242].mxu0 }
 0x584   : > { %v4790_v37 = vpop.f32.mrb[243].mxu0  ;;  %v13544_v18 = vld [vmem:[#allocation21_spill] sm:$0xff] }
 0x585   : > { %v12662_v57 = vadd.f32 %v5090_v30, %v13539_v40  ;;  %v5091_v48 = vadd.f32 %v4790_v37, %v13540_v36  ;;  %v13545_v30 = vld [vmem:[#allocation48_spill] sm:$0xff]  ;;  %v13546_v37 = vld [vmem:[#allocation18_spill] sm:$0xff] }
 0x586   : > { %10004 = vmatmul.mubr.bf16.gmra.mrb[208].mxu1 %v13197_v46 }
 0x587   : > { %v12667_v24 = vadd.f32 %v5091_v48, %v13541_v14  ;;  %10007 = vmatprep.mubr.bf16.mxu1 %v11050_v17  ;;  %v13548_v14 = vld [vmem:[#allocation15_spill] sm:$0xff] }
 0x589   : > { %13542 = vst [vmem:[#allocation66_spill] sm:$0xff] %v12667_v24  ;;  %v9545_v10 = vpop.f32.mrb[244].mxu0 }
 0x58a   : > { %v4801_v47 = vpop.f32.mrb[245].mxu0 }
 0x58b   : > { %v5092_v34 = vadd.f32 %v4801_v47, %v13543_v19  ;;  %v9546_v49 = vpop.f32.mrb[246].mxu0 }
 0x58c   : > { %v4804_v45 = vpop.f32.mrb[247].mxu0  ;;  %v13549_v49 = vld [vmem:[#allocation5_spill] sm:$0xff] }
 0x58d   : > { %v12672_v26 = vadd.f32 %v5092_v34, %v13544_v18  ;;  %v5093_v40 = vadd.f32 %v4804_v45, %v13545_v30  ;;  %v13550_v34 = vld [vmem:[#allocation51_spill] sm:$0xff]  ;;  %v13551_v45 = vld [vmem:[#allocation22_spill] sm:$0xff] }
 0x58e   : > { %10008 = vmatmul.mubr.bf16.gmra.mrb[212].mxu1 %v13197_v46 }
 0x58f   : > { %v12677_v36 = vadd.f32 %v5093_v40, %v13546_v37  ;;  %10011 = vmatprep.mubr.bf16.mxu1 %v11047_v13  ;;  %v13553_v37 = vld [vmem:[#allocation14_spill] sm:$0xff] }
 0x591   : > { %13547 = vst [vmem:[#allocation106_spill] sm:$0xff] %v12677_v36  ;;  %v9549_v48 = vpop.f32.mrb[248].mxu0 }
 0x592   : > { %v4815_v17 = vpop.f32.mrb[249].mxu0 }
 0x593   : > { %v5094_v10 = vadd.f32 %v4815_v17, %v13548_v14  ;;  %v9550_v24 = vpop.f32.mrb[250].mxu0 }
 0x594   : > { %v4818_v47 = vpop.f32.mrb[251].mxu0  ;;  %v13554_v24 = vld [vmem:[#allocation23_spill] sm:$0xff] }
 0x595   : > { %v12682_v19 = vadd.f32 %v5094_v10, %v13549_v49  ;;  %v5095_v18 = vadd.f32 %v4818_v47, %v13550_v34  ;;  %v13555_v10 = vld [vmem:[#allocation54_spill] sm:$0xff]  ;;  %v13556_v47 = vld [vmem:[#allocation24_spill] sm:$0xff] }
 0x596   : > { %10012 = vmatmul.mubr.bf16.gmra.mrb[216].mxu1 %v13197_v46 }
 0x597   : > { %v12687_v30 = vadd.f32 %v5095_v18, %v13551_v45  ;;  %10015 = vmatprep.mubr.bf16.mxu1 %v11062_v43  ;;  %v13557_v45 = vld [vmem:[#allocation16_spill] sm:$0xff] }
 0x599   : > { %13552 = vst [vmem:[#allocation77_spill] sm:$0xff] %v12687_v30  ;;  %v9553_v40 = vpop.f32.mrb[252].mxu0 }
 0x59a   : > { %v4829_v13 = vpop.f32.mrb[253].mxu0 }
 0x59b   : > { %v5096_v48 = vadd.f32 %v4829_v13, %v13553_v37  ;;  %v9554_v36 = vpop.f32.mrb[254].mxu0 }
 0x59c   : > { %v4832_v17 = vpop.f32.mrb[255].mxu0  ;;  %v13558_v36 = vld [vmem:[#allocation17_spill] sm:$0xff] }
 0x59d   : > { %v12692_v14 = vadd.f32 %v5096_v48, %v13554_v24  ;;  %v5097_v49 = vadd.f32 %v4832_v17, %v13555_v10  ;;  %v13559_v17 = vld [vmem:[#allocation7_spill] sm:$0xff] }
 0x59e   : > { %10016 = vmatmul.mubr.bf16.gmra.mrb[220].mxu1 %v13197_v46 }
 0x59f   : > { %v12697_v34 = vadd.f32 %v5097_v49, %v13556_v47  ;;  %10019 = vmatprep.mubr.bf16.mxu1 %v11059_v39 }
 0x5a1   : > { %v9557_v18 = vpop.f32.mrb[0].mxu0 }
 0x5a2   : > { %v4843_v43 = vpop.f32.mrb[1].mxu0 }
 0x5a3   : > { %v5098_v40 = vadd.f32 %v4843_v43, %v13557_v45  ;;  %v9558_v30 = vpop.f32.mrb[2].mxu0  ;;  %v13561_v45 = vld [vmem:[#allocation57_spill] sm:$0xff] }
 0x5a4   : > { %v4846_v13 = vpop.f32.mrb[3].mxu0  ;;  %v13560_v30 = vld [vmem:[#allocation25_spill] sm:$0xff] }
 0x5a5   : > { %v12702_v37 = vadd.f32 %v5098_v40, %v13558_v36  ;;  %v5099_v48 = vadd.f32 %v4846_v13, %v12375_v0  ;;  %v13562_v0 = vld [vmem:[#allocation26_spill] sm:$0xff] }
 0x5a6   : > { %10020 = vmatmul.mubr.bf16.gmra.mrb[224].mxu1 %v13197_v46 }
 0x5a7   : > { %v12707_v24 = vadd.f32 %v5099_v48, %v13559_v17  ;;  %10023 = vmatprep.mubr.bf16.mxu1 %v11074_v15 }
 0x5a9   : > { %v9561_v10 = vpop.f32.mrb[4].mxu0 }
 0x5aa   : > { %v4857_v39 = vpop.f32.mrb[5].mxu0  ;;  %v13563_v10 = vld [vmem:[#allocation27_spill] sm:$0xff] }
 0x5ab   : > { %v5100_v49 = vadd.f32 %v4857_v39, %v12382_v29  ;;  %v9562_v47 = vpop.f32.mrb[6].mxu0 }
 0x5ac   : > { %v4860_v18 = vpop.f32.mrb[7].mxu0  ;;  %v13564_v47 = vld [vmem:[#allocation20_spill] sm:$0xff] }
 0x5ad   : > { %v12712_v43 = vadd.f32 %v5100_v49, %v13560_v30  ;;  %v5101_v40 = vadd.f32 %v4860_v18, %v13561_v45 }
 0x5ae   : > { %10024 = vmatmul.mubr.bf16.gmra.mrb[228].mxu1 %v13197_v46 }
 0x5af   : > { %v12717_v13 = vadd.f32 %v5101_v40, %v13562_v0  ;;  %10027 = vmatprep.mubr.bf16.mxu1 %v11071_v7 }
 0x5b1   : > { %v9565_v36 = vpop.f32.mrb[8].mxu0 }
 0x5b2   : > { %v4871_v15 = vpop.f32.mrb[9].mxu0 }
 0x5b3   : > { %v5102_v48 = vadd.f32 %v4871_v15, %v12392_v6  ;;  %v9566_v17 = vpop.f32.mrb[10].mxu0 }
 0x5b4   : > { %v4874_v29 = vpop.f32.mrb[11].mxu0 }
 0x5b5   : > { %v12722_v39 = vadd.f32 %v5102_v48, %v13563_v10  ;;  %v5103_v49 = vadd.f32 %v4874_v29, %v12395_v35  ;;  %v13565_v35 = vld [vmem:[#allocation29_spill] sm:$0xff] }
 0x5b6   : > { %10028 = vmatmul.mubr.bf16.gmra.mrb[232].mxu1 %v13197_v46 }
 0x5b7   : > { %v12727_v18 = vadd.f32 %v5103_v49, %v13564_v47  ;;  %10031 = vmatprep.mubr.bf16.mxu1 %v13268_v20  ;;  %v13566_v47 = vld [vmem:[#allocation30_spill] sm:$0xff] }
 0x5b9   : > { %v9569_v30 = vpop.f32.mrb[12].mxu0  ;;  %v9925_v7 = vpop.f32.mrb[128].mxu1 }
 0x5ba   : > { %v4885_v45 = vpop.f32.mrb[13].mxu0  ;;  %v6449_v40 = vpop.f32.mrb[129].mxu1  ;;  %v7124_v15 = vrot.slane %v9925_v7, 1 }
 0x5bb   : > { %v5104_v6 = vadd.f32 %v4885_v45, %v12402_v50  ;;  %v9570_v0 = vpop.f32.mrb[14].mxu0  ;;  %v9926_v36 = vpop.f32.mrb[130].mxu1  ;;  %v7121_v10 = vrot.slane %v6449_v40, 1  ;;  %v12744_v45 = vld [vmem:[%s13122_s4] ss:$0 sm:$0xff] }
 0x5bc   : > { %v4888_v48 = vpop.f32.mrb[15].mxu0  ;;  %v6452_v17 = vpop.f32.mrb[131].mxu1 }
 0x5bd   : > { %v12732_v29 = vadd.f32 %v5104_v6, %v13565_v35  ;;  %v5105_v49 = vadd.f32 %v4888_v48, %v12405_v60  ;;  %v7122_v20 = vrot.slane %v6452_v17, 1 }
 0x5be   : > { %10032 = vmatmul.mubr.bf16.gmra.mrb[236].mxu1 %v13197_v46 }
 0x5bf   : > { %v12737_v30 = vadd.f32 %v5105_v49, %v13566_v47  ;;  %v7123_v50 = vsel %vm7120_vm1, %v7121_v10, %v7122_v20  ;;  %v7125_v7 = vsel %vm7120_vm1, %v7122_v20, %v7124_v15  ;;  %10035 = vmatprep.mubr.bf16.mxu1 %v13275_v27 }
 0x5c0   : > { %v7345_v40 = vadd.f32 %v7123_v50, %v12533_v12  ;;  %v7346_v60 = vadd.f32 %v7125_v7, %v12539_v53  ;;  %v13568_v53 = vld [vmem:[#allocation32_spill] sm:$0xff] }
 0x5c1   : > { %13567 = vst [vmem:[#allocation78_spill] sm:$0xff] %v12737_v30  ;;  %v9573_v6 = vpop.f32.mrb[16].mxu0  ;;  %v9929_v0 = vpop.f32.mrb[132].mxu1 }
 0x5c2   : > { %v7416_v36 = vadd.f32 %v12744_v45, %v7345_v40  ;;  %v7417_v48 = vadd.f32 %v12744_v45, %v7346_v60  ;;  %v4899_v17 = vpop.f32.mrb[17].mxu0  ;;  %v6464_v15 = vpop.f32.mrb[133].mxu1  ;;  %v7129_v35 = vrot.slane %v9929_v0, 1  ;;  %v13569_v0 = vld [vmem:[#allocation33_spill] sm:$0xff] }
 0x5c3   : > { %v5106_v10 = vadd.f32 %v4899_v17, %v12412_v28  ;;  %v9574_v49 = vpop.f32.mrb[18].mxu0  ;;  %v9930_v20 = vpop.f32.mrb[134].mxu1  ;;  %v7126_v7 = vrot.slane %v6464_v15, 1 }
 0x5c4   : > { %v7480_v47 = vmul.f32 0.2, %v7416_v36  ;;  %v7481_v27 = vmul.f32 0.2, %v7417_v48  ;;  %v4902_v30 = vpop.f32.mrb[19].mxu0  ;;  %v6467_v12 = vpop.f32.mrb[135].mxu1 }
 0x5c5   : > { %v12759_v50 = vadd.f32 %v5106_v10, %v13568_v53  ;;  %v5107_v40 = vadd.f32 %v4902_v30, %v12415_v63  ;;  %v7127_v28 = vrot.slane %v6467_v12, 1 }
 0x5c6   : > { %v7544_v60 = vmax.f32 %v7416_v36, %v7480_v47  ;;  %v7545_v6 = vmax.f32 %v7417_v48, %v7481_v27  ;;  %10036 = vmatmul.mubr.bf16.gmra.mrb[240].mxu1 %v13197_v46 }
 0x5c7   : > { %v12764_v17 = vadd.f32 %v5107_v40, %v13569_v0  ;;  %v7128_v49 = vsel %vm7120_vm1, %v7126_v7, %v7127_v28  ;;  %v7130_v20 = vsel %vm7120_vm1, %v7127_v28, %v7129_v35  ;;  %10039 = vmatprep.mubr.bf16.mxu1 %v13282_v58 }
 0x5c8   : > { %7608 = vst [vmem:[%s12756_s30] sm:$0xff] %v7544_v60  ;;  %7609 = vst [vmem:[%s12756_s30 + $0x8] sm:$0xff] %v7545_v6  ;;  %v7347_v15 = vadd.f32 %v7128_v49, %v12545_v5  ;;  %v7348_v63 = vadd.f32 %v7130_v20, %v12551_v9  ;;  %v13570_v9 = vld [vmem:[#allocation35_spill] sm:$0xff] }
 0x5c9   : > { %v9577_v30 = vpop.f32.mrb[20].mxu0  ;;  %v9933_v36 = vpop.f32.mrb[136].mxu1 }
 0x5ca   : > { %v7418_v48 = vadd.f32 %v12744_v45, %v7347_v15  ;;  %v7419_v10 = vadd.f32 %v12744_v45, %v7348_v63  ;;  %v4913_v47 = vpop.f32.mrb[21].mxu0  ;;  %v6479_v27 = vpop.f32.mrb[137].mxu1  ;;  %v7134_v12 = vrot.slane %v9933_v36, 1 }
 0x5cb   : > { %v5108_v53 = vadd.f32 %v4913_v47, %v12422_v22  ;;  %v9578_v35 = vpop.f32.mrb[22].mxu0  ;;  %v9934_v7 = vpop.f32.mrb[138].mxu1  ;;  %v7131_v6 = vrot.slane %v6479_v27, 1  ;;  %v13571_v22 = vld [vmem:[#allocation36_spill] sm:$0xff] }
 0x5cc   : > { %v7482_v58 = vmul.f32 0.2, %v7418_v48  ;;  %v7483_v40 = vmul.f32 0.2, %v7419_v10  ;;  %v4916_v5 = vpop.f32.mrb[23].mxu0  ;;  %v6482_v28 = vpop.f32.mrb[139].mxu1 }
 0x5cd   : > { %v12777_v60 = vadd.f32 %v5108_v53, %v13570_v9  ;;  %v5109_v0 = vadd.f32 %v4916_v5, %v12425_v2  ;;  %v7132_v49 = vrot.slane %v6482_v28, 1 }
 0x5ce   : > { %v7546_v20 = vmax.f32 %v7418_v48, %v7482_v58  ;;  %v7547_v15 = vmax.f32 %v7419_v10, %v7483_v40  ;;  %10040 = vmatmul.mubr.bf16.gmra.mrb[244].mxu1 %v13197_v46 }
 0x5cf   : > { %v12782_v63 = vadd.f32 %v5109_v0, %v13571_v22  ;;  %v7133_v30 = vsel %vm7120_vm1, %v7131_v6, %v7132_v49  ;;  %v7135_v36 = vsel %vm7120_vm1, %v7132_v49, %v7134_v12  ;;  %10043 = vmatprep.mubr.bf16.mxu1 %v13501_v11 }
 0x5d0   : > { %7610 = vst [vmem:[%s12756_s30 + $0x10] sm:$0xff] %v7546_v20  ;;  %7611 = vst [vmem:[%s12756_s30 + $0x18] sm:$0xff] %v7547_v15  ;;  %v7349_v47 = vadd.f32 %v7133_v30, %v12557_v32  ;;  %v7350_v2 = vadd.f32 %v7135_v36, %v12563_v59  ;;  %v13572_v59 = vld [vmem:[#allocation37_spill] sm:$0xff] }
 0x5d1   : > { %v9581_v27 = vpop.f32.mrb[24].mxu0  ;;  %v9937_v48 = vpop.f32.mrb[140].mxu1 }
 0x5d2   : > { %v7420_v10 = vadd.f32 %v12744_v45, %v7349_v47  ;;  %v7421_v53 = vadd.f32 %v12744_v45, %v7350_v2  ;;  %v4927_v35 = vpop.f32.mrb[25].mxu0  ;;  %v6494_v7 = vpop.f32.mrb[141].mxu1  ;;  %v7139_v58 = vrot.slane %v9937_v48, 1 }
 0x5d3   : > { %v5110_v40 = vadd.f32 %v4927_v35, %v12432_v62  ;;  %v9582_v12 = vpop.f32.mrb[26].mxu0  ;;  %v9938_v5 = vpop.f32.mrb[142].mxu1  ;;  %v7136_v0 = vrot.slane %v6494_v7, 1  ;;  %v13573_v62 = vld [vmem:[#allocation38_spill] sm:$0xff] }
 0x5d4   : > { %v7484_v11 = vmul.f32 0.2, %v7420_v10  ;;  %v7485_v28 = vmul.f32 0.2, %v7421_v53  ;;  %v4930_v32 = vpop.f32.mrb[27].mxu0  ;;  %v6497_v9 = vpop.f32.mrb[143].mxu1 }
 0x5d5   : > { %v12795_v6 = vadd.f32 %v5110_v40, %v13572_v59  ;;  %v5111_v49 = vadd.f32 %v4930_v32, %v12435_v23  ;;  %v7137_v20 = vrot.slane %v6497_v9, 1  ;;  %v13574_v12 = vld [vmem:[#allocation58_spill] sm:$0xff] }
 0x5d6   : > { %v7548_v15 = vmax.f32 %v7420_v10, %v7484_v11  ;;  %v7549_v22 = vmax.f32 %v7421_v53, %v7485_v28  ;;  %10044 = vmatmul.mubr.bf16.gmra.mrb[248].mxu1 %v13197_v46 }
 0x5d7   : > { %v12800_v30 = vadd.f32 %v5111_v49, %v13573_v62  ;;  %v7138_v36 = vsel %vm7120_vm1, %v7136_v0, %v7137_v20  ;;  %v7140_v47 = vsel %vm7120_vm1, %v7137_v20, %v7139_v58  ;;  %10047 = vmatprep.mubr.bf16.mxu1 %v13197_v46  ;;  %v13576_v62 = vld [vmem:[#allocation41_spill] sm:$0xff] }
 0x5d8   : > { %7612 = vst [vmem:[%s12756_s30 + $0x20] sm:$0xff] %v7548_v15  ;;  %7613 = vst [vmem:[%s12756_s30 + $0x28] sm:$0xff] %v7549_v22  ;;  %v7351_v2 = vadd.f32 %v7138_v36, %v12569_v21  ;;  %v7352_v23 = vadd.f32 %v7140_v47, %v12575_v52  ;;  %v13575_v52 = vld [vmem:[#allocation40_spill] sm:$0xff] }
 0x5d9   : > { %v9585_v27 = vpop.f32.mrb[28].mxu0  ;;  %v9941_v48 = vpop.f32.mrb[144].mxu1 }
 0x5da   : > { %v7422_v10 = vadd.f32 %v12744_v45, %v7351_v2  ;;  %v7423_v53 = vadd.f32 %v12744_v45, %v7352_v23  ;;  %v4941_v35 = vpop.f32.mrb[29].mxu0  ;;  %v6509_v7 = vpop.f32.mrb[145].mxu1  ;;  %v7144_v40 = vrot.slane %v9941_v48, 1 }
 0x5db   : > { %v5112_v5 = vadd.f32 %v4941_v35, %v13574_v12  ;;  %v9586_v58 = vpop.f32.mrb[30].mxu0  ;;  %v9942_v11 = vpop.f32.mrb[146].mxu1  ;;  %v7141_v0 = vrot.slane %v6509_v7, 1  ;;  %v13577_v12 = vld [vmem:[#allocation61_spill] sm:$0xff] }
 0x5dc   : > { %v7486_v28 = vmul.f32 0.2, %v7422_v10  ;;  %v7487_v32 = vmul.f32 0.2, %v7423_v53  ;;  %v4944_v21 = vpop.f32.mrb[31].mxu0  ;;  %v6512_v9 = vpop.f32.mrb[147].mxu1 }
 0x5dd   : > { %v12813_v59 = vadd.f32 %v5112_v5, %v13575_v52  ;;  %v5113_v49 = vadd.f32 %v4944_v21, %v12445_v4  ;;  %v7142_v20 = vrot.slane %v6512_v9, 1 }
 0x5de   : > { %v7550_v15 = vmax.f32 %v7422_v10, %v7486_v28  ;;  %v7551_v22 = vmax.f32 %v7423_v53, %v7487_v32  ;;  %10048 = vmatmul.mubr.bf16.gmra.mrb[252].mxu1 %v13197_v46 }
 0x5df   : > { %v12818_v36 = vadd.f32 %v5113_v49, %v13576_v62  ;;  %v7143_v47 = vsel %vm7120_vm1, %v7141_v0, %v7142_v20  ;;  %v7145_v2 = vsel %vm7120_vm1, %v7142_v20, %v7144_v40 }
 0x5e0   : > { %7614 = vst [vmem:[%s12756_s30 + $0x30] sm:$0xff] %v7550_v15  ;;  %7615 = vst [vmem:[%s12756_s30 + $0x38] sm:$0xff] %v7551_v22  ;;  %v7353_v23 = vadd.f32 %v7143_v47, %v12581_v8  ;;  %v7354_v27 = vadd.f32 %v7145_v2, %v12587_v33  ;;  %v13578_v33 = vld [vmem:[#allocation43_spill] sm:$0xff]  ;;  %v13579_v15 = vld [vmem:[#allocation44_spill] sm:$0xff] }
 0x5e1   : > { %v9589_v48 = vpop.f32.mrb[32].mxu0  ;;  %v9945_v4 = vpop.f32.mrb[148].mxu1 }
 0x5e2   : > { %v7424_v10 = vadd.f32 %v12744_v45, %v7353_v23  ;;  %v7425_v53 = vadd.f32 %v12744_v45, %v7354_v27  ;;  %v4955_v46 = vpop.f32.mrb[33].mxu0  ;;  %v6524_v35 = vpop.f32.mrb[149].mxu1  ;;  %v7149_v7 = vrot.slane %v9945_v4, 1 }
 0x5e3   : > { %v5114_v5 = vadd.f32 %v4955_v46, %v13577_v12  ;;  %v9590_v58 = vpop.f32.mrb[34].mxu0  ;;  %v9946_v40 = vpop.f32.mrb[150].mxu1  ;;  %v7146_v9 = vrot.slane %v6524_v35, 1  ;;  %v13580_v35 = vld [vmem:[#allocation62_spill] sm:$0xff] }
 0x5e4   : > { %v7488_v11 = vmul.f32 0.2, %v7424_v10  ;;  %v7489_v28 = vmul.f32 0.2, %v7425_v53  ;;  %v4958_v8 = vpop.f32.mrb[35].mxu0  ;;  %v6527_v32 = vpop.f32.mrb[151].mxu1 }
 0x5e5   : > { %v12830_v21 = vadd.f32 %v5114_v5, %v13578_v33  ;;  %v5115_v52 = vadd.f32 %v4958_v8, %v12455_v56  ;;  %v7147_v0 = vrot.slane %v6527_v32, 1 }
 0x5e6   : > { %v7552_v49 = vmax.f32 %v7424_v10, %v7488_v11  ;;  %v7553_v20 = vmax.f32 %v7425_v53, %v7489_v28 }
 0x5e7   : > { %v12834_v22 = vadd.f32 %v5115_v52, %v13579_v15  ;;  %v7148_v62 = vsel %vm7120_vm1, %v7146_v9, %v7147_v0  ;;  %v7150_v47 = vsel %vm7120_vm1, %v7147_v0, %v7149_v7  ;;  %v13582_v0 = vld [vmem:[#allocation47_spill] sm:$0xff] }
 0x5e8   : > { %7616 = vst [vmem:[%s12756_s30 + $0x40] sm:$0xff] %v7552_v49  ;;  %7617 = vst [vmem:[%s12756_s30 + $0x48] sm:$0xff] %v7553_v20  ;;  %v7355_v2 = vadd.f32 %v7148_v62, %v12592_v51  ;;  %v7356_v23 = vadd.f32 %v7150_v47, %v12597_v42  ;;  %v13581_v42 = vld [vmem:[#allocation46_spill] sm:$0xff] }
 0x5e9   : > { %v9593_v27 = vpop.f32.mrb[36].mxu0  ;;  %v9949_v48 = vpop.f32.mrb[152].mxu1 }
 0x5ea   : > { %v7426_v56 = vadd.f32 %v12744_v45, %v7355_v2  ;;  %v7427_v4 = vadd.f32 %v12744_v45, %v7356_v23  ;;  %v4969_v10 = vpop.f32.mrb[37].mxu0  ;;  %v6539_v53 = vpop.f32.mrb[153].mxu1  ;;  %v7154_v46 = vrot.slane %v9949_v48, 1 }
 0x5eb   : > { %v5116_v12 = vadd.f32 %v4969_v10, %v13580_v35  ;;  %v9594_v5 = vpop.f32.mrb[38].mxu0  ;;  %v9950_v7 = vpop.f32.mrb[154].mxu1  ;;  %v7151_v8 = vrot.slane %v6539_v53, 1  ;;  %v13583_v10 = vld [vmem:[#allocation10_spill] sm:$0xff] }
 0x5ec   : > { %v7490_v58 = vmul.f32 0.2, %v7426_v56  ;;  %v7491_v40 = vmul.f32 0.2, %v7427_v4  ;;  %v4972_v51 = vpop.f32.mrb[39].mxu0  ;;  %v6542_v11 = vpop.f32.mrb[155].mxu1 }
 0x5ed   : > { %v12846_v28 = vadd.f32 %v5116_v12, %v13581_v42  ;;  %v5117_v32 = vadd.f32 %v4972_v51, %v12465_v38  ;;  %v7152_v33 = vrot.slane %v6542_v11, 1 }
 0x5ee   : > { %v7554_v9 = vmax.f32 %v7426_v56, %v7490_v58  ;;  %v7555_v52 = vmax.f32 %v7427_v4, %v7491_v40 }
 0x5ef   : > { %v12850_v49 = vadd.f32 %v5117_v32, %v13582_v0  ;;  %v7153_v20 = vsel %vm7120_vm1, %v7151_v8, %v7152_v33  ;;  %v7155_v15 = vsel %vm7120_vm1, %v7152_v33, %v7154_v46  ;;  %v13585_v32 = vld [vmem:[#allocation50_spill] sm:$0xff] }
 0x5f0   : > { %7618 = vst [vmem:[%s12756_s30 + $0x50] sm:$0xff] %v7554_v9  ;;  %7619 = vst [vmem:[%s12756_s30 + $0x58] sm:$0xff] %v7555_v52  ;;  %v7357_v62 = vadd.f32 %v7153_v20, %v12602_v1  ;;  %v7358_v47 = vadd.f32 %v7155_v15, %v12607_v44  ;;  %v13584_v44 = vld [vmem:[#allocation49_spill] sm:$0xff] }
 0x5f1   : > { %v9597_v2 = vpop.f32.mrb[40].mxu0  ;;  %v9953_v23 = vpop.f32.mrb[156].mxu1 }
 0x5f2   : > { %v7428_v38 = vadd.f32 %v12744_v45, %v7357_v62  ;;  %v7429_v27 = vadd.f32 %v12744_v45, %v7358_v47  ;;  %v4983_v48 = vpop.f32.mrb[41].mxu0  ;;  %v6554_v56 = vpop.f32.mrb[157].mxu1  ;;  %v7159_v4 = vrot.slane %v9953_v23, 1 }
 0x5f3   : > { %v5118_v53 = vadd.f32 %v4983_v48, %v13583_v10  ;;  %v9598_v35 = vpop.f32.mrb[42].mxu0  ;;  %v9954_v46 = vpop.f32.mrb[158].mxu1  ;;  %v7156_v40 = vrot.slane %v6554_v56, 1 }
 0x5f4   : > { %v7492_v12 = vmul.f32 0.2, %v7428_v38  ;;  %v7493_v5 = vmul.f32 0.2, %v7429_v27  ;;  %v4986_v1 = vpop.f32.mrb[43].mxu0  ;;  %v6557_v7 = vpop.f32.mrb[159].mxu1 }
 0x5f5   : > { %v12862_v58 = vadd.f32 %v5118_v53, %v13584_v44  ;;  %v5119_v51 = vadd.f32 %v4986_v1, %v12475_v25  ;;  %v7157_v11 = vrot.slane %v6557_v7, 1 }
 0x5f6   : > { %v7556_v42 = vmax.f32 %v7428_v38, %v7492_v12  ;;  %v7557_v8 = vmax.f32 %v7429_v27, %v7493_v5  ;;  %v13586_v27 = vld [vmem:[#allocation68_spill] sm:$0xff] }
 0x5f7   : > { %v12866_v33 = vadd.f32 %v5119_v51, %v13585_v32  ;;  %v7158_v9 = vsel %vm7120_vm1, %v7156_v40, %v7157_v11  ;;  %v7160_v52 = vsel %vm7120_vm1, %v7157_v11, %v7159_v4  ;;  %v13588_v40 = vld [vmem:[#allocation53_spill] sm:$0xff]  ;;  %v13589_v32 = vld [vmem:[#allocation102_spill] sm:$0xff] }
 0x5f8   : > { %7620 = vst [vmem:[%s12756_s30 + $0x60] sm:$0xff] %v7556_v42  ;;  %7621 = vst [vmem:[%s12756_s30 + $0x68] sm:$0xff] %v7557_v8  ;;  %v7359_v0 = vadd.f32 %v7158_v9, %v12612_v16  ;;  %v7360_v20 = vadd.f32 %v7160_v52, %v12617_v54  ;;  %v13587_v54 = vld [vmem:[#allocation52_spill] sm:$0xff] }
 0x5f9   : > { %v9601_v15 = vpop.f32.mrb[44].mxu0  ;;  %v9957_v62 = vpop.f32.mrb[160].mxu1 }
 0x5fa   : > { %v7430_v25 = vadd.f32 %v12744_v45, %v7359_v0  ;;  %v7431_v47 = vadd.f32 %v12744_v45, %v7360_v20  ;;  %v4997_v2 = vpop.f32.mrb[45].mxu0  ;;  %v6569_v23 = vpop.f32.mrb[161].mxu1  ;;  %v7164_v38 = vrot.slane %v9957_v62, 1 }
 0x5fb   : > { %v5120_v48 = vadd.f32 %v4997_v2, %v13586_v27  ;;  %v9602_v56 = vpop.f32.mrb[46].mxu0  ;;  %v9958_v4 = vpop.f32.mrb[162].mxu1  ;;  %v7161_v12 = vrot.slane %v6569_v23, 1 }
 0x5fc   : > { %v7494_v10 = vmul.f32 0.2, %v7430_v25  ;;  %v7495_v53 = vmul.f32 0.2, %v7431_v47  ;;  %v5000_v16 = vpop.f32.mrb[47].mxu0  ;;  %v6572_v35 = vpop.f32.mrb[163].mxu1 }
 0x5fd   : > { %v12878_v46 = vadd.f32 %v5120_v48, %v13587_v54  ;;  %v5121_v5 = vadd.f32 %v5000_v16, %v12485_v3  ;;  %v7162_v1 = vrot.slane %v6572_v35, 1  ;;  %v13591_v4 = vld [vmem:[#allocation55_spill] sm:$0xff]  ;;  %v13592_v16 = vld [vmem:[#allocation70_spill] sm:$0xff] }
 0x5fe   : > { %v7558_v7 = vmax.f32 %v7430_v25, %v7494_v10  ;;  %v7559_v44 = vmax.f32 %v7431_v47, %v7495_v53  ;;  %v13590_v47 = vld [vmem:[#allocation69_spill] sm:$0xff] }
 0x5ff   : > { %v12882_v51 = vadd.f32 %v5121_v5, %v13588_v40  ;;  %v7163_v11 = vsel %vm7120_vm1, %v7161_v12, %v7162_v1  ;;  %v7165_v42 = vsel %vm7120_vm1, %v7162_v1, %v7164_v38  ;;  %v13593_v1 = vld [vmem:[#allocation56_spill] sm:$0xff] }
 0x600   : > { %7622 = vst [vmem:[%s12756_s30 + $0x70] sm:$0xff] %v7558_v7  ;;  %7623 = vst [vmem:[%s12756_s30 + $0x78] sm:$0xff] %v7559_v44  ;;  %v7361_v8 = vadd.f32 %v7163_v11, %v12622_v41  ;;  %v7362_v9 = vadd.f32 %v7165_v42, %v13589_v32  ;;  %v13594_v42 = vld [vmem:[#allocation103_spill] sm:$0xff] }
 0x601   : > { %v9605_v52 = vpop.f32.mrb[48].mxu0  ;;  %v9961_v0 = vpop.f32.mrb[164].mxu1 }
 0x602   : > { %v7432_v3 = vadd.f32 %v12744_v45, %v7361_v8  ;;  %v7433_v20 = vadd.f32 %v12744_v45, %v7362_v9  ;;  %v5011_v15 = vpop.f32.mrb[49].mxu0  ;;  %v6584_v62 = vpop.f32.mrb[165].mxu1  ;;  %v7169_v25 = vrot.slane %v9961_v0, 1 }
 0x603   : > { %v5122_v2 = vadd.f32 %v5011_v15, %v13590_v47  ;;  %v9606_v23 = vpop.f32.mrb[50].mxu0  ;;  %v9962_v38 = vpop.f32.mrb[166].mxu1  ;;  %v7166_v53 = vrot.slane %v6584_v62, 1  ;;  %v13595_v62 = vld [vmem:[#allocation71_spill] sm:$0xff] }
 0x604   : > { %v7496_v27 = vmul.f32 0.2, %v7432_v3  ;;  %v7497_v48 = vmul.f32 0.2, %v7433_v20  ;;  %v5014_v41 = vpop.f32.mrb[51].mxu0  ;;  %v6587_v56 = vpop.f32.mrb[167].mxu1 }
 0x605   : > { %v12894_v10 = vadd.f32 %v5122_v2, %v13591_v4  ;;  %v5123_v35 = vadd.f32 %v5014_v41, %v13592_v16  ;;  %v7167_v54 = vrot.slane %v6587_v56, 1  ;;  %v13597_v4 = vld [vmem:[#allocation72_spill] sm:$0xff] }
 0x606   : > { %v7560_v12 = vmax.f32 %v7432_v3, %v7496_v27  ;;  %v7561_v5 = vmax.f32 %v7433_v20, %v7497_v48  ;;  %v13596_v48 = vld [vmem:[#allocation59_spill] sm:$0xff] }
 0x607   : > { %v12898_v7 = vadd.f32 %v5123_v35, %v13593_v1  ;;  %v7168_v44 = vsel %vm7120_vm1, %v7166_v53, %v7167_v54  ;;  %v7170_v40 = vsel %vm7120_vm1, %v7167_v54, %v7169_v25 }
 0x608   : > { %7624 = vst [vmem:[%s12756_s30 + $0x80] sm:$0xff] %v7560_v12  ;;  %7625 = vst [vmem:[%s12756_s30 + $0x88] sm:$0xff] %v7561_v5  ;;  %v7363_v11 = vadd.f32 %v7168_v44, %v12632_v55  ;;  %v7364_v8 = vadd.f32 %v7170_v40, %v13594_v42  ;;  %v13598_v12 = vld [vmem:[#allocation60_spill] sm:$0xff] }
 0x609   : > { %v9609_v32 = vpop.f32.mrb[52].mxu0  ;;  %v9965_v9 = vpop.f32.mrb[168].mxu1 }
 0x60a   : > { %v7434_v52 = vadd.f32 %v12744_v45, %v7363_v11  ;;  %v7435_v0 = vadd.f32 %v12744_v45, %v7364_v8  ;;  %v5025_v3 = vpop.f32.mrb[53].mxu0  ;;  %v6599_v20 = vpop.f32.mrb[169].mxu1  ;;  %v7174_v15 = vrot.slane %v9965_v9, 1  ;;  %v13599_v11 = vld [vmem:[#allocation104_spill] sm:$0xff] }
 0x60b   : > { %v5124_v47 = vadd.f32 %v5025_v3, %v13595_v62  ;;  %v9610_v2 = vpop.f32.mrb[54].mxu0  ;;  %v9966_v25 = vpop.f32.mrb[170].mxu1  ;;  %v7171_v56 = vrot.slane %v6599_v20, 1  ;;  %v13600_v62 = vld [vmem:[#allocation73_spill] sm:$0xff] }
 0x60c   : > { %v7498_v23 = vmul.f32 0.2, %v7434_v52  ;;  %v7499_v38 = vmul.f32 0.2, %v7435_v0  ;;  %v5028_v55 = vpop.f32.mrb[55].mxu0  ;;  %v6602_v27 = vpop.f32.mrb[171].mxu1 }
 0x60d   : > { %v12910_v41 = vadd.f32 %v5124_v47, %v13596_v48  ;;  %v5125_v53 = vadd.f32 %v5028_v55, %v13597_v4  ;;  %v7172_v16 = vrot.slane %v6602_v27, 1  ;;  %v13601_v55 = vld [vmem:[#allocation63_spill] sm:$0xff] }
 0x60e   : > { %v7562_v35 = vmax.f32 %v7434_v52, %v7498_v23  ;;  %v7563_v54 = vmax.f32 %v7435_v0, %v7499_v38 }
 0x60f   : > { %v12914_v5 = vadd.f32 %v5125_v53, %v13598_v12  ;;  %v7173_v1 = vsel %vm7120_vm1, %v7171_v56, %v7172_v16  ;;  %v7175_v44 = vsel %vm7120_vm1, %v7172_v16, %v7174_v15  ;;  %v13602_v56 = vld [vmem:[#allocation74_spill] sm:$0xff] }
 0x610   : > { %7626 = vst [vmem:[%s12756_s30 + $0x90] sm:$0xff] %v7562_v35  ;;  %7627 = vst [vmem:[%s12756_s30 + $0x98] sm:$0xff] %v7563_v54  ;;  %v7365_v40 = vadd.f32 %v7173_v1, %v12642_v31  ;;  %v7366_v42 = vadd.f32 %v7175_v44, %v13599_v11  ;;  %v13603_v54 = vld [vmem:[#allocation64_spill] sm:$0xff]  ;;  %v13604_v11 = vld [vmem:[#allocation105_spill] sm:$0xff] }
 0x611   : > { %v9613_v8 = vpop.f32.mrb[56].mxu0  ;;  %v9969_v32 = vpop.f32.mrb[172].mxu1 }
 0x612   : > { %v7436_v9 = vadd.f32 %v12744_v45, %v7365_v40  ;;  %v7437_v52 = vadd.f32 %v12744_v45, %v7366_v42  ;;  %v5039_v0 = vpop.f32.mrb[57].mxu0  ;;  %v6614_v3 = vpop.f32.mrb[173].mxu1  ;;  %v7179_v20 = vrot.slane %v9969_v32, 1 }
 0x613   : > { %v5126_v47 = vadd.f32 %v5039_v0, %v13600_v62  ;;  %v9614_v2 = vpop.f32.mrb[58].mxu0  ;;  %v9970_v15 = vpop.f32.mrb[174].mxu1  ;;  %v7176_v48 = vrot.slane %v6614_v3, 1 }
 0x614   : > { %v7500_v25 = vmul.f32 0.2, %v7436_v9  ;;  %v7501_v23 = vmul.f32 0.2, %v7437_v52  ;;  %v5042_v31 = vpop.f32.mrb[59].mxu0  ;;  %v6617_v38 = vpop.f32.mrb[175].mxu1 }
 0x615   : > { %v12926_v27 = vadd.f32 %v5126_v47, %v13601_v55  ;;  %v5127_v4 = vadd.f32 %v5042_v31, %v13602_v56  ;;  %v7177_v53 = vrot.slane %v6617_v38, 1  ;;  %v13605_v47 = vld [vmem:[#allocation75_spill] sm:$0xff]  ;;  %v13606_v38 = vld [vmem:[#allocation65_spill] sm:$0xff]  ;;  %v13607_v56 = vld [vmem:[#allocation76_spill] sm:$0xff] }
 0x616   : > { %v7564_v16 = vmax.f32 %v7436_v9, %v7500_v25  ;;  %v7565_v35 = vmax.f32 %v7437_v52, %v7501_v23 }
 0x617   : > { %v12930_v12 = vadd.f32 %v5127_v4, %v13603_v54  ;;  %v7178_v1 = vsel %vm7120_vm1, %v7176_v48, %v7177_v53  ;;  %v7180_v44 = vsel %vm7120_vm1, %v7177_v53, %v7179_v20  ;;  %v13608_v54 = vld [vmem:[#allocation67_spill] sm:$0xff] }
 0x618   : > { %7628 = vst [vmem:[%s12756_s30 + $0xa0] sm:$0xff] %v7564_v16  ;;  %7629 = vst [vmem:[%s12756_s30 + $0xa8] sm:$0xff] %v7565_v35  ;;  %v7367_v40 = vadd.f32 %v7178_v1, %v12652_v61  ;;  %v7368_v42 = vadd.f32 %v7180_v44, %v13604_v11 }
 0x619   : > { %v9617_v8 = vpop.f32.mrb[60].mxu0  ;;  %v9973_v32 = vpop.f32.mrb[176].mxu1 }
 0x61a   : > { %v7438_v0 = vadd.f32 %v12744_v45, %v7367_v40  ;;  %v7439_v9 = vadd.f32 %v12744_v45, %v7368_v42  ;;  %v5053_v52 = vpop.f32.mrb[61].mxu0  ;;  %v6629_v3 = vpop.f32.mrb[177].mxu1  ;;  %v7184_v62 = vrot.slane %v9973_v32, 1  ;;  %v13609_v42 = vld [vmem:[#allocation66_spill] sm:$0xff] }
 0x61b   : > { %v5128_v2 = vadd.f32 %v5053_v52, %v13605_v47  ;;  %v9618_v15 = vpop.f32.mrb[62].mxu0  ;;  %v9974_v20 = vpop.f32.mrb[178].mxu1  ;;  %v7181_v48 = vrot.slane %v6629_v3, 1 }
 0x61c   : > { %v7502_v25 = vmul.f32 0.2, %v7438_v0  ;;  %v7503_v23 = vmul.f32 0.2, %v7439_v9  ;;  %v5056_v61 = vpop.f32.mrb[63].mxu0  ;;  %v6632_v31 = vpop.f32.mrb[179].mxu1 }
 0x61d   : > { %v12942_v55 = vadd.f32 %v5128_v2, %v13606_v38  ;;  %v5129_v4 = vadd.f32 %v5056_v61, %v13607_v56  ;;  %v7182_v53 = vrot.slane %v6632_v31, 1 }
 0x61e   : > { %v7566_v16 = vmax.f32 %v7438_v0, %v7502_v25  ;;  %v7567_v35 = vmax.f32 %v7439_v9, %v7503_v23 }
 0x61f   : > { %v12946_v1 = vadd.f32 %v5129_v4, %v13608_v54  ;;  %v7183_v44 = vsel %vm7120_vm1, %v7181_v48, %v7182_v53  ;;  %v7185_v40 = vsel %vm7120_vm1, %v7182_v53, %v7184_v62  ;;  %v13610_v48 = vld [vmem:[#allocation106_spill] sm:$0xff] }
 0x620   : > { %7630 = vst [vmem:[%s12756_s30 + $0xb0] sm:$0xff] %v7566_v16  ;;  %7631 = vst [vmem:[%s12756_s30 + $0xb8] sm:$0xff] %v7567_v35  ;;  %v7369_v11 = vadd.f32 %v7183_v44, %v12662_v57  ;;  %v7370_v8 = vadd.f32 %v7185_v40, %v13609_v42 }
 0x621   : > { %v9977_v32 = vpop.f32.mrb[180].mxu1 }
 0x622   : > { %v7440_v52 = vadd.f32 %v12744_v45, %v7369_v11  ;;  %v7441_v0 = vadd.f32 %v12744_v45, %v7370_v8  ;;  %v6644_v9 = vpop.f32.mrb[181].mxu1  ;;  %v7189_v20 = vrot.slane %v9977_v32, 1 }
 0x623   : > { %v9978_v3 = vpop.f32.mrb[182].mxu1  ;;  %v7186_v62 = vrot.slane %v6644_v9, 1 }
 0x624   : > { %v7504_v47 = vmul.f32 0.2, %v7440_v52  ;;  %v7505_v2 = vmul.f32 0.2, %v7441_v0  ;;  %v6647_v15 = vpop.f32.mrb[183].mxu1 }
 0x625   : > { %v7187_v25 = vrot.slane %v6647_v15, 1 }
 0x626   : > { %v7568_v23 = vmax.f32 %v7440_v52, %v7504_v47  ;;  %v7569_v61 = vmax.f32 %v7441_v0, %v7505_v2  ;;  %v13611_v47 = vld [vmem:[#allocation77_spill] sm:$0xff] }
 0x627   : > { %v7188_v57 = vsel %vm7120_vm1, %v7186_v62, %v7187_v25  ;;  %v7190_v31 = vsel %vm7120_vm1, %v7187_v25, %v7189_v20 }
 0x628   : > { %7632 = vst [vmem:[%s12756_s30 + $0xc0] sm:$0xff] %v7568_v23  ;;  %7633 = vst [vmem:[%s12756_s30 + $0xc8] sm:$0xff] %v7569_v61  ;;  %v7371_v38 = vadd.f32 %v7188_v57, %v12672_v26  ;;  %v7372_v56 = vadd.f32 %v7190_v31, %v13610_v48 }
 0x629   : > { %v9981_v4 = vpop.f32.mrb[184].mxu1 }
 0x62a   : > { %v7442_v53 = vadd.f32 %v12744_v45, %v7371_v38  ;;  %v7443_v16 = vadd.f32 %v12744_v45, %v7372_v56  ;;  %v6659_v35 = vpop.f32.mrb[185].mxu1  ;;  %v7194_v42 = vrot.slane %v9981_v4, 1 }
 0x62b   : > { %v9982_v54 = vpop.f32.mrb[186].mxu1  ;;  %v7191_v8 = vrot.slane %v6659_v35, 1 }
 0x62c   : > { %v7506_v44 = vmul.f32 0.2, %v7442_v53  ;;  %v7507_v40 = vmul.f32 0.2, %v7443_v16  ;;  %v6662_v11 = vpop.f32.mrb[187].mxu1 }
 0x62d   : > { %v7192_v32 = vrot.slane %v6662_v11, 1 }
 0x62e   : > { %v7570_v52 = vmax.f32 %v7442_v53, %v7506_v44  ;;  %v7571_v0 = vmax.f32 %v7443_v16, %v7507_v40 }
 0x62f   : > { %v7193_v26 = vsel %vm7120_vm1, %v7191_v8, %v7192_v32  ;;  %v7195_v9 = vsel %vm7120_vm1, %v7192_v32, %v7194_v42 }
 0x630   : > { %7634 = vst [vmem:[%s12756_s30 + $0xd0] sm:$0xff] %v7570_v52  ;;  %7635 = vst [vmem:[%s12756_s30 + $0xd8] sm:$0xff] %v7571_v0  ;;  %v7373_v3 = vadd.f32 %v7193_v26, %v12682_v19  ;;  %v7374_v2 = vadd.f32 %v7195_v9, %v13611_v47 }
 0x631   : > { %v9985_v15 = vpop.f32.mrb[188].mxu1 }
 0x632   : > { %v7444_v20 = vadd.f32 %v12744_v45, %v7373_v3  ;;  %v7445_v62 = vadd.f32 %v12744_v45, %v7374_v2  ;;  %v6674_v25 = vpop.f32.mrb[189].mxu1  ;;  %v7199_v38 = vrot.slane %v9985_v15, 1 }
 0x633   : > { %v9986_v23 = vpop.f32.mrb[190].mxu1  ;;  %v7196_v48 = vrot.slane %v6674_v25, 1 }
 0x634   : > { %v7508_v61 = vmul.f32 0.2, %v7444_v20  ;;  %v7509_v57 = vmul.f32 0.2, %v7445_v62  ;;  %v6677_v31 = vpop.f32.mrb[191].mxu1 }
 0x635   : > { %v7197_v56 = vrot.slane %v6677_v31, 1 }
 0x636   : > { %v7572_v4 = vmax.f32 %v7444_v20, %v7508_v61  ;;  %v7573_v53 = vmax.f32 %v7445_v62, %v7509_v57 }
 0x637   : > { %v7198_v19 = vsel %vm7120_vm1, %v7196_v48, %v7197_v56  ;;  %v7200_v16 = vsel %vm7120_vm1, %v7197_v56, %v7199_v38 }
 0x638   : > { %7636 = vst [vmem:[%s12756_s30 + $0xe0] sm:$0xff] %v7572_v4  ;;  %7637 = vst [vmem:[%s12756_s30 + $0xe8] sm:$0xff] %v7573_v53  ;;  %v7375_v35 = vadd.f32 %v7198_v19, %v12692_v14  ;;  %v7376_v54 = vadd.f32 %v7200_v16, %v12697_v34 }
 0x639   : > { %v9989_v44 = vpop.f32.mrb[192].mxu1 }
 0x63a   : > { %v7446_v40 = vadd.f32 %v12744_v45, %v7375_v35  ;;  %v7447_v11 = vadd.f32 %v12744_v45, %v7376_v54  ;;  %v6689_v42 = vpop.f32.mrb[193].mxu1  ;;  %v7204_v26 = vrot.slane %v9989_v44, 1 }
 0x63b   : > { %v9990_v8 = vpop.f32.mrb[194].mxu1  ;;  %v7201_v9 = vrot.slane %v6689_v42, 1 }
 0x63c   : > { %v7510_v32 = vmul.f32 0.2, %v7446_v40  ;;  %v7511_v52 = vmul.f32 0.2, %v7447_v11  ;;  %v6692_v0 = vpop.f32.mrb[195].mxu1 }
 0x63d   : > { %v7202_v3 = vrot.slane %v6692_v0, 1 }
 0x63e   : > { %v7574_v47 = vmax.f32 %v7446_v40, %v7510_v32  ;;  %v7575_v2 = vmax.f32 %v7447_v11, %v7511_v52 }
 0x63f   : > { %v7203_v14 = vsel %vm7120_vm1, %v7201_v9, %v7202_v3  ;;  %v7205_v34 = vsel %vm7120_vm1, %v7202_v3, %v7204_v26 }
 0x640   : > { %7638 = vst [vmem:[%s12756_s30 + $0xf0] sm:$0xff] %v7574_v47  ;;  %7639 = vst [vmem:[%s12756_s30 + $0xf8] sm:$0xff] %v7575_v2  ;;  %v7377_v15 = vadd.f32 %v7203_v14, %v12702_v37  ;;  %v7378_v20 = vadd.f32 %v7205_v34, %v12707_v24 }
 0x641   : > { %v9993_v62 = vpop.f32.mrb[196].mxu1 }
 0x642   : > { %v7448_v25 = vadd.f32 %v12744_v45, %v7377_v15  ;;  %v7449_v23 = vadd.f32 %v12744_v45, %v7378_v20  ;;  %v6704_v61 = vpop.f32.mrb[197].mxu1  ;;  %v7209_v56 = vrot.slane %v9993_v62, 1 }
 0x643   : > { %v9994_v57 = vpop.f32.mrb[198].mxu1  ;;  %v7206_v4 = vrot.slane %v6704_v61, 1 }
 0x644   : > { %v7512_v31 = vmul.f32 0.2, %v7448_v25  ;;  %v7513_v38 = vmul.f32 0.2, %v7449_v23  ;;  %v6707_v48 = vpop.f32.mrb[199].mxu1 }
 0x645   : > { %v7207_v53 = vrot.slane %v6707_v48, 1 }
 0x646   : > { %v7576_v19 = vmax.f32 %v7448_v25, %v7512_v31  ;;  %v7577_v16 = vmax.f32 %v7449_v23, %v7513_v38 }
 0x647   : > { %v7208_v37 = vsel %vm7120_vm1, %v7206_v4, %v7207_v53  ;;  %v7210_v24 = vsel %vm7120_vm1, %v7207_v53, %v7209_v56 }
 0x648   : > { %7640 = vst [vmem:[%s12756_s30 + $0x100] sm:$0xff] %v7576_v19  ;;  %7641 = vst [vmem:[%s12756_s30 + $0x108] sm:$0xff] %v7577_v16  ;;  %v7379_v35 = vadd.f32 %v7208_v37, %v12712_v43  ;;  %v7380_v54 = vadd.f32 %v7210_v24, %v12717_v13  ;;  %v13612_v16 = vld [vmem:[#allocation78_spill] sm:$0xff] }
 0x649   : > { %v9997_v44 = vpop.f32.mrb[200].mxu1 }
 0x64a   : > { %v7450_v40 = vadd.f32 %v12744_v45, %v7379_v35  ;;  %v7451_v11 = vadd.f32 %v12744_v45, %v7380_v54  ;;  %v6719_v42 = vpop.f32.mrb[201].mxu1  ;;  %v7214_v26 = vrot.slane %v9997_v44, 1 }
 0x64b   : > { %v9998_v8 = vpop.f32.mrb[202].mxu1  ;;  %v7211_v9 = vrot.slane %v6719_v42, 1 }
 0x64c   : > { %v7514_v32 = vmul.f32 0.2, %v7450_v40  ;;  %v7515_v52 = vmul.f32 0.2, %v7451_v11  ;;  %v6722_v0 = vpop.f32.mrb[203].mxu1 }
 0x64d   : > { %v7212_v3 = vrot.slane %v6722_v0, 1 }
 0x64e   : > { %v7578_v47 = vmax.f32 %v7450_v40, %v7514_v32  ;;  %v7579_v2 = vmax.f32 %v7451_v11, %v7515_v52 }
 0x64f   : > { %v7213_v43 = vsel %vm7120_vm1, %v7211_v9, %v7212_v3  ;;  %v7215_v13 = vsel %vm7120_vm1, %v7212_v3, %v7214_v26 }
 0x650   : > { %7642 = vst [vmem:[%s12756_s30 + $0x110] sm:$0xff] %v7578_v47  ;;  %7643 = vst [vmem:[%s12756_s30 + $0x118] sm:$0xff] %v7579_v2  ;;  %v7381_v14 = vadd.f32 %v7213_v43, %v12722_v39  ;;  %v7382_v34 = vadd.f32 %v7215_v13, %v12727_v18 }
 0x651   : > { %v10001_v15 = vpop.f32.mrb[204].mxu1 }
 0x652   : > { %v7452_v20 = vadd.f32 %v12744_v45, %v7381_v14  ;;  %v7453_v62 = vadd.f32 %v12744_v45, %v7382_v34  ;;  %v6734_v25 = vpop.f32.mrb[205].mxu1  ;;  %v7219_v38 = vrot.slane %v10001_v15, 1 }
 0x653   : > { %v10002_v23 = vpop.f32.mrb[206].mxu1  ;;  %v7216_v48 = vrot.slane %v6734_v25, 1 }
 0x654   : > { %v7516_v61 = vmul.f32 0.2, %v7452_v20  ;;  %v7517_v57 = vmul.f32 0.2, %v7453_v62  ;;  %v6737_v31 = vpop.f32.mrb[207].mxu1 }
 0x655   : > { %v7217_v56 = vrot.slane %v6737_v31, 1 }
 0x656   : > { %v7580_v4 = vmax.f32 %v7452_v20, %v7516_v61  ;;  %v7581_v53 = vmax.f32 %v7453_v62, %v7517_v57 }
 0x657   : > { %v7218_v39 = vsel %vm7120_vm1, %v7216_v48, %v7217_v56  ;;  %v7220_v18 = vsel %vm7120_vm1, %v7217_v56, %v7219_v38 }
 0x658   : > { %7644 = vst [vmem:[%s12756_s30 + $0x120] sm:$0xff] %v7580_v4  ;;  %7645 = vst [vmem:[%s12756_s30 + $0x128] sm:$0xff] %v7581_v53  ;;  %v7383_v19 = vadd.f32 %v7218_v39, %v12732_v29  ;;  %v7384_v37 = vadd.f32 %v7220_v18, %v13612_v16 }
 0x659   : > { %v10005_v24 = vpop.f32.mrb[208].mxu1 }
 0x65a   : > { %v7454_v35 = vadd.f32 %v12744_v45, %v7383_v19  ;;  %v7455_v54 = vadd.f32 %v12744_v45, %v7384_v37  ;;  %v6749_v44 = vpop.f32.mrb[209].mxu1  ;;  %v7224_v32 = vrot.slane %v10005_v24, 1 }
 0x65b   : > { %v10006_v40 = vpop.f32.mrb[210].mxu1  ;;  %v7221_v52 = vrot.slane %v6749_v44, 1 }
 0x65c   : > { %v7518_v11 = vmul.f32 0.2, %v7454_v35  ;;  %v7519_v42 = vmul.f32 0.2, %v7455_v54  ;;  %v6752_v8 = vpop.f32.mrb[211].mxu1 }
 0x65d   : > { %v7222_v0 = vrot.slane %v6752_v8, 1 }
 0x65e   : > { %v7582_v26 = vmax.f32 %v7454_v35, %v7518_v11  ;;  %v7583_v9 = vmax.f32 %v7455_v54, %v7519_v42 }
 0x65f   : > { %v7223_v29 = vsel %vm7120_vm1, %v7221_v52, %v7222_v0  ;;  %v7225_v3 = vsel %vm7120_vm1, %v7222_v0, %v7224_v32  ;;  %v13037_v32 = vld [vmem:[%s13122_s4] ss:$0 sm:$0xff] }
 0x660   : > { %7646 = vst [vmem:[%s12756_s30 + $0x130] sm:$0xff] %v7582_v26  ;;  %7647 = vst [vmem:[%s12756_s30 + $0x138] sm:$0xff] %v7583_v9  ;;  %v7385_v47 = vadd.f32 %v7223_v29, %v12759_v50  ;;  %v7386_v2 = vadd.f32 %v7225_v3, %v12764_v17 }
 0x661   : > { %v10009_v43 = vpop.f32.mrb[212].mxu1 }
 0x662   : > { %v7456_v13 = vadd.f32 %v12744_v45, %v7385_v47  ;;  %v7457_v14 = vadd.f32 %v12744_v45, %v7386_v2  ;;  %v6764_v34 = vpop.f32.mrb[213].mxu1  ;;  %v7229_v23 = vrot.slane %v10009_v43, 1 }
 0x663   : > { %v10010_v15 = vpop.f32.mrb[214].mxu1  ;;  %v7226_v61 = vrot.slane %v6764_v34, 1 }
 0x664   : > { %v7520_v20 = vmul.f32 0.2, %v7456_v13  ;;  %v7521_v62 = vmul.f32 0.2, %v7457_v14  ;;  %v6767_v25 = vpop.f32.mrb[215].mxu1 }
 0x665   : > { %v7227_v57 = vrot.slane %v6767_v25, 1 }
 0x666   : > { %v7584_v31 = vmax.f32 %v7456_v13, %v7520_v20  ;;  %v7585_v38 = vmax.f32 %v7457_v14, %v7521_v62 }
 0x667   : > { %v7228_v50 = vsel %vm7120_vm1, %v7226_v61, %v7227_v57  ;;  %v7230_v17 = vsel %vm7120_vm1, %v7227_v57, %v7229_v23 }
 0x668   : > { %7648 = vst [vmem:[%s12756_s30 + $0x140] sm:$0xff] %v7584_v31  ;;  %7649 = vst [vmem:[%s12756_s30 + $0x148] sm:$0xff] %v7585_v38  ;;  %v7387_v48 = vadd.f32 %v7228_v50, %v12777_v60  ;;  %v7388_v56 = vadd.f32 %v7230_v17, %v12782_v63 }
 0x669   : > { %v10013_v4 = vpop.f32.mrb[216].mxu1 }
 0x66a   : > { %v7458_v53 = vadd.f32 %v12744_v45, %v7387_v48  ;;  %v7459_v39 = vadd.f32 %v12744_v45, %v7388_v56  ;;  %v6779_v18 = vpop.f32.mrb[217].mxu1  ;;  %v7234_v35 = vrot.slane %v10013_v4, 1 }
 0x66b   : > { %v10014_v19 = vpop.f32.mrb[218].mxu1  ;;  %v7231_v54 = vrot.slane %v6779_v18, 1 }
 0x66c   : > { %v7522_v16 = vmul.f32 0.2, %v7458_v53  ;;  %v7523_v37 = vmul.f32 0.2, %v7459_v39  ;;  %v6782_v24 = vpop.f32.mrb[219].mxu1 }
 0x66d   : > { %v7232_v44 = vrot.slane %v6782_v24, 1 }
 0x66e   : > { %v7586_v40 = vmax.f32 %v7458_v53, %v7522_v16  ;;  %v7587_v11 = vmax.f32 %v7459_v39, %v7523_v37 }
 0x66f   : > { %v7233_v60 = vsel %vm7120_vm1, %v7231_v54, %v7232_v44  ;;  %v7235_v63 = vsel %vm7120_vm1, %v7232_v44, %v7234_v35 }
 0x670   : > { %7650 = vst [vmem:[%s12756_s30 + $0x150] sm:$0xff] %v7586_v40  ;;  %7651 = vst [vmem:[%s12756_s30 + $0x158] sm:$0xff] %v7587_v11  ;;  %v7389_v42 = vadd.f32 %v7233_v60, %v12795_v6  ;;  %v7390_v45 = vadd.f32 %v7235_v63, %v12800_v30 }
 0x671   : > { %v10017_v8 = vpop.f32.mrb[220].mxu1 }
 0x672   : > { %v7460_v52 = vadd.f32 %v13037_v32, %v7389_v42  ;;  %v7461_v0 = vadd.f32 %v13037_v32, %v7390_v45  ;;  %v6794_v26 = vpop.f32.mrb[221].mxu1  ;;  %v7239_v6 = vrot.slane %v10017_v8, 1 }
 0x673   : > { %v10018_v9 = vpop.f32.mrb[222].mxu1  ;;  %v7236_v2 = vrot.slane %v6794_v26, 1 }
 0x674   : > { %v7524_v29 = vmul.f32 0.2, %v7460_v52  ;;  %v7525_v3 = vmul.f32 0.2, %v7461_v0  ;;  %v6797_v47 = vpop.f32.mrb[223].mxu1 }
 0x675   : > { %v7237_v30 = vrot.slane %v6797_v47, 1 }
 0x676   : > { %v7588_v43 = vmax.f32 %v7460_v52, %v7524_v29  ;;  %v7589_v13 = vmax.f32 %v7461_v0, %v7525_v3 }
 0x677   : > { %v7238_v14 = vsel %vm7120_vm1, %v7236_v2, %v7237_v30  ;;  %v7240_v34 = vsel %vm7120_vm1, %v7237_v30, %v7239_v6 }
 0x678   : > { %7652 = vst [vmem:[%s12756_s30 + $0x160] sm:$0xff] %v7588_v43  ;;  %7653 = vst [vmem:[%s12756_s30 + $0x168] sm:$0xff] %v7589_v13  ;;  %v7391_v15 = vadd.f32 %v7238_v14, %v12813_v59  ;;  %v7392_v20 = vadd.f32 %v7240_v34, %v12818_v36 }
 0x679   : > { %v10021_v62 = vpop.f32.mrb[224].mxu1 }
 0x67a   : > { %v7462_v25 = vadd.f32 %v13037_v32, %v7391_v15  ;;  %v7463_v23 = vadd.f32 %v13037_v32, %v7392_v20  ;;  %v6809_v61 = vpop.f32.mrb[225].mxu1  ;;  %v7244_v17 = vrot.slane %v10021_v62, 1 }
 0x67b   : > { %v10022_v57 = vpop.f32.mrb[226].mxu1  ;;  %v7241_v48 = vrot.slane %v6809_v61, 1 }
 0x67c   : > { %v7526_v31 = vmul.f32 0.2, %v7462_v25  ;;  %v7527_v38 = vmul.f32 0.2, %v7463_v23  ;;  %v6812_v50 = vpop.f32.mrb[227].mxu1 }
 0x67d   : > { %v7242_v56 = vrot.slane %v6812_v50, 1 }
 0x67e   : > { %v7590_v4 = vmax.f32 %v7462_v25, %v7526_v31  ;;  %v7591_v53 = vmax.f32 %v7463_v23, %v7527_v38 }
 0x67f   : > { %v7243_v59 = vsel %vm7120_vm1, %v7241_v48, %v7242_v56  ;;  %v7245_v36 = vsel %vm7120_vm1, %v7242_v56, %v7244_v17 }
 0x680   : > { %7654 = vst [vmem:[%s12756_s30 + $0x170] sm:$0xff] %v7590_v4  ;;  %7655 = vst [vmem:[%s12756_s30 + $0x178] sm:$0xff] %v7591_v53  ;;  %v7393_v39 = vadd.f32 %v7243_v59, %v12830_v21  ;;  %v7394_v18 = vadd.f32 %v7245_v36, %v12834_v22 }
 0x681   : > { %v10025_v19 = vpop.f32.mrb[228].mxu1 }
 0x682   : > { %v7464_v16 = vadd.f32 %v13037_v32, %v7393_v39  ;;  %v7465_v37 = vadd.f32 %v13037_v32, %v7394_v18  ;;  %v6824_v24 = vpop.f32.mrb[229].mxu1  ;;  %v7249_v11 = vrot.slane %v10025_v19, 1 }
 0x683   : > { %v10026_v35 = vpop.f32.mrb[230].mxu1  ;;  %v7246_v60 = vrot.slane %v6824_v24, 1 }
 0x684   : > { %v7528_v54 = vmul.f32 0.2, %v7464_v16  ;;  %v7529_v44 = vmul.f32 0.2, %v7465_v37  ;;  %v6827_v40 = vpop.f32.mrb[231].mxu1 }
 0x685   : > { %v7247_v63 = vrot.slane %v6827_v40, 1 }
 0x686   : > { %v7592_v42 = vmax.f32 %v7464_v16, %v7528_v54  ;;  %v7593_v45 = vmax.f32 %v7465_v37, %v7529_v44 }
 0x687   : > { %v7248_v21 = vsel %vm7120_vm1, %v7246_v60, %v7247_v63  ;;  %v7250_v22 = vsel %vm7120_vm1, %v7247_v63, %v7249_v11 }
 0x688   : > { %7656 = vst [vmem:[%s12756_s30 + $0x180] sm:$0xff] %v7592_v42  ;;  %7657 = vst [vmem:[%s12756_s30 + $0x188] sm:$0xff] %v7593_v45  ;;  %v7395_v8 = vadd.f32 %v7248_v21, %v12846_v28  ;;  %v7396_v52 = vadd.f32 %v7250_v22, %v12850_v49 }
 0x689   : > { %v10029_v0 = vpop.f32.mrb[232].mxu1 }
 0x68a   : > { %v7466_v26 = vadd.f32 %v13037_v32, %v7395_v8  ;;  %v7467_v9 = vadd.f32 %v13037_v32, %v7396_v52  ;;  %v6839_v29 = vpop.f32.mrb[233].mxu1  ;;  %v7254_v30 = vrot.slane %v10029_v0, 1 }
 0x68b   : > { %v10030_v3 = vpop.f32.mrb[234].mxu1  ;;  %v7251_v43 = vrot.slane %v6839_v29, 1 }
 0x68c   : > { %v7530_v47 = vmul.f32 0.2, %v7466_v26  ;;  %v7531_v6 = vmul.f32 0.2, %v7467_v9  ;;  %v6842_v2 = vpop.f32.mrb[235].mxu1 }
 0x68d   : > { %v7252_v13 = vrot.slane %v6842_v2, 1 }
 0x68e   : > { %v7594_v14 = vmax.f32 %v7466_v26, %v7530_v47  ;;  %v7595_v34 = vmax.f32 %v7467_v9, %v7531_v6 }
 0x68f   : > { %v7253_v28 = vsel %vm7120_vm1, %v7251_v43, %v7252_v13  ;;  %v7255_v49 = vsel %vm7120_vm1, %v7252_v13, %v7254_v30 }
 0x690   : > { %7658 = vst [vmem:[%s12756_s30 + $0x190] sm:$0xff] %v7594_v14  ;;  %7659 = vst [vmem:[%s12756_s30 + $0x198] sm:$0xff] %v7595_v34  ;;  %v7397_v15 = vadd.f32 %v7253_v28, %v12862_v58  ;;  %v7398_v20 = vadd.f32 %v7255_v49, %v12866_v33 }
 0x691   : > { %v10033_v62 = vpop.f32.mrb[236].mxu1 }
 0x692   : > { %v7468_v25 = vadd.f32 %v13037_v32, %v7397_v15  ;;  %v7469_v23 = vadd.f32 %v13037_v32, %v7398_v20  ;;  %v6854_v61 = vpop.f32.mrb[237].mxu1  ;;  %v7259_v17 = vrot.slane %v10033_v62, 1 }
 0x693   : > { %v10034_v57 = vpop.f32.mrb[238].mxu1  ;;  %v7256_v48 = vrot.slane %v6854_v61, 1 }
 0x694   : > { %v7532_v31 = vmul.f32 0.2, %v7468_v25  ;;  %v7533_v38 = vmul.f32 0.2, %v7469_v23  ;;  %v6857_v50 = vpop.f32.mrb[239].mxu1 }
 0x695   : > { %v7257_v56 = vrot.slane %v6857_v50, 1 }
 0x696   : > { %v7596_v4 = vmax.f32 %v7468_v25, %v7532_v31  ;;  %v7597_v53 = vmax.f32 %v7469_v23, %v7533_v38 }
 0x697   : > { %v7258_v58 = vsel %vm7120_vm1, %v7256_v48, %v7257_v56  ;;  %v7260_v33 = vsel %vm7120_vm1, %v7257_v56, %v7259_v17 }
 0x698   : > { %7660 = vst [vmem:[%s12756_s30 + $0x1a0] sm:$0xff] %v7596_v4  ;;  %7661 = vst [vmem:[%s12756_s30 + $0x1a8] sm:$0xff] %v7597_v53  ;;  %v7399_v59 = vadd.f32 %v7258_v58, %v12878_v46  ;;  %v7400_v36 = vadd.f32 %v7260_v33, %v12882_v51 }
 0x699   : > { %v10037_v39 = vpop.f32.mrb[240].mxu1 }
 0x69a   : > { %v7470_v18 = vadd.f32 %v13037_v32, %v7399_v59  ;;  %v7471_v19 = vadd.f32 %v13037_v32, %v7400_v36  ;;  %v6869_v16 = vpop.f32.mrb[241].mxu1  ;;  %v7264_v44 = vrot.slane %v10037_v39, 1 }
 0x69b   : > { %v10038_v37 = vpop.f32.mrb[242].mxu1  ;;  %v7261_v40 = vrot.slane %v6869_v16, 1 }
 0x69c   : > { %v7534_v24 = vmul.f32 0.2, %v7470_v18  ;;  %v7535_v35 = vmul.f32 0.2, %v7471_v19  ;;  %v6872_v54 = vpop.f32.mrb[243].mxu1 }
 0x69d   : > { %v7262_v11 = vrot.slane %v6872_v54, 1 }
 0x69e   : > { %v7598_v60 = vmax.f32 %v7470_v18, %v7534_v24  ;;  %v7599_v63 = vmax.f32 %v7471_v19, %v7535_v35 }
 0x69f   : > { %v7263_v46 = vsel %vm7120_vm1, %v7261_v40, %v7262_v11  ;;  %v7265_v51 = vsel %vm7120_vm1, %v7262_v11, %v7264_v44 }
 0x6a0   : > { %7662 = vst [vmem:[%s12756_s30 + $0x1b0] sm:$0xff] %v7598_v60  ;;  %7663 = vst [vmem:[%s12756_s30 + $0x1b8] sm:$0xff] %v7599_v63  ;;  %v7401_v42 = vadd.f32 %v7263_v46, %v12894_v10  ;;  %v7402_v45 = vadd.f32 %v7265_v51, %v12898_v7 }
 0x6a1   : > { %v10041_v21 = vpop.f32.mrb[244].mxu1 }
 0x6a2   : > { %v7472_v22 = vadd.f32 %v13037_v32, %v7401_v42  ;;  %v7473_v8 = vadd.f32 %v13037_v32, %v7402_v45  ;;  %v6884_v52 = vpop.f32.mrb[245].mxu1  ;;  %v7269_v3 = vrot.slane %v10041_v21, 1 }
 0x6a3   : > { %v10042_v0 = vpop.f32.mrb[246].mxu1  ;;  %v7266_v47 = vrot.slane %v6884_v52, 1 }
 0x6a4   : > { %v7536_v26 = vmul.f32 0.2, %v7472_v22  ;;  %v7537_v9 = vmul.f32 0.2, %v7473_v8  ;;  %v6887_v29 = vpop.f32.mrb[247].mxu1 }
 0x6a5   : > { %v7267_v6 = vrot.slane %v6887_v29, 1 }
 0x6a6   : > { %v7600_v2 = vmax.f32 %v7472_v22, %v7536_v26  ;;  %v7601_v30 = vmax.f32 %v7473_v8, %v7537_v9 }
 0x6a7   : > { %v7268_v10 = vsel %vm7120_vm1, %v7266_v47, %v7267_v6  ;;  %v7270_v7 = vsel %vm7120_vm1, %v7267_v6, %v7269_v3 }
 0x6a8   : > { %7664 = vst [vmem:[%s12756_s30 + $0x1c0] sm:$0xff] %v7600_v2  ;;  %7665 = vst [vmem:[%s12756_s30 + $0x1c8] sm:$0xff] %v7601_v30  ;;  %v7403_v43 = vadd.f32 %v7268_v10, %v12910_v41  ;;  %v7404_v13 = vadd.f32 %v7270_v7, %v12914_v5 }
 0x6a9   : > { %v10045_v14 = vpop.f32.mrb[248].mxu1 }
 0x6aa   : > { %v7474_v34 = vadd.f32 %v13037_v32, %v7403_v43  ;;  %v7475_v28 = vadd.f32 %v13037_v32, %v7404_v13  ;;  %v6899_v49 = vpop.f32.mrb[249].mxu1  ;;  %v7274_v23 = vrot.slane %v10045_v14, 1 }
 0x6ab   : > { %v10046_v15 = vpop.f32.mrb[250].mxu1  ;;  %v7271_v61 = vrot.slane %v6899_v49, 1 }
 0x6ac   : > { %v7538_v20 = vmul.f32 0.2, %v7474_v34  ;;  %v7539_v62 = vmul.f32 0.2, %v7475_v28  ;;  %v6902_v25 = vpop.f32.mrb[251].mxu1 }
 0x6ad   : > { %v7272_v57 = vrot.slane %v6902_v25, 1 }
 0x6ae   : > { %v7602_v31 = vmax.f32 %v7474_v34, %v7538_v20  ;;  %v7603_v38 = vmax.f32 %v7475_v28, %v7539_v62 }
 0x6af   : > { %v7273_v41 = vsel %vm7120_vm1, %v7271_v61, %v7272_v57  ;;  %v7275_v5 = vsel %vm7120_vm1, %v7272_v57, %v7274_v23 }
 0x6b0   : > { %7666 = vst [vmem:[%s12756_s30 + $0x1d0] sm:$0xff] %v7602_v31  ;;  %7667 = vst [vmem:[%s12756_s30 + $0x1d8] sm:$0xff] %v7603_v38  ;;  %v7405_v50 = vadd.f32 %v7273_v41, %v12926_v27  ;;  %v7406_v17 = vadd.f32 %v7275_v5, %v12930_v12 }
 0x6b1   : > { %v10049_v48 = vpop.f32.mrb[252].mxu1 }
 0x6b2   : > { %v7476_v56 = vadd.f32 %v13037_v32, %v7405_v50  ;;  %v7477_v4 = vadd.f32 %v13037_v32, %v7406_v17  ;;  %v6914_v53 = vpop.f32.mrb[253].mxu1  ;;  %v7279_v39 = vrot.slane %v10049_v48, 1 }
 0x6b3   : > { %v10050_v58 = vpop.f32.mrb[254].mxu1  ;;  %v7276_v18 = vrot.slane %v6914_v53, 1 }
 0x6b4   : > { %v7540_v33 = vmul.f32 0.2, %v7476_v56  ;;  %v7541_v59 = vmul.f32 0.2, %v7477_v4  ;;  %v6917_v36 = vpop.f32.mrb[255].mxu1 }
 0x6b5   : > { %v7277_v19 = vrot.slane %v6917_v36, 1 }
 0x6b6   : > { %v7604_v27 = vmax.f32 %v7476_v56, %v7540_v33  ;;  %v7605_v16 = vmax.f32 %v7477_v4, %v7541_v59 }
 0x6b7   : > { %v7278_v12 = vsel %vm7120_vm1, %v7276_v18, %v7277_v19  ;;  %v7280_v37 = vsel %vm7120_vm1, %v7277_v19, %v7279_v39 }
 0x6b8   : > { %7668 = vst [vmem:[%s12756_s30 + $0x1e0] sm:$0xff] %v7604_v27  ;;  %7669 = vst [vmem:[%s12756_s30 + $0x1e8] sm:$0xff] %v7605_v16  ;;  %v7407_v24 = vadd.f32 %v7278_v12, %v12942_v55  ;;  %v7408_v35 = vadd.f32 %v7280_v37, %v12946_v1 }
 0x6ba   : > { %v7478_v54 = vadd.f32 %v13037_v32, %v7407_v24  ;;  %v7479_v44 = vadd.f32 %v13037_v32, %v7408_v35 }
 0x6bc   : > { %v7542_v40 = vmul.f32 0.2, %v7478_v54  ;;  %v7543_v11 = vmul.f32 0.2, %v7479_v44 }
 0x6be   : > { %v7606_v60 = vmax.f32 %v7478_v54, %v7542_v40  ;;  %v7607_v63 = vmax.f32 %v7479_v44, %v7543_v11 }
 0x6c0   : > { %7670 = vst [vmem:[%s12756_s30 + $0x1f0] sm:$0xff] %v7606_v60  ;;  %7671 = vst [vmem:[%s12756_s30 + $0x1f8] sm:$0xff] %v7607_v63 }
 0x6c1 PF: > { %s15_s18 = sadd.s32 1, %s10675_s18  }
 0x6c2   : > { %p12_p4 = scmp.ge.s32.totalorder %s15_s18, 6  }
 0x6c4   :  { %14 = sbr.rel (!%p12_p4) target bundleno = 1 (0x1), region = 81 }

</bundles_post_ra>
